<compile_context>
chip_gen: v7x
topology: tpu7x:2x2x1
jax: 0.10.0
libtpu: 0.0.40
codegen_flags: <defaults>
</compile_context>

<pallas_src>
import jax
import jax.numpy as jnp
from jax.experimental import pallas as pl
from jax.experimental.pallas import tpu as pltpu

D_IN = 32 * 32       # 1024
D_HID = 1024
D_OUT = 10
D_OUT_PAD = 128      # lane-dense padded fc2 output width


def _cdiv(a, b):
    return -(-a // b)


def _round_up(x, m):
    return ((x + m - 1) // m) * m


def _pick_tm(batch):
    # Small batch: one exact tile (block dim == array dim is always legal,
    # avoids padding and ragged-edge handling entirely).
    if batch <= 256:
        return batch
    # Large batch: big tiles amortize the ~0.35us per-grid-step overhead, but
    # keep >= 2 grid steps so v7x's two TensorCores both get work via the
    # "parallel" batch axis.
    half = _cdiv(batch, 2)
    return min(1024, _round_up(half, 256))


def _fcnet_kernel(x_ref, w1_ref, b1_ref, w2_ref, b2_ref, o_ref):
    # x_ref : (TM, 1024) f32       w1_ref: (1024, 1024) bf16   b1_ref: (1, 1024) f32
    # w2_ref: (1024, 128) bf16     b2_ref: (1, 128)     f32    o_ref : (TM, 128) f32
    x = x_ref[...].astype(jnp.bfloat16)              # in-kernel cast: VPU filler
    h = jnp.dot(x, w1_ref[...], preferred_element_type=jnp.float32) + b1_ref[...]
    h = jnp.maximum(h, 0.0).astype(jnp.bfloat16)     # ReLU, back to bf16 for MXU
    o = jnp.dot(h, w2_ref[...], preferred_element_type=jnp.float32) + b2_ref[...]
    o_ref[...] = o.astype(o_ref.dtype)


def prepare_params(w1, b1, w2, b2):
    """One-time parameter prep (hoisted out of the per-call hot path).

    w1/w2 are stored (in, out) == PyTorch weight transposed so the kernel runs
    plain row-major MXU matmuls.
    """
    w1_bf = w1.astype(jnp.bfloat16)
    w2_pad = jnp.zeros((D_HID, D_OUT_PAD), jnp.bfloat16).at[:, :D_OUT].set(
        w2.astype(jnp.bfloat16))
    b1_2d = b1.reshape(1, D_HID).astype(jnp.float32)
    b2_pad = jnp.zeros((1, D_OUT_PAD), jnp.float32).at[:, :D_OUT].set(
        b2.astype(jnp.float32))
    return w1_bf, b1_2d, w2_pad, b2_pad


def _in_specs(tm, single_buffer_weights):
    resident = {}
    if single_buffer_weights:
        # Constant block index -> one VMEM buffer is enough; saves ~2.3 MiB.
        resident = dict(pipeline_mode=pl.Buffered(buffer_count=1))
    return [
        pl.BlockSpec((tm, D_IN), lambda i: (i, 0)),                       # x: batch-tiled
        pl.BlockSpec((D_IN, D_HID), lambda i: (0, 0), **resident),        # w1: resident
        pl.BlockSpec((1, D_HID), lambda i: (0, 0), **resident),           # b1: resident
        pl.BlockSpec((D_HID, D_OUT_PAD), lambda i: (0, 0), **resident),   # w2: resident
        pl.BlockSpec((1, D_OUT_PAD), lambda i: (0, 0), **resident),       # b2: resident
    ]


def _call(x2d, prepped, tm, single_buffer_weights):
    w1_bf, b1_2d, w2_pad, b2_pad = prepped
    batch = x2d.shape[0]
    grid = (_cdiv(batch, tm),)

    flops = 2 * batch * D_IN * D_HID + 2 * batch * D_HID * D_OUT_PAD
    bytes_accessed = (x2d.size * 4 + w1_bf.size * 2 + w2_pad.size * 2
                      + b1_2d.size * 4 + b2_pad.size * 4 + batch * D_OUT_PAD * 4)

    return pl.pallas_call(
        _fcnet_kernel,
        out_shape=jax.ShapeDtypeStruct((batch, D_OUT_PAD), jnp.float32),
        grid=grid,
        in_specs=_in_specs(tm, single_buffer_weights),
        out_specs=pl.BlockSpec((tm, D_OUT_PAD), lambda i: (i, 0)),
        compiler_params=pltpu.CompilerParams(
            dimension_semantics=("parallel",),
            vmem_limit_bytes=32 << 20,
        ),
        cost_estimate=pl.CostEstimate(
            flops=flops, transcendentals=0, bytes_accessed=bytes_accessed),
    )(x2d, w1_bf, b1_2d, w2_pad, b2_pad)


def fcnet_forward(x_nchw, prepped_params):
    """x_nchw: (B, 1, 32, 32) f32 (NCHW as in PyTorch). Returns (B, 10) f32 logits."""
    batch = x_nchw.shape[0]
    x2d = x_nchw.reshape(batch, -1)              # == torch x.view(x.size(0), -1)
    assert x2d.shape[1] == D_IN

    tm = _pick_tm(batch)
    try:
        out = _call(x2d, prepped_params, tm, single_buffer_weights=True)
    except Exception:
        # pipeline_mode=Buffered(1) not supported by this JAX build -> fall back
        # to default (double-buffered) resident weights.
        out = _call(x2d, prepped_params, tm, single_buffer_weights=False)

    # NOTE: this slice (128 -> 10 cols) is one small extra HBM pass.
    return out[:, :D_OUT]


def init_params(key):
    """Deterministic PyTorch-style init: U(-1/sqrt(fan_in), 1/sqrt(fan_in))."""
    k1, k2, k3, k4 = jax.random.split(key, 4)
    bound1 = 1.0 / jnp.sqrt(D_IN)
    bound2 = 1.0 / jnp.sqrt(D_HID)
    # Stored as (in, out) == torch weight transposed.
    w1 = jax.random.uniform(k1, (D_IN, D_HID), jnp.float32, -bound1, bound1)
    b1 = jax.random.uniform(k2, (D_HID,), jnp.float32, -bound1, bound1)
    w2 = jax.random.uniform(k3, (D_HID, D_OUT), jnp.float32, -bound2, bound2)
    b2 = jax.random.uniform(k4, (D_OUT,), jnp.float32, -bound2, bound2)
    return w1, b1, w2, b2


if __name__ == "__main__":
    key = jax.random.PRNGKey(0)
    k_x, k_p = jax.random.split(key)

    w1, b1, w2, b2 = init_params(k_p)
    prepped = prepare_params(w1, b1, w2, b2)     # one-time, outside the hot path

    for B in (2, 20):
        x = jax.random.normal(jax.random.fold_in(k_x, B), (B, 1, 32, 32),
                              dtype=jnp.float32)  # NCHW
        logits = jax.block_until_ready(fcnet_forward(x, prepped))

        # Pure-JAX f32 reference (bf16 operands + f32 accum => loose tolerance).
        x_flat = x.reshape(B, -1)
        ref = jnp.maximum(x_flat @ w1 + b1, 0.0) @ w2 + b2
        assert logits.shape == (B, D_OUT)
        assert jnp.allclose(logits, ref, atol=5e-2, rtol=5e-2), (
            B, float(jnp.max(jnp.abs(logits - ref))))

    print("KERNEL_OK")
</pallas_src>

<mosaic_0001>
module attributes {stable_mosaic.version = 11 : i64} {
  func.func @_fcnet_kernel(%arg0: i32, %arg1: memref<2x1024xf32, #tpu.memory_space<vmem>>, %arg2: memref<1024x1024xbf16, #tpu.memory_space<vmem>>, %arg3: memref<1x1024xf32, #tpu.memory_space<vmem>>, %arg4: memref<1024x128xbf16, #tpu.memory_space<vmem>>, %arg5: memref<1x128xf32, #tpu.memory_space<vmem>>, %arg6: memref<2x128xf32, #tpu.memory_space<vmem>>) attributes {dimension_semantics = [#tpu.dimension_semantics<parallel>], iteration_bounds = array<i64: 1>, scalar_prefetch = 0 : i64, scratch_operands = 0 : i64, tpu.core_type = #tpu.core_type<tc>, window_params = [{transform_indices = @transform_0, window_bounds = array<i64: 2, 1024>}, {pipeline_mode = #tpu.pipeline_mode<synchronous>, transform_indices = @transform_1, window_bounds = array<i64: 1024, 1024>}, {pipeline_mode = #tpu.pipeline_mode<synchronous>, transform_indices = @transform_2, window_bounds = array<i64: 1, 1024>}, {pipeline_mode = #tpu.pipeline_mode<synchronous>, transform_indices = @transform_3, window_bounds = array<i64: 1024, 128>}, {pipeline_mode = #tpu.pipeline_mode<synchronous>, transform_indices = @transform_4, window_bounds = array<i64: 1, 128>}, {transform_indices = @transform_5, window_bounds = array<i64: 2, 128>}]} {
    %c0 = arith.constant 0 : index
    %c0_0 = arith.constant 0 : index
    %0 = vector.load %arg1[%c0, %c0_0] : memref<2x1024xf32, #tpu.memory_space<vmem>>, vector<2x1024xf32>
    %1 = arith.truncf %0 : vector<2x1024xf32> to vector<2x1024xbf16>
    %c0_1 = arith.constant 0 : index
    %c0_2 = arith.constant 0 : index
    %2 = vector.load %arg2[%c0_1, %c0_2] : memref<1024x1024xbf16, #tpu.memory_space<vmem>>, vector<1024x1024xbf16>
    %cst = arith.constant dense<0.000000e+00> : vector<2x1024xf32>
    %3 = tpu.matmul %1, %2, %cst {dimension_numbers = #tpu.dot_dimension_numbers<[1], [0], [0], [1], [0, 0, 1, 1], [], []>} : vector<2x1024xbf16>, vector<1024x1024xbf16>, vector<2x1024xf32> -> vector<2x1024xf32>
    %c0_3 = arith.constant 0 : index
    %c0_4 = arith.constant 0 : index
    %4 = vector.load %arg3[%c0_3, %c0_4] : memref<1x1024xf32, #tpu.memory_space<vmem>>, vector<1x1024xf32>
    %5 = vector.broadcast %4 : vector<1x1024xf32> to vector<2x1024xf32>
    %6 = arith.addf %3, %5 : vector<2x1024xf32>
    %cst_5 = arith.constant 0.000000e+00 : f32
    %7 = vector.broadcast %cst_5 : f32 to vector<2x1024xf32>
    %8 = arith.maximumf %6, %7 : vector<2x1024xf32>
    %9 = arith.truncf %8 : vector<2x1024xf32> to vector<2x1024xbf16>
    %c0_6 = arith.constant 0 : index
    %c0_7 = arith.constant 0 : index
    %10 = vector.load %arg4[%c0_6, %c0_7] : memref<1024x128xbf16, #tpu.memory_space<vmem>>, vector<1024x128xbf16>
    %cst_8 = arith.constant dense<0.000000e+00> : vector<2x128xf32>
    %11 = tpu.matmul %9, %10, %cst_8 {dimension_numbers = #tpu.dot_dimension_numbers<[1], [0], [0], [1], [0, 0, 1, 1], [], []>} : vector<2x1024xbf16>, vector<1024x128xbf16>, vector<2x128xf32> -> vector<2x128xf32>
    %c0_9 = arith.constant 0 : index
    %c0_10 = arith.constant 0 : index
    %12 = vector.load %arg5[%c0_9, %c0_10] : memref<1x128xf32, #tpu.memory_space<vmem>>, vector<1x128xf32>
    %13 = vector.broadcast %12 : vector<1x128xf32> to vector<2x128xf32>
    %14 = arith.addf %11, %13 : vector<2x128xf32>
    %c0_11 = arith.constant 0 : index
    %c0_12 = arith.constant 0 : index
    %15 = vector.load %arg6[%c0_11, %c0_12] : memref<2x128xf32, #tpu.memory_space<vmem>>, vector<2x128xf32>
    tpu.vector_store %arg6[%c0_11, %c0_12], %14 {strides = array<i32>} : memref<2x128xf32, #tpu.memory_space<vmem>>, vector<2x128xf32>,
    return
  }
  func.func @transform_0(%arg0: i32) -> (i32, i32) {
    %c0_i32 = arith.constant 0 : i32
    %c0_i32_0 = arith.constant 0 : i32
    return %arg0, %c0_i32 : i32, i32
  }
  func.func @transform_1(%arg0: i32) -> (i32, i32) {
    %c0_i32 = arith.constant 0 : i32
    %c0_i32_0 = arith.constant 0 : i32
    %c0_i32_1 = arith.constant 0 : i32
    return %c0_i32, %c0_i32_0 : i32, i32
  }
  func.func @transform_2(%arg0: i32) -> (i32, i32) {
    %c0_i32 = arith.constant 0 : i32
    %c0_i32_0 = arith.constant 0 : i32
    %c0_i32_1 = arith.constant 0 : i32
    return %c0_i32, %c0_i32_0 : i32, i32
  }
  func.func @transform_3(%arg0: i32) -> (i32, i32) {
    %c0_i32 = arith.constant 0 : i32
    %c0_i32_0 = arith.constant 0 : i32
    %c0_i32_1 = arith.constant 0 : i32
    return %c0_i32, %c0_i32_0 : i32, i32
  }
  func.func @transform_4(%arg0: i32) -> (i32, i32) {
    %c0_i32 = arith.constant 0 : i32
    %c0_i32_0 = arith.constant 0 : i32
    %c0_i32_1 = arith.constant 0 : i32
    return %c0_i32, %c0_i32_0 : i32, i32
  }
  func.func @transform_5(%arg0: i32) -> (i32, i32) {
    %c0_i32 = arith.constant 0 : i32
    %c0_i32_0 = arith.constant 0 : i32
    return %arg0, %c0_i32 : i32, i32
  }
}

module attributes {stable_mosaic.version = 11 : i64} {
  func.func @_fcnet_kernel(%arg0: i32, %arg1: memref<2x1024xf32, #tpu.memory_space<vmem>>, %arg2: memref<1024x1024xbf16, #tpu.memory_space<vmem>>, %arg3: memref<1x1024xf32, #tpu.memory_space<vmem>>, %arg4: memref<1024x128xbf16, #tpu.memory_space<vmem>>, %arg5: memref<1x128xf32, #tpu.memory_space<vmem>>, %arg6: memref<2x128xf32, #tpu.memory_space<vmem>>) attributes {dimension_semantics = [#tpu.dimension_semantics<parallel>], iteration_bounds = array<i64: 1>, scalar_prefetch = 0 : i64, scratch_operands = 0 : i64, tpu.core_type = #tpu.core_type<tc>, window_params = [{transform_indices = @transform_0, window_bounds = array<i64: 2, 1024>}, {pipeline_mode = #tpu.pipeline_mode<synchronous>, transform_indices = @transform_1, window_bounds = array<i64: 1024, 1024>}, {pipeline_mode = #tpu.pipeline_mode<synchronous>, transform_indices = @transform_2, window_bounds = array<i64: 1, 1024>}, {pipeline_mode = #tpu.pipeline_mode<synchronous>, transform_indices = @transform_3, window_bounds = array<i64: 1024, 128>}, {pipeline_mode = #tpu.pipeline_mode<synchronous>, transform_indices = @transform_4, window_bounds = array<i64: 1, 128>}, {transform_indices = @transform_5, window_bounds = array<i64: 2, 128>}]} {
    %c0 = arith.constant 0 : index
    %c0_0 = arith.constant 0 : index
    %0 = vector.load %arg1[%c0, %c0_0] : memref<2x1024xf32, #tpu.memory_space<vmem>>, vector<2x1024xf32>
    %1 = arith.truncf %0 : vector<2x1024xf32> to vector<2x1024xbf16>
    %c0_1 = arith.constant 0 : index
    %c0_2 = arith.constant 0 : index
    %2 = vector.load %arg2[%c0_1, %c0_2] : memref<1024x1024xbf16, #tpu.memory_space<vmem>>, vector<1024x1024xbf16>
    %cst = arith.constant dense<0.000000e+00> : vector<2x1024xf32>
    %3 = tpu.matmul %1, %2, %cst {dimension_numbers = #tpu.dot_dimension_numbers<[1], [0], [0], [1], [0, 0, 1, 1], [], []>} : vector<2x1024xbf16>, vector<1024x1024xbf16>, vector<2x1024xf32> -> vector<2x1024xf32>
    %c0_3 = arith.constant 0 : index
    %c0_4 = arith.constant 0 : index
    %4 = vector.load %arg3[%c0_3, %c0_4] : memref<1x1024xf32, #tpu.memory_space<vmem>>, vector<1x1024xf32>
    %5 = vector.broadcast %4 : vector<1x1024xf32> to vector<2x1024xf32>
    %6 = arith.addf %3, %5 : vector<2x1024xf32>
    %cst_5 = arith.constant 0.000000e+00 : f32
    %7 = vector.broadcast %cst_5 : f32 to vector<2x1024xf32>
    %8 = arith.maximumf %6, %7 : vector<2x1024xf32>
    %9 = arith.truncf %8 : vector<2x1024xf32> to vector<2x1024xbf16>
    %c0_6 = arith.constant 0 : index
    %c0_7 = arith.constant 0 : index
    %10 = vector.load %arg4[%c0_6, %c0_7] : memref<1024x128xbf16, #tpu.memory_space<vmem>>, vector<1024x128xbf16>
    %cst_8 = arith.constant dense<0.000000e+00> : vector<2x128xf32>
    %11 = tpu.matmul %9, %10, %cst_8 {dimension_numbers = #tpu.dot_dimension_numbers<[1], [0], [0], [1], [0, 0, 1, 1], [], []>} : vector<2x1024xbf16>, vector<1024x128xbf16>, vector<2x128xf32> -> vector<2x128xf32>
    %c0_9 = arith.constant 0 : index
    %c0_10 = arith.constant 0 : index
    %12 = vector.load %arg5[%c0_9, %c0_10] : memref<1x128xf32, #tpu.memory_space<vmem>>, vector<1x128xf32>
    %13 = vector.broadcast %12 : vector<1x128xf32> to vector<2x128xf32>
    %14 = arith.addf %11, %13 : vector<2x128xf32>
    %c0_11 = arith.constant 0 : index
    %c0_12 = arith.constant 0 : index
    %15 = vector.load %arg6[%c0_11, %c0_12] : memref<2x128xf32, #tpu.memory_space<vmem>>, vector<2x128xf32>
    tpu.vector_store %arg6[%c0_11, %c0_12], %14 {strides = array<i32>} : memref<2x128xf32, #tpu.memory_space<vmem>>, vector<2x128xf32>,
    return
  }
  func.func @transform_0(%arg0: i32) -> (i32, i32) {
    %c0_i32 = arith.constant 0 : i32
    %c0_i32_0 = arith.constant 0 : i32
    return %arg0, %c0_i32 : i32, i32
  }
  func.func @transform_1(%arg0: i32) -> (i32, i32) {
    %c0_i32 = arith.constant 0 : i32
    %c0_i32_0 = arith.constant 0 : i32
    %c0_i32_1 = arith.constant 0 : i32
    return %c0_i32, %c0_i32_0 : i32, i32
  }
  func.func @transform_2(%arg0: i32) -> (i32, i32) {
    %c0_i32 = arith.constant 0 : i32
    %c0_i32_0 = arith.constant 0 : i32
    %c0_i32_1 = arith.constant 0 : i32
    return %c0_i32, %c0_i32_0 : i32, i32
  }
  func.func @transform_3(%arg0: i32) -> (i32, i32) {
    %c0_i32 = arith.constant 0 : i32
    %c0_i32_0 = arith.constant 0 : i32
    %c0_i32_1 = arith.constant 0 : i32
    return %c0_i32, %c0_i32_0 : i32, i32
  }
  func.func @transform_4(%arg0: i32) -> (i32, i32) {
    %c0_i32 = arith.constant 0 : i32
    %c0_i32_0 = arith.constant 0 : i32
    %c0_i32_1 = arith.constant 0 : i32
    return %c0_i32, %c0_i32_0 : i32, i32
  }
  func.func @transform_5(%arg0: i32) -> (i32, i32) {
    %c0_i32 = arith.constant 0 : i32
    %c0_i32_0 = arith.constant 0 : i32
    return %arg0, %c0_i32 : i32, i32
  }
}

</mosaic_0001>

<bundles_post_ra>
// kernel: tpu_custom_call.1
= control target key start
LH: loop header
LB: loop body
LE: loop exit
PB: predicated region body
PF: predicated region fallthrough
CT: control target
= control target key end

     0   :  { %10 = vsyncpa [#allocation3], 0  ;;  %s5793_s0 = inlined_call_operand.hbm [shape: f32[2,1024], index: 0, kind: input, shape index: {}]   ;;  %s5794_s1 = inlined_call_operand.hbm [shape: bf16[1024,1024], index: 1, kind: input, shape index: {}]   ;;  %s5795_s2 = inlined_call_operand.hbm [shape: f32[1,1024], index: 2, kind: input, shape index: {}]   ;;  %s5796_s3 = inlined_call_operand.hbm [shape: bf16[1024,128], index: 3, kind: input, shape index: {}]   ;;  %s5797_s4 = inlined_call_operand.hbm [shape: f32[1,128], index: 4, kind: input, shape index: {}]   ;;  %s5798_s5 = inlined_call_operand.hbm [shape: f32[2,128], index: 5, kind: output, shape index: {}]  }
   0x1   :  { %11 = vsyncpa [#allocation6], 0 }
   0x2   :  { %12 = vsyncpa [#allocation9], 0 }
   0x3   :  { %13 = vsyncpa [#allocation4], 0  ;;  %s5559_s18 = smov [#allocation5]   ;;  %s5419_s22 = scalar_lea.hbm %s5794_s1, 65536 }
   0x4   :  { %s29_s19 = sshll.u32 %s5559_s18, 4  ;;  %p5420_p0 = scmp.ne.s32.totalorder %s5794_s1, %s5419_s22  ;;  %s30_s19 = int_to_ptr.vmem [resolvable:$true] %s29_s19 }
   0x5   :  { %p5423_p1 = scmp.lt.u32.totalorder %s5419_s22, %s5794_s1 }
   0x7   :  { %p5425_p2 = pnand %p5423_p1, %p5420_p0 }
   0x9   :  { %5428 = shalt.err (!%p5425_p2)
}
   0xa   :  { %s5429_s27 = scalar_lea.vmem %s30_s19, 65536  ;;  %p5434_p4 = scmp.lt.s32.totalorder %s30_s19, %s30_s19 }
   0xb   :  { %p5430_p3 = scmp.ne.s32.totalorder %s30_s19, %s5429_s27  ;;  %p5435_p5 = scmp.lt.s32.totalorder %s5429_s27, %s5429_s27 }
   0xd   :  { %p5436_p6 = por %p5435_p5, %p5434_p4 }
   0xf   :  { %p5437_p7 = pnand %p5436_p6, %p5430_p3 }
  0x11   :  { %5440 = shalt.err (!%p5437_p7)
}
  0x12   :  { %s5560_s28 = smov 512   ;;  %s5561_s29 = smov 32  }
  0x13   :  { %35 = dma.hbm_to_vmem [thread:$0]  %s5794_s1, 65536, %s30_s19, [#allocation6], %s5560_s28, %s5560_s28, %s5561_s29  }
  0x14   :  { %s5562_s7 = smov [#allocation8]   ;;  %s5441_s11 = scalar_lea.hbm %s5796_s3, 8192 }
  0x15   :  { %s51_s8 = sshll.u32 %s5562_s7, 4  ;;  %p5442_p8 = scmp.ne.s32.totalorder %s5796_s3, %s5441_s11  ;;  %s52_s8 = int_to_ptr.vmem [resolvable:$true] %s51_s8 }
  0x16   :  { %p5445_p9 = scmp.lt.u32.totalorder %s5441_s11, %s5796_s3 }
  0x18   :  { %p5447_p10 = pnand %p5445_p9, %p5442_p8 }
  0x1a   :  { %5450 = shalt.err (!%p5447_p10)
}
  0x1b   :  { %s5451_s16 = scalar_lea.vmem %s52_s8, 8192  ;;  %p5456_p12 = scmp.lt.s32.totalorder %s52_s8, %s52_s8 }
  0x1c   :  { %p5452_p11 = scmp.ne.s32.totalorder %s52_s8, %s5451_s16  ;;  %p5457_p13 = scmp.lt.s32.totalorder %s5451_s16, %s5451_s16 }
  0x1e   :  { %p5458_p0 = por %p5457_p13, %p5456_p12 }
  0x20   :  { %p5459_p1 = pnand %p5458_p0, %p5452_p11 }
  0x22   :  { %5462 = shalt.err (!%p5459_p1)
}
  0x23   :  { %s5563_s1 = smov 64   ;;  %s5564_s17 = smov 4  }
  0x24   :  { %57 = dma.hbm_to_vmem [thread:$0]  %s5796_s3, 8192, %s52_s8, [#allocation9], %s5563_s1, %s5563_s1, %s5564_s17  }
  0x25   :  { %s5565_s20 = smov [#allocation2]   ;;  %s5566_s22 = smov [#allocation7]  }
  0x26   :  { %s20_s21 = sshll.u32 %s5565_s20, 4  ;;  %s42_s23 = sshll.u32 %s5566_s22, 4  ;;  %s21_s21 = int_to_ptr.vmem [resolvable:$true] %s20_s21  ;;  %s43_s23 = int_to_ptr.vmem [resolvable:$true] %s42_s23 }
  0x27   :  { %s5463_s26 = scalar_lea.hbm %s5793_s0, 256 }
  0x28   :  { %p5464_p2 = scmp.ne.s32.totalorder %s5793_s0, %s5463_s26  ;;  %p5467_p3 = scmp.lt.u32.totalorder %s5463_s26, %s5793_s0 }
  0x2a   :  { %p5469_p4 = pnand %p5467_p3, %p5464_p2 }
  0x2c   :  { %5472 = shalt.err (!%p5469_p4)
}
  0x2d   :  { %s5473_s3 = scalar_lea.vmem %s21_s21, 256  ;;  %p5478_p6 = scmp.lt.s32.totalorder %s21_s21, %s21_s21 }
  0x2e   :  { %p5474_p5 = scmp.ne.s32.totalorder %s21_s21, %s5473_s3  ;;  %p5479_p7 = scmp.lt.s32.totalorder %s5473_s3, %s5473_s3 }
  0x30   :  { %p5480_p8 = por %p5479_p7, %p5478_p6 }
  0x32   :  { %p5481_p9 = pnand %p5480_p8, %p5474_p5 }
  0x34   :  { %5484 = shalt.err (!%p5481_p9)
}
  0x35   :  { %23 = dma.hbm_to_vmem [thread:$0]  %s5793_s0, 256, %s21_s21, [#allocation3]  }
  0x36   :  { %s5485_s10 = scalar_lea.hbm %s5795_s2, 128 }
  0x37   :  { %p5486_p10 = scmp.ne.s32.totalorder %s5795_s2, %s5485_s10  ;;  %p5489_p11 = scmp.lt.u32.totalorder %s5485_s10, %s5795_s2 }
  0x39   :  { %p5491_p12 = pnand %p5489_p11, %p5486_p10 }
  0x3b   :  { %5494 = shalt.err (!%p5491_p12)
}
  0x3c   :  { %s5495_s15 = scalar_lea.vmem %s43_s23, 128  ;;  %p5500_p0 = scmp.lt.s32.totalorder %s43_s23, %s43_s23 }
  0x3d   :  { %p5496_p13 = scmp.ne.s32.totalorder %s43_s23, %s5495_s15  ;;  %p5501_p1 = scmp.lt.s32.totalorder %s5495_s15, %s5495_s15 }
  0x3f   :  { %p5502_p2 = por %p5501_p1, %p5500_p0 }
  0x41   :  { %p5503_p3 = pnand %p5502_p2, %p5496_p13 }
  0x43   :  { %5506 = shalt.err (!%p5503_p3)
}
  0x44   :  { %45 = dma.hbm_to_vmem [thread:$0]  %s5795_s2, 128, %s43_s23, [#allocation6]  }
  0x45   :  { %s5567_s1 = smov [#allocation10]   ;;  %s5507_s20 = scalar_lea.hbm %s5797_s4, 16 }
  0x46   :  { %s64_s17 = sshll.u32 %s5567_s1, 4  ;;  %p5508_p4 = scmp.ne.s32.totalorder %s5797_s4, %s5507_s20  ;;  %s65_s17 = int_to_ptr.vmem [resolvable:$true] %s64_s17 }
  0x47   :  { %p5511_p5 = scmp.lt.u32.totalorder %s5507_s20, %s5797_s4 }
  0x49   :  { %p5513_p6 = pnand %p5511_p5, %p5508_p4 }
  0x4b   :  { %5516 = shalt.err (!%p5513_p6)
}
  0x4c   :  { %s5517_s26 = scalar_lea.vmem %s65_s17, 16  ;;  %s5521_s2 = scalar_lea.vmem %s65_s17, 32 }
  0x4d   :  { %p5518_p7 = scmp.ne.s32.totalorder %s65_s17, %s5517_s26  ;;  %p5522_p8 = scmp.lt.s32.totalorder %s65_s17, %s65_s17 }
  0x4e   :  { %p5523_p9 = scmp.lt.s32.totalorder %s5521_s2, %s5517_s26 }
  0x50   :  { %p5524_p10 = por %p5523_p9, %p5522_p8 }
  0x52   :  { %p5525_p11 = pnand %p5524_p10, %p5518_p7 }
  0x54   :  { %5528 = shalt.err (!%p5525_p11)
}
  0x55   :  { %67 = dma.hbm_to_vmem [thread:$0]  %s5797_s4, 16, %s65_s17, [#allocation9]  }
  0x56   :  { %5551 = dma.done.wait [#allocation3], 256  }
  0x57   :  { %5552 = vsyncadd [#allocation3], 4294967040 }
  0x58   :  { %5553 = dma.done.wait [#allocation6], 65664  }
  0x59   :  { %5554 = vsyncadd [#allocation6], 4294901632 }
  0x5a   :  { %5555 = dma.done.wait [#allocation9], 8208  }
  0x5b   :  { %5556 = vsyncadd [#allocation9], 4294959088  ;;  %v138_v0 = vld [vmem:[#allocation5] sm:$0xff]  ;;  %v139_v2 = vld [vmem:[#allocation5 + $0x8] sm:$0xff]  ;;  %v5568_v32 = vmov 1983009808   ;;  %v92_v34 = vlaneseq }
  0x5c   :  { %v142_v1 = vld [vmem:[#allocation5 + $0x20] sm:$0xff]  ;;  %v143_v4 = vld [vmem:[#allocation5 + $0x28] sm:$0xff]  ;;  %v90_v33 = vunpack.c.l.s4 %v5568_v32  ;;  %v5665_v59 = vld [vmem:[#allocation2] sm:$0xff]  ;;  %s5569_s4 = smov [#allocation11]  }
  0x5d   :  { %v4622_v3 = vcombine.high %v138_v0, %v142_v1  ;;  %v4621_v5 = vcombine.low %v138_v0, %v142_v1  ;;  %v146_v6 = vld [vmem:[#allocation5 + $0x40] sm:$0xff]  ;;  %v4624_v8 = vcombine.high %v139_v2, %v143_v4  ;;  %v4623_v9 = vcombine.low %v139_v2, %v143_v4  ;;  %v147_v11 = vld [vmem:[#allocation5 + $0x48] sm:$0xff]  ;;  %s4610_s28 = sshll.u32 %s5569_s4, 4  ;;  %s4611_s28 = int_to_ptr.vmem [resolvable:$true] %s4610_s28 }
  0x5e   :  { %v150_v7 = vld [vmem:[#allocation5 + $0x60] sm:$0xff]  ;;  %v151_v12 = vld [vmem:[#allocation5 + $0x68] sm:$0xff]  ;;  %v91_v43 = vunpack.c.0.s8 %v90_v33  ;;  %v5660_v44 = vshrl.u32 %v92_v34, 7  ;;  %s5529_s29 = scalar_lea.vmem %s4611_s28, 32  ;;  %p5534_p13 = scmp.lt.s32.totalorder %s4611_s28, %s4611_s28 }
  0x5f   :  { %v4630_v10 = vcombine.high %v146_v6, %v150_v7  ;;  %v154_v13 = vld [vmem:[#allocation5 + $0x80] sm:$0xff]  ;;  %3252 = vmatprep.subr.bf16.mxu0 %v4622_v3  ;;  %v4632_v14 = vcombine.high %v147_v11, %v151_v12  ;;  %v155_v16 = vld [vmem:[#allocation5 + $0x88] sm:$0xff]  ;;  %3416 = vmatprep.subr.bf16.mxu1 %v4624_v8  ;;  %v4629_v18 = vcombine.low %v146_v6, %v150_v7  ;;  %p5530_p12 = scmp.ne.s32.totalorder %s4611_s28, %s5529_s29  ;;  %p5535_p0 = scmp.lt.s32.totalorder %s5529_s29, %s5529_s29 }
  0x60   :  { %v158_v15 = vld [vmem:[#allocation5 + $0xa0] sm:$0xff]  ;;  %v159_v17 = vld [vmem:[#allocation5 + $0xa8] sm:$0xff]  ;;  %3253 = vmatpush1.bf16.msra.mxu0 %v4621_v5  ;;  %3417 = vmatpush1.bf16.msra.mxu1 %v4623_v9  ;;  %v4631_v19 = vcombine.low %v147_v11, %v151_v12  ;;  %v5663_v53 = vsub.s32 %v91_v43, %v5660_v44 }
  0x61   :  { %3254 = vmatprep.subr.bf16.mxu0 %v4630_v10  ;;  %v4638_v20 = vcombine.high %v154_v13, %v158_v15  ;;  %3418 = vmatprep.subr.bf16.mxu1 %v4632_v14  ;;  %v4640_v21 = vcombine.high %v155_v16, %v159_v17  ;;  %v162_v22 = vld [vmem:[#allocation5 + $0xc0] sm:$0xff]  ;;  %v163_v24 = vld [vmem:[#allocation5 + $0xc8] sm:$0xff]  ;;  %v4637_v26 = vcombine.low %v154_v13, %v158_v15  ;;  %p5536_p1 = por %p5535_p0, %p5534_p13 }
  0x62   :  { %v166_v23 = vld [vmem:[#allocation5 + $0xe0] sm:$0xff]  ;;  %v167_v25 = vld [vmem:[#allocation5 + $0xe8] sm:$0xff]  ;;  %v4639_v27 = vcombine.low %v155_v16, %v159_v17  ;;  %v5669_v63 = vrot.slane %v5665_v59, %v5663_v53 }
  0x63   :  { %v4646_v28 = vcombine.high %v162_v22, %v166_v23  ;;  %v4648_v29 = vcombine.high %v163_v24, %v167_v25  ;;  %v170_v30 = vld [vmem:[#allocation5 + $0x100] sm:$0xff]  ;;  %v171_v35 = vld [vmem:[#allocation5 + $0x108] sm:$0xff]  ;;  %v4645_v37 = vcombine.low %v162_v22, %v166_v23  ;;  %v4647_v38 = vcombine.low %v163_v24, %v167_v25  ;;  %p5537_p2 = pnand %p5536_p1, %p5530_p12 }
  0x64   :  { %3255 = vmatpush1.bf16.msra.mxu0 %v4629_v18  ;;  %3419 = vmatpush1.bf16.msra.mxu1 %v4631_v19  ;;  %v174_v31 = vld [vmem:[#allocation5 + $0x120] sm:$0xff]  ;;  %v175_v36 = vld [vmem:[#allocation5 + $0x128] sm:$0xff]  ;;  %v103_v3 = vcombine.high %v5669_v63, %v5669_v63 }
  0x65   :  { %3256 = vmatprep.subr.bf16.mxu0 %v4638_v20  ;;  %3420 = vmatprep.subr.bf16.mxu1 %v4640_v21  ;;  %v4654_v39 = vcombine.high %v170_v30, %v174_v31  ;;  %v4656_v40 = vcombine.high %v171_v35, %v175_v36  ;;  %v178_v41 = vld [vmem:[#allocation5 + $0x140] sm:$0xff]  ;;  %v179_v45 = vld [vmem:[#allocation5 + $0x148] sm:$0xff]  ;;  %v4653_v47 = vcombine.low %v170_v30, %v174_v31 }
  0x66   :  { %v182_v42 = vld [vmem:[#allocation5 + $0x160] sm:$0xff]  ;;  %v183_v46 = vld [vmem:[#allocation5 + $0x168] sm:$0xff]  ;;  %v4655_v48 = vcombine.low %v171_v35, %v175_v36  ;;  %v5673_v9 = vpack.c.bf16 %v103_v3, %v103_v3 }
  0x67   :  { %v4662_v49 = vcombine.high %v178_v41, %v182_v42  ;;  %v4664_v50 = vcombine.high %v179_v45, %v183_v46  ;;  %v186_v51 = vld [vmem:[#allocation5 + $0x180] sm:$0xff]  ;;  %v187_v54 = vld [vmem:[#allocation5 + $0x188] sm:$0xff]  ;;  %v4661_v56 = vcombine.low %v178_v41, %v182_v42  ;;  %v4663_v57 = vcombine.low %v179_v45, %v183_v46 }
  0x68   :  { %3257 = vmatpush1.bf16.msra.mxu0 %v4637_v26  ;;  %3421 = vmatpush1.bf16.msra.mxu1 %v4639_v27  ;;  %v190_v52 = vld [vmem:[#allocation5 + $0x1a0] sm:$0xff]  ;;  %v191_v55 = vld [vmem:[#allocation5 + $0x1a8] sm:$0xff] }
  0x69   :  { %3258 = vmatprep.subr.bf16.mxu0 %v4646_v28  ;;  %3422 = vmatprep.subr.bf16.mxu1 %v4648_v29  ;;  %v4670_v58 = vcombine.high %v186_v51, %v190_v52  ;;  %v4672_v60 = vcombine.high %v187_v54, %v191_v55  ;;  %v194_v61 = vld [vmem:[#allocation5 + $0x1c0] sm:$0xff]  ;;  %v195_v0 = vld [vmem:[#allocation5 + $0x1c8] sm:$0xff]  ;;  %v4669_v2 = vcombine.low %v186_v51, %v190_v52 }
  0x6a   :  { %v198_v62 = vld [vmem:[#allocation5 + $0x1e0] sm:$0xff]  ;;  %v199_v1 = vld [vmem:[#allocation5 + $0x1e8] sm:$0xff]  ;;  %v4671_v4 = vcombine.low %v187_v54, %v191_v55  ;;  %3284 = vmatprep.mubr.bf16.mxu0 %v5673_v9  ;;  %3448 = vmatprep.mubr.bf16.mxu1 %v5673_v9 }
  0x6b   :  { %v4678_v5 = vcombine.high %v194_v61, %v198_v62  ;;  %v4680_v6 = vcombine.high %v195_v0, %v199_v1  ;;  %v202_v7 = vld [vmem:[#allocation5 + $0x200] sm:$0xff]  ;;  %v203_v10 = vld [vmem:[#allocation5 + $0x208] sm:$0xff]  ;;  %v4677_v12 = vcombine.low %v194_v61, %v198_v62  ;;  %v4679_v13 = vcombine.low %v195_v0, %v199_v1 }
  0x6c   :  { %3259 = vmatpush1.bf16.msra.mxu0 %v4645_v37  ;;  %3423 = vmatpush1.bf16.msra.mxu1 %v4647_v38  ;;  %v206_v8 = vld [vmem:[#allocation5 + $0x220] sm:$0xff]  ;;  %v207_v11 = vld [vmem:[#allocation5 + $0x228] sm:$0xff] }
  0x6d   :  { %3260 = vmatprep.subr.bf16.mxu0 %v4654_v39  ;;  %3424 = vmatprep.subr.bf16.mxu1 %v4656_v40  ;;  %v4686_v14 = vcombine.high %v202_v7, %v206_v8  ;;  %v4688_v15 = vcombine.high %v203_v10, %v207_v11  ;;  %v210_v16 = vld [vmem:[#allocation5 + $0x240] sm:$0xff]  ;;  %v211_v18 = vld [vmem:[#allocation5 + $0x248] sm:$0xff]  ;;  %v4685_v20 = vcombine.low %v202_v7, %v206_v8 }
  0x6e   :  { %v214_v17 = vld [vmem:[#allocation5 + $0x260] sm:$0xff]  ;;  %v215_v19 = vld [vmem:[#allocation5 + $0x268] sm:$0xff]  ;;  %v4687_v21 = vcombine.low %v203_v10, %v207_v11 }
  0x6f   :  { %v4694_v22 = vcombine.high %v210_v16, %v214_v17  ;;  %v4696_v23 = vcombine.high %v211_v18, %v215_v19  ;;  %v218_v24 = vld [vmem:[#allocation5 + $0x280] sm:$0xff]  ;;  %v219_v26 = vld [vmem:[#allocation5 + $0x288] sm:$0xff]  ;;  %v4693_v28 = vcombine.low %v210_v16, %v214_v17  ;;  %v4695_v29 = vcombine.low %v211_v18, %v215_v19 }
  0x70   :  { %3261 = vmatpush1.bf16.msra.mxu0 %v4653_v47  ;;  %3425 = vmatpush1.bf16.msra.mxu1 %v4655_v48  ;;  %v222_v25 = vld [vmem:[#allocation5 + $0x2a0] sm:$0xff]  ;;  %v223_v27 = vld [vmem:[#allocation5 + $0x2a8] sm:$0xff] }
  0x71   :  { %3262 = vmatprep.subr.bf16.mxu0 %v4662_v49  ;;  %3426 = vmatprep.subr.bf16.mxu1 %v4664_v50  ;;  %v4702_v30 = vcombine.high %v218_v24, %v222_v25  ;;  %v4704_v31 = vcombine.high %v219_v26, %v223_v27  ;;  %v226_v32 = vld [vmem:[#allocation5 + $0x2c0] sm:$0xff]  ;;  %v227_v34 = vld [vmem:[#allocation5 + $0x2c8] sm:$0xff]  ;;  %v4701_v36 = vcombine.low %v218_v24, %v222_v25 }
  0x72   :  { %v230_v33 = vld [vmem:[#allocation5 + $0x2e0] sm:$0xff]  ;;  %v231_v35 = vld [vmem:[#allocation5 + $0x2e8] sm:$0xff]  ;;  %v4703_v37 = vcombine.low %v219_v26, %v223_v27  ;;  %v5686_v25 = vpack.c.bf16 %v5669_v63, %v5669_v63 }
  0x73   :  { %v4710_v38 = vcombine.high %v226_v32, %v230_v33  ;;  %v4712_v39 = vcombine.high %v227_v34, %v231_v35  ;;  %v234_v40 = vld [vmem:[#allocation5 + $0x300] sm:$0xff]  ;;  %v235_v42 = vld [vmem:[#allocation5 + $0x308] sm:$0xff]  ;;  %v4709_v45 = vcombine.low %v226_v32, %v230_v33  ;;  %v4711_v46 = vcombine.low %v227_v34, %v231_v35 }
  0x74   :  { %3263 = vmatpush1.bf16.msra.mxu0 %v4661_v56  ;;  %3427 = vmatpush1.bf16.msra.mxu1 %v4663_v57  ;;  %v238_v41 = vld [vmem:[#allocation5 + $0x320] sm:$0xff]  ;;  %v239_v43 = vld [vmem:[#allocation5 + $0x328] sm:$0xff] }
  0x75   :  { %3264 = vmatprep.subr.bf16.mxu0 %v4670_v58  ;;  %3428 = vmatprep.subr.bf16.mxu1 %v4672_v60  ;;  %v4718_v47 = vcombine.high %v234_v40, %v238_v41  ;;  %v4720_v48 = vcombine.high %v235_v42, %v239_v43  ;;  %v242_v49 = vld [vmem:[#allocation5 + $0x340] sm:$0xff]  ;;  %v243_v51 = vld [vmem:[#allocation5 + $0x348] sm:$0xff]  ;;  %v4717_v54 = vcombine.low %v234_v40, %v238_v41 }
  0x76   :  { %v246_v50 = vld [vmem:[#allocation5 + $0x360] sm:$0xff]  ;;  %v247_v52 = vld [vmem:[#allocation5 + $0x368] sm:$0xff]  ;;  %v4719_v55 = vcombine.low %v235_v42, %v239_v43 }
  0x77   :  { %v4726_v56 = vcombine.high %v242_v49, %v246_v50  ;;  %v4728_v57 = vcombine.high %v243_v51, %v247_v52  ;;  %v250_v58 = vld [vmem:[#allocation5 + $0x380] sm:$0xff]  ;;  %v251_v61 = vld [vmem:[#allocation5 + $0x388] sm:$0xff]  ;;  %v4725_v0 = vcombine.low %v242_v49, %v246_v50  ;;  %v4727_v1 = vcombine.low %v243_v51, %v247_v52 }
  0x78   :  { %3265 = vmatpush1.bf16.msra.mxu0 %v4669_v2  ;;  %3429 = vmatpush1.bf16.msra.mxu1 %v4671_v4  ;;  %v254_v60 = vld [vmem:[#allocation5 + $0x3a0] sm:$0xff]  ;;  %v255_v62 = vld [vmem:[#allocation5 + $0x3a8] sm:$0xff] }
  0x79   :  { %3266 = vmatprep.subr.bf16.mxu0 %v4678_v5  ;;  %3430 = vmatprep.subr.bf16.mxu1 %v4680_v6  ;;  %v4734_v2 = vcombine.high %v250_v58, %v254_v60  ;;  %v4736_v3 = vcombine.high %v251_v61, %v255_v62  ;;  %v258_v4 = vld [vmem:[#allocation5 + $0x3c0] sm:$0xff]  ;;  %v88_v6 = vcombine.high %v5665_v59, %v5665_v59  ;;  %v259_v7 = vld [vmem:[#allocation5 + $0x3c8] sm:$0xff] }
  0x7a   :  { %v262_v5 = vld [vmem:[#allocation5 + $0x3e0] sm:$0xff]  ;;  %v263_v8 = vld [vmem:[#allocation5 + $0x3e8] sm:$0xff]  ;;  %v4733_v10 = vcombine.low %v250_v58, %v254_v60  ;;  %v4735_v11 = vcombine.low %v251_v61, %v255_v62 }
  0x7b   :  { %v5680_v16 = vrot.slane %v88_v6, %v5663_v53  ;;  %v267_v17 = vld [vmem:[#allocation5 + $0x408] sm:$0xff]  ;;  %v4741_v19 = vcombine.low %v258_v4, %v262_v5  ;;  %v4743_v59 = vcombine.low %v259_v7, %v263_v8  ;;  %v286_v32 = vld [vmem:[#allocation5 + $0x4a0] sm:$0xff] }
  0x7c   :  { %3267 = vmatpush1.bf16.msra.mxu0 %v4677_v12  ;;  %3431 = vmatpush1.bf16.msra.mxu1 %v4679_v13  ;;  %v4742_v12 = vcombine.high %v258_v4, %v262_v5  ;;  %v4744_v13 = vcombine.high %v259_v7, %v263_v8  ;;  %v271_v18 = vld [vmem:[#allocation5 + $0x428] sm:$0xff]  ;;  %v294_v40 = vld [vmem:[#allocation5 + $0x4e0] sm:$0xff] }
  0x7d   :  { %3268 = vmatprep.subr.bf16.mxu0 %v4686_v14  ;;  %3432 = vmatprep.subr.bf16.mxu1 %v4688_v15  ;;  %v266_v14 = vld [vmem:[#allocation5 + $0x400] sm:$0xff]  ;;  %v104_v24 = vcombine.high %v5680_v16, %v5680_v16  ;;  %v275_v26 = vld [vmem:[#allocation5 + $0x448] sm:$0xff] }
  0x7e   :  { %v270_v15 = vld [vmem:[#allocation5 + $0x420] sm:$0xff]  ;;  %v279_v27 = vld [vmem:[#allocation5 + $0x468] sm:$0xff] }
  0x7f   :  { %v283_v33 = vld [vmem:[#allocation5 + $0x488] sm:$0xff]  ;;  %v4760_v34 = vcombine.high %v275_v26, %v279_v27  ;;  %v302_v49 = vld [vmem:[#allocation5 + $0x520] sm:$0xff] }
  0x80   :  { %3269 = vmatpush1.bf16.msra.mxu0 %v4685_v20  ;;  %3433 = vmatpush1.bf16.msra.mxu1 %v4687_v21  ;;  %v4750_v20 = vcombine.high %v266_v14, %v270_v15  ;;  %v4752_v21 = vcombine.high %v267_v17, %v271_v18  ;;  %v287_v35 = vld [vmem:[#allocation5 + $0x4a8] sm:$0xff]  ;;  %v310_v58 = vld [vmem:[#allocation5 + $0x560] sm:$0xff] }
  0x81   :  { %3270 = vmatprep.subr.bf16.mxu0 %v4694_v22  ;;  %3434 = vmatprep.subr.bf16.mxu1 %v4696_v23  ;;  %v274_v22 = vld [vmem:[#allocation5 + $0x440] sm:$0xff]  ;;  %v291_v41 = vld [vmem:[#allocation5 + $0x4c8] sm:$0xff]  ;;  %v4768_v42 = vcombine.high %v283_v33, %v287_v35 }
  0x82   :  { %v278_v23 = vld [vmem:[#allocation5 + $0x460] sm:$0xff]  ;;  %v295_v43 = vld [vmem:[#allocation5 + $0x4e8] sm:$0xff] }
  0x83   :  { %v4757_v63 = vcombine.low %v274_v22, %v278_v23  ;;  %v299_v50 = vld [vmem:[#allocation5 + $0x508] sm:$0xff]  ;;  %v4776_v51 = vcombine.high %v291_v41, %v295_v43  ;;  %v318_v4 = vld [vmem:[#allocation5 + $0x5a0] sm:$0xff] }
  0x84   :  { %3271 = vmatpush1.bf16.msra.mxu0 %v4693_v28  ;;  %3435 = vmatpush1.bf16.msra.mxu1 %v4695_v29  ;;  %v4749_v28 = vcombine.low %v266_v14, %v270_v15  ;;  %v4751_v29 = vcombine.low %v267_v17, %v271_v18  ;;  %v303_v52 = vld [vmem:[#allocation5 + $0x528] sm:$0xff] }
  0x85   :  { %3272 = vmatprep.subr.bf16.mxu0 %v4702_v30  ;;  %3436 = vmatprep.subr.bf16.mxu1 %v4704_v31  ;;  %v4758_v30 = vcombine.high %v274_v22, %v278_v23  ;;  %v282_v31 = vld [vmem:[#allocation5 + $0x480] sm:$0xff]  ;;  %v307_v60 = vld [vmem:[#allocation5 + $0x548] sm:$0xff]  ;;  %v4784_v61 = vcombine.high %v299_v50, %v303_v52 }
  0x86   :  { %v311_v62 = vld [vmem:[#allocation5 + $0x568] sm:$0xff] }
  0x87   :  { %v315_v5 = vld [vmem:[#allocation5 + $0x588] sm:$0xff]  ;;  %v4792_v6 = vcombine.high %v307_v60, %v311_v62 }
  0x88   :  { %3273 = vmatpush1.bf16.msra.mxu0 %v4701_v36  ;;  %3437 = vmatpush1.bf16.msra.mxu1 %v4703_v37  ;;  %v5688_v36 = vpack.c.bf16 %v104_v24, %v104_v24  ;;  %v4759_v37 = vcombine.low %v275_v26, %v279_v27  ;;  %v319_v7 = vld [vmem:[#allocation5 + $0x5a8] sm:$0xff] }
  0x89   :  { %3274 = vmatprep.subr.bf16.mxu0 %v4710_v38  ;;  %3438 = vmatprep.subr.bf16.mxu1 %v4712_v39  ;;  %v4766_v38 = vcombine.high %v282_v31, %v286_v32  ;;  %v290_v39 = vld [vmem:[#allocation5 + $0x4c0] sm:$0xff]  ;;  %v323_v14 = vld [vmem:[#allocation5 + $0x5c8] sm:$0xff]  ;;  %v4800_v15 = vcombine.high %v315_v5, %v319_v7 }
  0x8a   :  { %v327_v17 = vld [vmem:[#allocation5 + $0x5e8] sm:$0xff] }
  0x8b   :  { %v331_v22 = vld [vmem:[#allocation5 + $0x608] sm:$0xff]  ;;  %v4808_v23 = vcombine.high %v323_v14, %v327_v17  ;;  %v4807_v27 = vcombine.low %v323_v14, %v327_v17  ;;  %v386_v17 = vld [vmem:[#allocation5 + $0x7c0] sm:$0xff] }
  0x8c   :  { %3275 = vmatpush1.bf16.msra.mxu0 %v4709_v45  ;;  %3439 = vmatpush1.bf16.msra.mxu1 %v4711_v46  ;;  %v4765_v45 = vcombine.low %v282_v31, %v286_v32  ;;  %v4767_v46 = vcombine.low %v283_v33, %v287_v35  ;;  %v335_v24 = vld [vmem:[#allocation5 + $0x628] sm:$0xff] }
  0x8d   :  { %3276 = vmatprep.subr.bf16.mxu0 %v4718_v47  ;;  %3440 = vmatprep.subr.bf16.mxu1 %v4720_v48  ;;  %v4774_v47 = vcombine.high %v290_v39, %v294_v40  ;;  %v298_v48 = vld [vmem:[#allocation5 + $0x500] sm:$0xff]  ;;  %v339_v31 = vld [vmem:[#allocation5 + $0x648] sm:$0xff]  ;;  %v4816_v32 = vcombine.high %v331_v22, %v335_v24  ;;  %v4815_v35 = vcombine.low %v331_v22, %v335_v24 }
  0x8e   :  { %v343_v33 = vld [vmem:[#allocation5 + $0x668] sm:$0xff] }
  0x8f   :  { %v383_v14 = vld [vmem:[#allocation5 + $0x7a8] sm:$0xff] }
  0x90   :  { %3277 = vmatpush1.bf16.msra.mxu0 %v4717_v54  ;;  %3441 = vmatpush1.bf16.msra.mxu1 %v4719_v55  ;;  %v4773_v54 = vcombine.low %v290_v39, %v294_v40  ;;  %v4775_v55 = vcombine.low %v291_v41, %v295_v43  ;;  %v347_v39 = vld [vmem:[#allocation5 + $0x688] sm:$0xff]  ;;  %v4824_v40 = vcombine.high %v339_v31, %v343_v33 }
  0x91   :  { %3278 = vmatprep.subr.bf16.mxu0 %v4726_v56  ;;  %3442 = vmatprep.subr.bf16.mxu1 %v4728_v57  ;;  %v4782_v56 = vcombine.high %v298_v48, %v302_v49  ;;  %v306_v57 = vld [vmem:[#allocation5 + $0x540] sm:$0xff]  ;;  %v351_v41 = vld [vmem:[#allocation5 + $0x6a8] sm:$0xff]  ;;  %v4823_v43 = vcombine.low %v339_v31, %v343_v33 }
  0x92   :  { %v4789_v8 = vcombine.low %v306_v57, %v310_v58 }
  0x94   :  { %3279 = vmatpush1.bf16.msra.mxu0 %v4725_v0  ;;  %3443 = vmatpush1.bf16.msra.mxu1 %v4727_v1  ;;  %v4781_v0 = vcombine.low %v298_v48, %v302_v49  ;;  %v4783_v1 = vcombine.low %v299_v50, %v303_v52  ;;  %v355_v48 = vld [vmem:[#allocation5 + $0x6c8] sm:$0xff]  ;;  %v4832_v49 = vcombine.high %v347_v39, %v351_v41 }
  0x95   :  { %3280 = vmatprep.subr.bf16.mxu0 %v4734_v2  ;;  %3444 = vmatprep.subr.bf16.mxu1 %v4736_v3  ;;  %v4790_v2 = vcombine.high %v306_v57, %v310_v58  ;;  %v314_v3 = vld [vmem:[#allocation5 + $0x580] sm:$0xff]  ;;  %v359_v50 = vld [vmem:[#allocation5 + $0x6e8] sm:$0xff]  ;;  %v4831_v52 = vcombine.low %v347_v39, %v351_v41 }
  0x96   :  { %v4797_v18 = vcombine.low %v314_v3, %v318_v4  ;;  %v363_v57 = vld [vmem:[#allocation5 + $0x708] sm:$0xff]  ;;  %v4840_v58 = vcombine.high %v355_v48, %v359_v50 }
  0x97   :  { %v403_v39 = vld [vmem:[#allocation5 + $0x848] sm:$0xff] }
  0x98   :  { %3281 = vmatpush1.bf16.msra.mxu0 %v4733_v10  ;;  %3445 = vmatpush1.bf16.msra.mxu1 %v4735_v11  ;;  %v4791_v10 = vcombine.low %v307_v60, %v311_v62  ;;  %v4798_v11 = vcombine.high %v314_v3, %v318_v4  ;;  %v367_v60 = vld [vmem:[#allocation5 + $0x728] sm:$0xff]  ;;  %v4839_v62 = vcombine.low %v355_v48, %v359_v50  ;;  %v414_v50 = vld [vmem:[#allocation5 + $0x8a0] sm:$0xff] }
  0x99   :  { %3282 = vmatprep.subr.bf16.mxu0 %v4742_v12  ;;  %3446 = vmatprep.subr.bf16.mxu1 %v4744_v13  ;;  %v322_v12 = vld [vmem:[#allocation5 + $0x5c0] sm:$0xff]  ;;  %v371_v3 = vld [vmem:[#allocation5 + $0x748] sm:$0xff]  ;;  %v4848_v4 = vcombine.high %v363_v57, %v367_v60 }
  0x9a   :  { %v326_v13 = vld [vmem:[#allocation5 + $0x5e0] sm:$0xff]  ;;  %v407_v41 = vld [vmem:[#allocation5 + $0x868] sm:$0xff] }
  0x9b   :  { %v4805_v26 = vcombine.low %v322_v12, %v326_v13  ;;  %v4888_v48 = vcombine.high %v403_v39, %v407_v41 }
  0x9c   :  { %3283 = vmatpush1.bf16.msra.mxu0 %v4741_v19  ;;  %3447 = vmatpush1.bf16.msra.mxu1 %v4743_v59  ;;  %v4799_v19 = vcombine.low %v315_v5, %v319_v7  ;;  %v4806_v59 = vcombine.high %v322_v12, %v326_v13  ;;  %v375_v5 = vld [vmem:[#allocation5 + $0x768] sm:$0xff]  ;;  %v4847_v7 = vcombine.low %v363_v57, %v367_v60  ;;  %v422_v60 = vld [vmem:[#allocation5 + $0x8e0] sm:$0xff] }
  0x9d   :  { %3293 = vmatprep.subr.bf16.mxu0 %v4750_v20  ;;  %3457 = vmatprep.subr.bf16.mxu1 %v4752_v21  ;;  %v330_v20 = vld [vmem:[#allocation5 + $0x600] sm:$0xff]  ;;  %v379_v12 = vld [vmem:[#allocation5 + $0x788] sm:$0xff]  ;;  %v4856_v13 = vcombine.high %v371_v3, %v375_v5 }
  0x9e   :  { %v334_v21 = vld [vmem:[#allocation5 + $0x620] sm:$0xff]  ;;  %v4864_v22 = vcombine.high %v379_v12, %v383_v14 }
  0x9f   :  { %3285 = vmatmul.mubr.bf16.vlgmr.msra.gmra.mrb[0].mxu0 %v5686_v25  ;;  %3449 = vmatmul.mubr.bf16.vlgmr.msra.gmra.mrb[0].mxu1 %v5686_v25 }
  0xa0   :  { %3294 = vmatpush1.bf16.msra.mxu0 %v4749_v28  ;;  %3458 = vmatpush1.bf16.msra.mxu1 %v4751_v29  ;;  %v4814_v28 = vcombine.high %v330_v20, %v334_v21  ;;  %v338_v29 = vld [vmem:[#allocation5 + $0x640] sm:$0xff] }
  0xa1   :  { %3295 = vmatprep.subr.bf16.mxu0 %v4758_v30  ;;  %3459 = vmatprep.subr.bf16.mxu1 %v4760_v34  ;;  %v342_v30 = vld [vmem:[#allocation5 + $0x660] sm:$0xff]  ;;  %v4813_v34 = vcombine.low %v330_v20, %v334_v21  ;;  %v387_v20 = vld [vmem:[#allocation5 + $0x7c8] sm:$0xff] }
  0xa2   :  { %3325 = vmatprep.mubr.bf16.mxu0 %v5688_v36  ;;  %3489 = vmatprep.mubr.bf16.mxu1 %v5688_v36  ;;  %v391_v21 = vld [vmem:[#allocation5 + $0x7e8] sm:$0xff] }
  0xa3   :  { %v4872_v31 = vcombine.high %v387_v20, %v391_v21 }
  0xa4   :  { %3296 = vmatpush1.bf16.msra.mxu0 %v4757_v63  ;;  %3460 = vmatpush1.bf16.msra.mxu1 %v4759_v37  ;;  %v4822_v63 = vcombine.high %v338_v29, %v342_v30  ;;  %v346_v37 = vld [vmem:[#allocation5 + $0x680] sm:$0xff] }
  0xa5   :  { %3297 = vmatprep.subr.bf16.mxu0 %v4766_v38  ;;  %3461 = vmatprep.subr.bf16.mxu1 %v4768_v42  ;;  %v350_v38 = vld [vmem:[#allocation5 + $0x6a0] sm:$0xff]  ;;  %v4821_v42 = vcombine.low %v338_v29, %v342_v30  ;;  %v395_v30 = vld [vmem:[#allocation5 + $0x808] sm:$0xff] }
  0xa6   :  { %v398_v29 = vld [vmem:[#allocation5 + $0x820] sm:$0xff] }
  0xa8   :  { %3298 = vmatpush1.bf16.msra.mxu0 %v4765_v45  ;;  %3462 = vmatpush1.bf16.msra.mxu1 %v4767_v46  ;;  %v4830_v45 = vcombine.high %v346_v37, %v350_v38  ;;  %v354_v46 = vld [vmem:[#allocation5 + $0x6c0] sm:$0xff] }
  0xa9   :  { %3299 = vmatprep.subr.bf16.mxu0 %v4774_v47  ;;  %3463 = vmatprep.subr.bf16.mxu1 %v4776_v51  ;;  %v358_v47 = vld [vmem:[#allocation5 + $0x6e0] sm:$0xff]  ;;  %v4829_v51 = vcombine.low %v346_v37, %v350_v38 }
  0xaa   :  { %v402_v37 = vld [vmem:[#allocation5 + $0x840] sm:$0xff] }
  0xab   :  { %v406_v38 = vld [vmem:[#allocation5 + $0x860] sm:$0xff] }
  0xac   :  { %3300 = vmatpush1.bf16.msra.mxu0 %v4773_v54  ;;  %3464 = vmatpush1.bf16.msra.mxu1 %v4775_v55  ;;  %v4838_v54 = vcombine.high %v354_v46, %v358_v47  ;;  %v362_v55 = vld [vmem:[#allocation5 + $0x700] sm:$0xff] }
  0xad   :  { %3301 = vmatprep.subr.bf16.mxu0 %v4782_v56  ;;  %3465 = vmatprep.subr.bf16.mxu1 %v4784_v61  ;;  %v366_v56 = vld [vmem:[#allocation5 + $0x720] sm:$0xff]  ;;  %v4837_v61 = vcombine.low %v354_v46, %v358_v47  ;;  %v4886_v47 = vcombine.high %v402_v37, %v406_v38 }
  0xb0   :  { %3302 = vmatpush1.bf16.msra.mxu0 %v4781_v0  ;;  %3466 = vmatpush1.bf16.msra.mxu1 %v4783_v1  ;;  %v4846_v0 = vcombine.high %v362_v55, %v366_v56  ;;  %v370_v1 = vld [vmem:[#allocation5 + $0x740] sm:$0xff] }
  0xb1   :  { %3303 = vmatprep.subr.bf16.mxu0 %v4790_v2  ;;  %3467 = vmatprep.subr.bf16.mxu1 %v4792_v6  ;;  %v374_v2 = vld [vmem:[#allocation5 + $0x760] sm:$0xff]  ;;  %v4845_v6 = vcombine.low %v362_v55, %v366_v56  ;;  %v4887_v55 = vcombine.low %v403_v39, %v407_v41 }
  0xb2   :  { %v462_v41 = vld [vmem:[#allocation5 + $0xa20] sm:$0xff] }
  0xb4   :  { %3304 = vmatpush1.bf16.msra.mxu0 %v4789_v8  ;;  %3468 = vmatpush1.bf16.msra.mxu1 %v4791_v10  ;;  %v4854_v8 = vcombine.high %v370_v1, %v374_v2  ;;  %v378_v10 = vld [vmem:[#allocation5 + $0x780] sm:$0xff] }
  0xb5   :  { %3305 = vmatprep.subr.bf16.mxu0 %v4798_v11  ;;  %3469 = vmatprep.subr.bf16.mxu1 %v4800_v15  ;;  %v382_v11 = vld [vmem:[#allocation5 + $0x7a0] sm:$0xff]  ;;  %v4853_v15 = vcombine.low %v370_v1, %v374_v2 }
  0xb6   :  { %v4861_v24 = vcombine.low %v378_v10, %v382_v11 }
  0xb8   :  { %3306 = vmatpush1.bf16.msra.mxu0 %v4797_v18  ;;  %3470 = vmatpush1.bf16.msra.mxu1 %v4799_v19  ;;  %v4855_v18 = vcombine.low %v371_v3, %v375_v5  ;;  %v4862_v19 = vcombine.high %v378_v10, %v382_v11  ;;  %v430_v5 = vld [vmem:[#allocation5 + $0x920] sm:$0xff] }
  0xb9   :  { %3307 = vmatprep.subr.bf16.mxu0 %v4806_v59  ;;  %3471 = vmatprep.subr.bf16.mxu1 %v4808_v23  ;;  %v390_v59 = vld [vmem:[#allocation5 + $0x7e0] sm:$0xff]  ;;  %v5694_v23 = vld [vmem:[#allocation2 + $0x8] sm:$0xff] }
  0xba   :  { %v5698_v33 = vrot.slane %v5694_v23, %v5663_v53 }
  0xbc   :  { %3308 = vmatpush1.bf16.msra.mxu0 %v4805_v26  ;;  %3472 = vmatpush1.bf16.msra.mxu1 %v4807_v27  ;;  %v4863_v26 = vcombine.low %v379_v12, %v383_v14  ;;  %v4870_v27 = vcombine.high %v386_v17, %v390_v59  ;;  %v438_v14 = vld [vmem:[#allocation5 + $0x960] sm:$0xff] }
  0xbd   :  { %3309 = vmatprep.subr.bf16.mxu0 %v4814_v28  ;;  %3473 = vmatprep.subr.bf16.mxu1 %v4816_v32  ;;  %v394_v28 = vld [vmem:[#allocation5 + $0x800] sm:$0xff]  ;;  %v399_v32 = vld [vmem:[#allocation5 + $0x828] sm:$0xff] }
  0xbe   :  { %v4879_v46 = vcombine.low %v395_v30, %v399_v32 }
  0xc0   :  { %3310 = vmatpush1.bf16.msra.mxu0 %v4813_v34  ;;  %3474 = vmatpush1.bf16.msra.mxu1 %v4815_v35  ;;  %v4869_v34 = vcombine.low %v386_v17, %v390_v59  ;;  %v4871_v35 = vcombine.low %v387_v20, %v391_v21  ;;  %v439_v17 = vld [vmem:[#allocation5 + $0x968] sm:$0xff]  ;;  %v442_v21 = vld [vmem:[#allocation5 + $0x980] sm:$0xff] }
  0xc1   :  { %3311 = vmatprep.subr.bf16.mxu0 %v4822_v63  ;;  %3475 = vmatprep.subr.bf16.mxu1 %v4824_v40  ;;  %v4878_v63 = vcombine.high %v394_v28, %v398_v29  ;;  %v4880_v40 = vcombine.high %v395_v30, %v399_v32  ;;  %v454_v32 = vld [vmem:[#allocation5 + $0x9e0] sm:$0xff] }
  0xc4   :  { %3312 = vmatpush1.bf16.msra.mxu0 %v4821_v42  ;;  %3476 = vmatpush1.bf16.msra.mxu1 %v4823_v43  ;;  %v120_v42 = vcombine.high %v5698_v33, %v5698_v33  ;;  %v5704_v43 = vpack.c.bf16 %v5680_v16, %v5680_v16  ;;  %v4885_v16 = vcombine.low %v402_v37, %v406_v38 }
  0xc5   :  { %3313 = vmatprep.subr.bf16.mxu0 %v4830_v45  ;;  %3477 = vmatprep.subr.bf16.mxu1 %v4832_v49  ;;  %v4877_v45 = vcombine.low %v394_v28, %v398_v29  ;;  %v410_v49 = vld [vmem:[#allocation5 + $0x880] sm:$0xff] }
  0xc6   :  { %v4894_v56 = vcombine.high %v410_v49, %v414_v50 }
  0xc8   :  { %3314 = vmatpush1.bf16.msra.mxu0 %v4829_v51  ;;  %3478 = vmatpush1.bf16.msra.mxu1 %v4831_v52  ;;  %v5706_v51 = vpack.c.bf16 %v120_v42, %v120_v42  ;;  %v411_v52 = vld [vmem:[#allocation5 + $0x888] sm:$0xff] }
  0xc9   :  { %3315 = vmatprep.subr.bf16.mxu0 %v4838_v54  ;;  %3479 = vmatprep.subr.bf16.mxu1 %v4840_v58  ;;  %v415_v54 = vld [vmem:[#allocation5 + $0x8a8] sm:$0xff]  ;;  %v418_v58 = vld [vmem:[#allocation5 + $0x8c0] sm:$0xff] }
  0xca   :  { %v4896_v57 = vcombine.high %v411_v52, %v415_v54  ;;  %v4895_v1 = vcombine.low %v411_v52, %v415_v54  ;;  %v4902_v2 = vcombine.high %v418_v58, %v422_v60  ;;  %v459_v42 = vld [vmem:[#allocation5 + $0xa08] sm:$0xff]  ;;  %v470_v52 = vld [vmem:[#allocation5 + $0xa60] sm:$0xff] }
  0xcb   :  { %v467_v54 = vld [vmem:[#allocation5 + $0xa48] sm:$0xff] }
  0xcc   :  { %3316 = vmatpush1.bf16.msra.mxu0 %v4837_v61  ;;  %3480 = vmatpush1.bf16.msra.mxu1 %v4839_v62  ;;  %v419_v61 = vld [vmem:[#allocation5 + $0x8c8] sm:$0xff] }
  0xcd   :  { %3317 = vmatprep.subr.bf16.mxu0 %v4846_v0  ;;  %3481 = vmatprep.subr.bf16.mxu1 %v4848_v4  ;;  %v423_v62 = vld [vmem:[#allocation5 + $0x8e8] sm:$0xff]  ;;  %v4893_v0 = vcombine.low %v410_v49, %v414_v50  ;;  %v426_v4 = vld [vmem:[#allocation5 + $0x900] sm:$0xff] }
  0xce   :  { %v4904_v3 = vcombine.high %v419_v61, %v423_v62  ;;  %v4903_v10 = vcombine.low %v419_v61, %v423_v62  ;;  %v4910_v11 = vcombine.high %v426_v4, %v430_v5  ;;  %v466_v50 = vld [vmem:[#allocation5 + $0xa40] sm:$0xff]  ;;  %v475_v62 = vld [vmem:[#allocation5 + $0xa88] sm:$0xff] }
  0xcf   :  { %v478_v61 = vld [vmem:[#allocation5 + $0xaa0] sm:$0xff] }
  0xd0   :  { %3318 = vmatpush1.bf16.msra.mxu0 %v4845_v6  ;;  %3482 = vmatpush1.bf16.msra.mxu1 %v4847_v7  ;;  %v427_v6 = vld [vmem:[#allocation5 + $0x908] sm:$0xff] }
  0xd1   :  { %3319 = vmatprep.subr.bf16.mxu0 %v4854_v8  ;;  %3483 = vmatprep.subr.bf16.mxu1 %v4856_v13  ;;  %v431_v7 = vld [vmem:[#allocation5 + $0x928] sm:$0xff]  ;;  %v4901_v8 = vcombine.low %v418_v58, %v422_v60  ;;  %v434_v13 = vld [vmem:[#allocation5 + $0x940] sm:$0xff] }
  0xd2   :  { %v4912_v12 = vcombine.high %v427_v6, %v431_v7  ;;  %v4918_v59 = vcombine.high %v434_v13, %v438_v14  ;;  %v474_v60 = vld [vmem:[#allocation5 + $0xa80] sm:$0xff] }
  0xd4   :  { %3320 = vmatpush1.bf16.msra.mxu0 %v4853_v15  ;;  %3484 = vmatpush1.bf16.msra.mxu1 %v4855_v18  ;;  %v435_v15 = vld [vmem:[#allocation5 + $0x948] sm:$0xff]  ;;  %v4909_v18 = vcombine.low %v426_v4, %v430_v5  ;;  %v482_v5 = vld [vmem:[#allocation5 + $0xac0] sm:$0xff] }
  0xd5   :  { %3321 = vmatprep.subr.bf16.mxu0 %v4862_v19  ;;  %3485 = vmatprep.subr.bf16.mxu1 %v4864_v22  ;;  %v4911_v19 = vcombine.low %v427_v6, %v431_v7  ;;  %v4920_v20 = vcombine.high %v435_v15, %v439_v17  ;;  %v446_v22 = vld [vmem:[#allocation5 + $0x9a0] sm:$0xff]  ;;  %v4919_v28 = vcombine.low %v435_v15, %v439_v17  ;;  %v483_v7 = vld [vmem:[#allocation5 + $0xac8] sm:$0xff] }
  0xd6   :  { %v4926_v29 = vcombine.high %v442_v21, %v446_v22  ;;  %v486_v6 = vld [vmem:[#allocation5 + $0xae0] sm:$0xff]  ;;  %v491_v17 = vld [vmem:[#allocation5 + $0xb08] sm:$0xff] }
  0xd7   :  { %v494_v15 = vld [vmem:[#allocation5 + $0xb20] sm:$0xff] }
  0xd8   :  { %3322 = vmatpush1.bf16.msra.mxu0 %v4861_v24  ;;  %3486 = vmatpush1.bf16.msra.mxu1 %v4863_v26  ;;  %v443_v24 = vld [vmem:[#allocation5 + $0x988] sm:$0xff] }
  0xd9   :  { %3323 = vmatprep.subr.bf16.mxu0 %v4870_v27  ;;  %3487 = vmatprep.subr.bf16.mxu1 %v4872_v31  ;;  %v447_v26 = vld [vmem:[#allocation5 + $0x9a8] sm:$0xff]  ;;  %v4917_v27 = vcombine.low %v434_v13, %v438_v14  ;;  %v450_v31 = vld [vmem:[#allocation5 + $0x9c0] sm:$0xff] }
  0xda   :  { %v4928_v30 = vcombine.high %v443_v24, %v447_v26  ;;  %v4927_v37 = vcombine.low %v443_v24, %v447_v26  ;;  %v4934_v38 = vcombine.high %v450_v31, %v454_v32  ;;  %v490_v14 = vld [vmem:[#allocation5 + $0xb00] sm:$0xff]  ;;  %v499_v26 = vld [vmem:[#allocation5 + $0xb48] sm:$0xff] }
  0xdb   :  { %v502_v24 = vld [vmem:[#allocation5 + $0xb60] sm:$0xff] }
  0xdc   :  { %3324 = vmatpush1.bf16.msra.mxu0 %v4869_v34  ;;  %3488 = vmatpush1.bf16.msra.mxu1 %v4871_v35  ;;  %v451_v34 = vld [vmem:[#allocation5 + $0x9c8] sm:$0xff] }
  0xdd   :  { %3334 = vmatprep.subr.bf16.mxu0 %v4878_v63  ;;  %3498 = vmatprep.subr.bf16.mxu1 %v4880_v40  ;;  %v455_v35 = vld [vmem:[#allocation5 + $0x9e8] sm:$0xff]  ;;  %v4925_v63 = vcombine.low %v442_v21, %v446_v22  ;;  %v458_v40 = vld [vmem:[#allocation5 + $0xa00] sm:$0xff] }
  0xde   :  { %v4936_v39 = vcombine.high %v451_v34, %v455_v35  ;;  %v498_v22 = vld [vmem:[#allocation5 + $0xb40] sm:$0xff] }
  0xdf   :  { %3326 = vmatmul.mubr.bf16.vlgmr.msra.gmra.mrb[0].mxu0 %v5704_v43  ;;  %3490 = vmatmul.mubr.bf16.vlgmr.msra.gmra.mrb[0].mxu1 %v5704_v43 }
  0xe0   :  { %3335 = vmatpush1.bf16.msra.mxu0 %v4877_v45  ;;  %3499 = vmatpush1.bf16.msra.mxu1 %v4879_v46  ;;  %v463_v45 = vld [vmem:[#allocation5 + $0xa28] sm:$0xff]  ;;  %v4933_v46 = vcombine.low %v450_v31, %v454_v32  ;;  %v506_v32 = vld [vmem:[#allocation5 + $0xb80] sm:$0xff] }
  0xe1   :  { %3336 = vmatprep.subr.bf16.mxu0 %v4886_v47  ;;  %3500 = vmatprep.subr.bf16.mxu1 %v4888_v48  ;;  %v4935_v47 = vcombine.low %v451_v34, %v455_v35  ;;  %v4942_v48 = vcombine.high %v458_v40, %v462_v41  ;;  %v4944_v49 = vcombine.high %v459_v42, %v463_v45  ;;  %v510_v34 = vld [vmem:[#allocation5 + $0xba0] sm:$0xff]  ;;  %v507_v35 = vld [vmem:[#allocation5 + $0xb88] sm:$0xff] }
  0xe2   :  { %3366 = vmatprep.mubr.bf16.mxu0 %v5706_v51  ;;  %3530 = vmatprep.mubr.bf16.mxu1 %v5706_v51 }
  0xe4   :  { %3337 = vmatpush1.bf16.msra.mxu0 %v4885_v16  ;;  %3501 = vmatpush1.bf16.msra.mxu1 %v4887_v55  ;;  %v471_v16 = vld [vmem:[#allocation5 + $0xa68] sm:$0xff]  ;;  %v4941_v55 = vcombine.low %v458_v40, %v462_v41  ;;  %v514_v41 = vld [vmem:[#allocation5 + $0xbc0] sm:$0xff] }
  0xe5   :  { %3338 = vmatprep.subr.bf16.mxu0 %v4894_v56  ;;  %3502 = vmatprep.subr.bf16.mxu1 %v4896_v57  ;;  %v4943_v56 = vcombine.low %v459_v42, %v463_v45  ;;  %v4950_v57 = vcombine.high %v466_v50, %v470_v52  ;;  %v4952_v58 = vcombine.high %v467_v54, %v471_v16  ;;  %v518_v42 = vld [vmem:[#allocation5 + $0xbe0] sm:$0xff] }
  0xe6   :  { %v105_v45 = vcombine.high %v5694_v23, %v5694_v23 }
  0xe8   :  { %3339 = vmatpush1.bf16.msra.mxu0 %v4893_v0  ;;  %3503 = vmatpush1.bf16.msra.mxu1 %v4895_v1  ;;  %v479_v0 = vld [vmem:[#allocation5 + $0xaa8] sm:$0xff]  ;;  %v4949_v1 = vcombine.low %v466_v50, %v470_v52  ;;  %v4998_v50 = vcombine.high %v514_v41, %v518_v42 }
  0xe9   :  { %3340 = vmatprep.subr.bf16.mxu0 %v4902_v2  ;;  %3504 = vmatprep.subr.bf16.mxu1 %v4904_v3  ;;  %v4951_v2 = vcombine.low %v467_v54, %v471_v16  ;;  %v4958_v3 = vcombine.high %v474_v60, %v478_v61  ;;  %v4960_v4 = vcombine.high %v475_v62, %v479_v0  ;;  %v522_v54 = vld [vmem:[#allocation5 + $0xc00] sm:$0xff] }
  0xea   :  { %v526_v16 = vld [vmem:[#allocation5 + $0xc20] sm:$0xff] }
  0xec   :  { %3341 = vmatpush1.bf16.msra.mxu0 %v4901_v8  ;;  %3505 = vmatpush1.bf16.msra.mxu1 %v4903_v10  ;;  %v487_v8 = vld [vmem:[#allocation5 + $0xae8] sm:$0xff]  ;;  %v4957_v10 = vcombine.low %v474_v60, %v478_v61  ;;  %v5006_v60 = vcombine.high %v522_v54, %v526_v16 }
  0xed   :  { %3342 = vmatprep.subr.bf16.mxu0 %v4910_v11  ;;  %3506 = vmatprep.subr.bf16.mxu1 %v4912_v12  ;;  %v4959_v11 = vcombine.low %v475_v62, %v479_v0  ;;  %v4966_v12 = vcombine.high %v482_v5, %v486_v6  ;;  %v4968_v13 = vcombine.high %v483_v7, %v487_v8  ;;  %v530_v62 = vld [vmem:[#allocation5 + $0xc40] sm:$0xff] }
  0xee   :  { %v534_v0 = vld [vmem:[#allocation5 + $0xc60] sm:$0xff] }
  0xf0   :  { %3343 = vmatpush1.bf16.msra.mxu0 %v4909_v18  ;;  %3507 = vmatpush1.bf16.msra.mxu1 %v4911_v19  ;;  %v495_v18 = vld [vmem:[#allocation5 + $0xb28] sm:$0xff]  ;;  %v4965_v19 = vcombine.low %v482_v5, %v486_v6  ;;  %v5014_v6 = vcombine.high %v530_v62, %v534_v0 }
  0xf1   :  { %3344 = vmatprep.subr.bf16.mxu0 %v4918_v59  ;;  %3508 = vmatprep.subr.bf16.mxu1 %v4920_v20  ;;  %v4967_v59 = vcombine.low %v483_v7, %v487_v8  ;;  %v4974_v20 = vcombine.high %v490_v14, %v494_v15  ;;  %v4976_v21 = vcombine.high %v491_v17, %v495_v18  ;;  %v538_v8 = vld [vmem:[#allocation5 + $0xc80] sm:$0xff] }
  0xf4   :  { %3345 = vmatpush1.bf16.msra.mxu0 %v4917_v27  ;;  %3509 = vmatpush1.bf16.msra.mxu1 %v4919_v28  ;;  %v503_v27 = vld [vmem:[#allocation5 + $0xb68] sm:$0xff]  ;;  %v4973_v28 = vcombine.low %v490_v14, %v494_v15 }
  0xf5   :  { %3346 = vmatprep.subr.bf16.mxu0 %v4926_v29  ;;  %3510 = vmatprep.subr.bf16.mxu1 %v4928_v30  ;;  %v4975_v29 = vcombine.low %v491_v17, %v495_v18  ;;  %v4982_v30 = vcombine.high %v498_v22, %v502_v24  ;;  %v4984_v31 = vcombine.high %v499_v26, %v503_v27  ;;  %v546_v18 = vld [vmem:[#allocation5 + $0xcc0] sm:$0xff] }
  0xf8   :  { %3347 = vmatpush1.bf16.msra.mxu0 %v4925_v63  ;;  %3511 = vmatpush1.bf16.msra.mxu1 %v4927_v37  ;;  %v511_v63 = vld [vmem:[#allocation5 + $0xba8] sm:$0xff]  ;;  %v4981_v37 = vcombine.low %v498_v22, %v502_v24 }
  0xf9   :  { %3348 = vmatprep.subr.bf16.mxu0 %v4934_v38  ;;  %3512 = vmatprep.subr.bf16.mxu1 %v4936_v39  ;;  %v4983_v38 = vcombine.low %v499_v26, %v503_v27  ;;  %v4990_v39 = vcombine.high %v506_v32, %v510_v34  ;;  %v4992_v40 = vcombine.high %v507_v35, %v511_v63  ;;  %v554_v27 = vld [vmem:[#allocation5 + $0xd00] sm:$0xff] }
  0xfc   :  { %3349 = vmatpush1.bf16.msra.mxu0 %v4933_v46  ;;  %3513 = vmatpush1.bf16.msra.mxu1 %v4935_v47  ;;  %v515_v46 = vld [vmem:[#allocation5 + $0xbc8] sm:$0xff] }
  0xfd   :  { %3350 = vmatprep.subr.bf16.mxu0 %v4942_v48  ;;  %3514 = vmatprep.subr.bf16.mxu1 %v4944_v49  ;;  %v519_v47 = vld [vmem:[#allocation5 + $0xbe8] sm:$0xff]  ;;  %v4989_v48 = vcombine.low %v506_v32, %v510_v34  ;;  %v4991_v49 = vcombine.low %v507_v35, %v511_v63  ;;  %v562_v63 = vld [vmem:[#allocation5 + $0xd40] sm:$0xff] }
  0xfe   :  { %v5000_v52 = vcombine.high %v515_v46, %v519_v47  ;;  %v4999_v23 = vcombine.low %v515_v46, %v519_v47  ;;  %v570_v46 = vld [vmem:[#allocation5 + $0xd80] sm:$0xff] }
  0xff   :  { %v574_v47 = vld [vmem:[#allocation5 + $0xda0] sm:$0xff] }
 0x100   :  { %3351 = vmatpush1.bf16.msra.mxu0 %v4941_v55  ;;  %3515 = vmatpush1.bf16.msra.mxu1 %v4943_v56  ;;  %v5715_v55 = vrot.slane %v105_v45, %v5663_v53  ;;  %v523_v56 = vld [vmem:[#allocation5 + $0xc08] sm:$0xff] }
 0x101   :  { %3352 = vmatprep.subr.bf16.mxu0 %v4950_v57  ;;  %3516 = vmatprep.subr.bf16.mxu1 %v4952_v58  ;;  %v527_v57 = vld [vmem:[#allocation5 + $0xc28] sm:$0xff]  ;;  %v4997_v58 = vcombine.low %v514_v41, %v518_v42 }
 0x102   :  { %v5008_v61 = vcombine.high %v523_v56, %v527_v57  ;;  %v531_v53 = vld [vmem:[#allocation5 + $0xc48] sm:$0xff]  ;;  %v5007_v5 = vcombine.low %v523_v56, %v527_v57  ;;  %v578_v56 = vld [vmem:[#allocation5 + $0xdc0] sm:$0xff] }
 0x103   :  { %v582_v57 = vld [vmem:[#allocation5 + $0xde0] sm:$0xff] }
 0x104   :  { %3353 = vmatpush1.bf16.msra.mxu0 %v4949_v1  ;;  %3517 = vmatpush1.bf16.msra.mxu1 %v4951_v2  ;;  %v121_v1 = vcombine.high %v5715_v55, %v5715_v55  ;;  %v5721_v2 = vpack.c.bf16 %v5698_v33, %v5698_v33  ;;  %v5013_v33 = vcombine.low %v530_v62, %v534_v0 }
 0x105   :  { %3354 = vmatprep.subr.bf16.mxu0 %v4958_v3  ;;  %3518 = vmatprep.subr.bf16.mxu1 %v4960_v4  ;;  %v535_v3 = vld [vmem:[#allocation5 + $0xc68] sm:$0xff]  ;;  %v5005_v4 = vcombine.low %v522_v54, %v526_v16  ;;  %v5054_v54 = vcombine.high %v570_v46, %v574_v47  ;;  %v5062_v62 = vcombine.high %v578_v56, %v582_v57 }
 0x106   :  { %v5016_v7 = vcombine.high %v531_v53, %v535_v3  ;;  %v5015_v14 = vcombine.low %v531_v53, %v535_v3  ;;  %v590_v53 = vld [vmem:[#allocation5 + $0xe20] sm:$0xff]  ;;  %v587_v3 = vld [vmem:[#allocation5 + $0xe08] sm:$0xff] }
 0x108   :  { %3355 = vmatpush1.bf16.msra.mxu0 %v4957_v10  ;;  %3519 = vmatpush1.bf16.msra.mxu1 %v4959_v11  ;;  %v542_v10 = vld [vmem:[#allocation5 + $0xca0] sm:$0xff]  ;;  %v5723_v11 = vpack.c.bf16 %v121_v1, %v121_v1 }
 0x109   :  { %3356 = vmatprep.subr.bf16.mxu0 %v4966_v12  ;;  %3520 = vmatprep.subr.bf16.mxu1 %v4968_v13  ;;  %v539_v12 = vld [vmem:[#allocation5 + $0xc88] sm:$0xff]  ;;  %v5022_v15 = vcombine.high %v538_v8, %v542_v10  ;;  %v586_v1 = vld [vmem:[#allocation5 + $0xe00] sm:$0xff] }
 0x10a   :  { %v543_v13 = vld [vmem:[#allocation5 + $0xca8] sm:$0xff] }
 0x10b   :  { %v5024_v17 = vcombine.high %v539_v12, %v543_v13  ;;  %v5023_v22 = vcombine.low %v539_v12, %v543_v13  ;;  %v598_v12 = vld [vmem:[#allocation5 + $0xe60] sm:$0xff]  ;;  %v595_v13 = vld [vmem:[#allocation5 + $0xe48] sm:$0xff] }
 0x10c   :  { %3357 = vmatpush1.bf16.msra.mxu0 %v4965_v19  ;;  %3521 = vmatpush1.bf16.msra.mxu1 %v4967_v59  ;;  %v550_v19 = vld [vmem:[#allocation5 + $0xce0] sm:$0xff]  ;;  %v547_v59 = vld [vmem:[#allocation5 + $0xcc8] sm:$0xff] }
 0x10d   :  { %3358 = vmatprep.subr.bf16.mxu0 %v4974_v20  ;;  %3522 = vmatprep.subr.bf16.mxu1 %v4976_v21  ;;  %v551_v20 = vld [vmem:[#allocation5 + $0xce8] sm:$0xff]  ;;  %v5021_v21 = vcombine.low %v538_v8, %v542_v10  ;;  %v5030_v24 = vcombine.high %v546_v18, %v550_v19  ;;  %v594_v10 = vld [vmem:[#allocation5 + $0xe40] sm:$0xff] }
 0x10e   :  { %v5032_v26 = vcombine.high %v547_v59, %v551_v20  ;;  %v5031_v32 = vcombine.low %v547_v59, %v551_v20  ;;  %v606_v59 = vld [vmem:[#allocation5 + $0xea0] sm:$0xff]  ;;  %v603_v20 = vld [vmem:[#allocation5 + $0xe88] sm:$0xff] }
 0x110   :  { %3359 = vmatpush1.bf16.msra.mxu0 %v4973_v28  ;;  %3523 = vmatpush1.bf16.msra.mxu1 %v4975_v29  ;;  %v558_v28 = vld [vmem:[#allocation5 + $0xd20] sm:$0xff]  ;;  %v555_v29 = vld [vmem:[#allocation5 + $0xd08] sm:$0xff] }
 0x111   :  { %3360 = vmatprep.subr.bf16.mxu0 %v4982_v30  ;;  %3524 = vmatprep.subr.bf16.mxu1 %v4984_v31  ;;  %v559_v30 = vld [vmem:[#allocation5 + $0xd28] sm:$0xff]  ;;  %v5029_v31 = vcombine.low %v546_v18, %v550_v19  ;;  %v5038_v34 = vcombine.high %v554_v27, %v558_v28  ;;  %v602_v19 = vld [vmem:[#allocation5 + $0xe80] sm:$0xff] }
 0x112   :  { %v5040_v35 = vcombine.high %v555_v29, %v559_v30  ;;  %v5039_v41 = vcombine.low %v555_v29, %v559_v30  ;;  %v614_v29 = vld [vmem:[#allocation5 + $0xee0] sm:$0xff]  ;;  %v611_v30 = vld [vmem:[#allocation5 + $0xec8] sm:$0xff] }
 0x114   :  { %3361 = vmatpush1.bf16.msra.mxu0 %v4981_v37  ;;  %3525 = vmatpush1.bf16.msra.mxu1 %v4983_v38  ;;  %v566_v37 = vld [vmem:[#allocation5 + $0xd60] sm:$0xff]  ;;  %v563_v38 = vld [vmem:[#allocation5 + $0xd48] sm:$0xff] }
 0x115   :  { %3362 = vmatprep.subr.bf16.mxu0 %v4990_v39  ;;  %3526 = vmatprep.subr.bf16.mxu1 %v4992_v40  ;;  %v567_v39 = vld [vmem:[#allocation5 + $0xd68] sm:$0xff]  ;;  %v5037_v40 = vcombine.low %v554_v27, %v558_v28  ;;  %v5046_v42 = vcombine.high %v562_v63, %v566_v37  ;;  %v610_v28 = vld [vmem:[#allocation5 + $0xec0] sm:$0xff] }
 0x116   :  { %v5048_v45 = vcombine.high %v563_v38, %v567_v39 }
 0x118   :  { %3363 = vmatpush1.bf16.msra.mxu0 %v4989_v48  ;;  %3527 = vmatpush1.bf16.msra.mxu1 %v4991_v49  ;;  %v571_v48 = vld [vmem:[#allocation5 + $0xd88] sm:$0xff] }
 0x119   :  { %3364 = vmatprep.subr.bf16.mxu0 %v4998_v50  ;;  %3528 = vmatprep.subr.bf16.mxu1 %v5000_v52  ;;  %v575_v49 = vld [vmem:[#allocation5 + $0xda8] sm:$0xff]  ;;  %v5045_v50 = vcombine.low %v562_v63, %v566_v37  ;;  %v5047_v52 = vcombine.low %v563_v38, %v567_v39  ;;  %v618_v37 = vld [vmem:[#allocation5 + $0xf00] sm:$0xff] }
 0x11a   :  { %v5056_v16 = vcombine.high %v571_v48, %v575_v49  ;;  %v622_v38 = vld [vmem:[#allocation5 + $0xf20] sm:$0xff]  ;;  %v619_v39 = vld [vmem:[#allocation5 + $0xf08] sm:$0xff] }
 0x11c   :  { %3365 = vmatpush1.bf16.msra.mxu0 %v4997_v58  ;;  %3529 = vmatpush1.bf16.msra.mxu1 %v4999_v23  ;;  %v579_v58 = vld [vmem:[#allocation5 + $0xdc8] sm:$0xff] }
 0x11d   :  { %3375 = vmatprep.subr.bf16.mxu0 %v5006_v60  ;;  %3539 = vmatprep.subr.bf16.mxu1 %v5008_v61  ;;  %v583_v23 = vld [vmem:[#allocation5 + $0xde8] sm:$0xff]  ;;  %v5053_v60 = vcombine.low %v570_v46, %v574_v47  ;;  %v5055_v61 = vcombine.low %v571_v48, %v575_v49  ;;  %v626_v47 = vld [vmem:[#allocation5 + $0xf40] sm:$0xff] }
 0x11e   :  { %v5064_v0 = vcombine.high %v579_v58, %v583_v23  ;;  %v630_v48 = vld [vmem:[#allocation5 + $0xf60] sm:$0xff]  ;;  %v627_v49 = vld [vmem:[#allocation5 + $0xf48] sm:$0xff] }
 0x11f   :  { %3367 = vmatmul.mubr.bf16.vlgmr.msra.gmra.mrb[0].mxu0 %v5721_v2  ;;  %3531 = vmatmul.mubr.bf16.vlgmr.msra.gmra.mrb[0].mxu1 %v5721_v2 }
 0x120   :  { %3376 = vmatpush1.bf16.msra.mxu0 %v5005_v4  ;;  %3540 = vmatpush1.bf16.msra.mxu1 %v5007_v5  ;;  %v591_v4 = vld [vmem:[#allocation5 + $0xe28] sm:$0xff]  ;;  %v5061_v5 = vcombine.low %v578_v56, %v582_v57  ;;  %v634_v57 = vld [vmem:[#allocation5 + $0xf80] sm:$0xff] }
 0x121   :  { %3377 = vmatprep.subr.bf16.mxu0 %v5014_v6  ;;  %3541 = vmatprep.subr.bf16.mxu1 %v5016_v7  ;;  %v5063_v6 = vcombine.low %v579_v58, %v583_v23  ;;  %v5070_v7 = vcombine.high %v586_v1, %v590_v53  ;;  %v5072_v8 = vcombine.high %v587_v3, %v591_v4  ;;  %v638_v58 = vld [vmem:[#allocation5 + $0xfa0] sm:$0xff]  ;;  %v635_v23 = vld [vmem:[#allocation5 + $0xf88] sm:$0xff] }
 0x122   :  { %3407 = vmatprep.mubr.bf16.mxu0 %v5723_v11  ;;  %3571 = vmatprep.mubr.bf16.mxu1 %v5723_v11 }
 0x124   :  { %3378 = vmatpush1.bf16.msra.mxu0 %v5013_v33  ;;  %3542 = vmatpush1.bf16.msra.mxu1 %v5015_v14  ;;  %v599_v33 = vld [vmem:[#allocation5 + $0xe68] sm:$0xff]  ;;  %v5069_v14 = vcombine.low %v586_v1, %v590_v53  ;;  %v642_v53 = vld [vmem:[#allocation5 + $0xfc0] sm:$0xff] }
 0x125   :  { %3379 = vmatprep.subr.bf16.mxu0 %v5022_v15  ;;  %3543 = vmatprep.subr.bf16.mxu1 %v5024_v17  ;;  %v5071_v15 = vcombine.low %v587_v3, %v591_v4  ;;  %v5078_v17 = vcombine.high %v594_v10, %v598_v12  ;;  %v5080_v18 = vcombine.high %v595_v13, %v599_v33  ;;  %v646_v3 = vld [vmem:[#allocation5 + $0xfe0] sm:$0xff]  ;;  %v643_v4 = vld [vmem:[#allocation5 + $0xfc8] sm:$0xff] }
 0x128   :  { %3380 = vmatpush1.bf16.msra.mxu0 %v5021_v21  ;;  %3544 = vmatpush1.bf16.msra.mxu1 %v5023_v22  ;;  %v607_v21 = vld [vmem:[#allocation5 + $0xea8] sm:$0xff]  ;;  %v5077_v22 = vcombine.low %v594_v10, %v598_v12  ;;  %v140_v12 = vld [vmem:[#allocation5 + $0x10] sm:$0xff] }
 0x129   :  { %3381 = vmatprep.subr.bf16.mxu0 %v5030_v24  ;;  %3545 = vmatprep.subr.bf16.mxu1 %v5032_v26  ;;  %v5079_v24 = vcombine.low %v595_v13, %v599_v33  ;;  %v5086_v26 = vcombine.high %v602_v19, %v606_v59  ;;  %v5088_v27 = vcombine.high %v603_v20, %v607_v21  ;;  %v144_v13 = vld [vmem:[#allocation5 + $0x30] sm:$0xff]  ;;  %v141_v33 = vld [vmem:[#allocation5 + $0x18] sm:$0xff] }
 0x12c   :  { %3382 = vmatpush1.bf16.msra.mxu0 %v5029_v31  ;;  %3546 = vmatpush1.bf16.msra.mxu1 %v5031_v32  ;;  %v615_v31 = vld [vmem:[#allocation5 + $0xee8] sm:$0xff]  ;;  %v5085_v32 = vcombine.low %v602_v19, %v606_v59  ;;  %v148_v59 = vld [vmem:[#allocation5 + $0x50] sm:$0xff] }
 0x12d   :  { %3383 = vmatprep.subr.bf16.mxu0 %v5038_v34  ;;  %3547 = vmatprep.subr.bf16.mxu1 %v5040_v35  ;;  %v5087_v34 = vcombine.low %v603_v20, %v607_v21  ;;  %v5094_v35 = vcombine.high %v610_v28, %v614_v29  ;;  %v5096_v63 = vcombine.high %v611_v30, %v615_v31  ;;  %v152_v20 = vld [vmem:[#allocation5 + $0x70] sm:$0xff] }
 0x12e   :  { %v5731_v21 = vpack.c.bf16 %v5715_v55, %v5715_v55  ;;  %v4633_v55 = vcombine.low %v148_v59, %v152_v20 }
 0x130   :  { %3384 = vmatpush1.bf16.msra.mxu0 %v5037_v40  ;;  %3548 = vmatpush1.bf16.msra.mxu1 %v5039_v41  ;;  %v623_v40 = vld [vmem:[#allocation5 + $0xf28] sm:$0xff]  ;;  %v5093_v41 = vcombine.low %v610_v28, %v614_v29  ;;  %v4634_v28 = vcombine.high %v148_v59, %v152_v20  ;;  %v204_v59 = vld [vmem:[#allocation5 + $0x210] sm:$0xff] }
 0x131   :  { %3385 = vmatprep.subr.bf16.mxu0 %v5046_v42  ;;  %3549 = vmatprep.subr.bf16.mxu1 %v5048_v45  ;;  %v5095_v42 = vcombine.low %v611_v30, %v615_v31  ;;  %v5102_v45 = vcombine.high %v618_v37, %v622_v38  ;;  %v5104_v46 = vcombine.high %v619_v39, %v623_v40  ;;  %v156_v30 = vld [vmem:[#allocation5 + $0x90] sm:$0xff] }
 0x132   :  { %v160_v31 = vld [vmem:[#allocation5 + $0xb0] sm:$0xff] }
 0x133   :  { %v208_v20 = vld [vmem:[#allocation5 + $0x230] sm:$0xff] }
 0x134   :  { %3386 = vmatpush1.bf16.msra.mxu0 %v5045_v50  ;;  %3550 = vmatpush1.bf16.msra.mxu1 %v5047_v52  ;;  %v631_v50 = vld [vmem:[#allocation5 + $0xf68] sm:$0xff]  ;;  %v5101_v52 = vcombine.low %v618_v37, %v622_v38  ;;  %v164_v38 = vld [vmem:[#allocation5 + $0xd0] sm:$0xff] }
 0x135   :  { %3387 = vmatprep.subr.bf16.mxu0 %v5054_v54  ;;  %3551 = vmatprep.subr.bf16.mxu1 %v5056_v16  ;;  %v5103_v54 = vcombine.low %v619_v39, %v623_v40  ;;  %v5110_v16 = vcombine.high %v626_v47, %v630_v48  ;;  %v5112_v56 = vcombine.high %v627_v49, %v631_v50  ;;  %v168_v39 = vld [vmem:[#allocation5 + $0xf0] sm:$0xff]  ;;  %v165_v40 = vld [vmem:[#allocation5 + $0xd8] sm:$0xff] }
 0x138   :  { %3388 = vmatpush1.bf16.msra.mxu0 %v5053_v60  ;;  %3552 = vmatpush1.bf16.msra.mxu1 %v5055_v61  ;;  %v639_v60 = vld [vmem:[#allocation5 + $0xfa8] sm:$0xff]  ;;  %v5109_v61 = vcombine.low %v626_v47, %v630_v48  ;;  %v172_v48 = vld [vmem:[#allocation5 + $0x110] sm:$0xff] }
 0x139   :  { %3389 = vmatprep.subr.bf16.mxu0 %v5062_v62  ;;  %3553 = vmatprep.subr.bf16.mxu1 %v5064_v0  ;;  %v5111_v62 = vcombine.low %v627_v49, %v631_v50  ;;  %v5118_v0 = vcombine.high %v634_v57, %v638_v58  ;;  %v5120_v1 = vcombine.high %v635_v23, %v639_v60  ;;  %v176_v49 = vld [vmem:[#allocation5 + $0x130] sm:$0xff]  ;;  %v173_v50 = vld [vmem:[#allocation5 + $0x118] sm:$0xff] }
 0x13c   :  { %3390 = vmatpush1.bf16.msra.mxu0 %v5061_v5  ;;  %3554 = vmatpush1.bf16.msra.mxu1 %v5063_v6  ;;  %v647_v5 = vld [vmem:[#allocation5 + $0xfe8] sm:$0xff]  ;;  %v5117_v6 = vcombine.low %v634_v57, %v638_v58  ;;  %v180_v57 = vld [vmem:[#allocation5 + $0x150] sm:$0xff] }
 0x13d   :  { %3391 = vmatprep.subr.bf16.mxu0 %v5070_v7  ;;  %3555 = vmatprep.subr.bf16.mxu1 %v5072_v8  ;;  %v5119_v7 = vcombine.low %v635_v23, %v639_v60  ;;  %v5126_v8 = vcombine.high %v642_v53, %v646_v3  ;;  %v5128_v10 = vcombine.high %v643_v4, %v647_v5  ;;  %v184_v58 = vld [vmem:[#allocation5 + $0x170] sm:$0xff]  ;;  %v181_v23 = vld [vmem:[#allocation5 + $0x158] sm:$0xff] }
 0x13e   :  { %v185_v60 = vld [vmem:[#allocation5 + $0x178] sm:$0xff] }
 0x140   :  { %3392 = vmatpush1.bf16.msra.mxu0 %v5069_v14  ;;  %3556 = vmatpush1.bf16.msra.mxu1 %v5071_v15  ;;  %v145_v14 = vld [vmem:[#allocation5 + $0x38] sm:$0xff]  ;;  %v5125_v15 = vcombine.low %v642_v53, %v646_v3  ;;  %v188_v53 = vld [vmem:[#allocation5 + $0x190] sm:$0xff] }
 0x141   :  { %3393 = vmatprep.subr.bf16.mxu0 %v5078_v17  ;;  %3557 = vmatprep.subr.bf16.mxu1 %v5080_v18  ;;  %v5127_v17 = vcombine.low %v643_v4, %v647_v5  ;;  %v4626_v18 = vcombine.high %v140_v12, %v144_v13  ;;  %v4628_v19 = vcombine.high %v141_v33, %v145_v14  ;;  %v192_v3 = vld [vmem:[#allocation5 + $0x1b0] sm:$0xff]  ;;  %v189_v4 = vld [vmem:[#allocation5 + $0x198] sm:$0xff] }
 0x142   :  { %v193_v5 = vld [vmem:[#allocation5 + $0x1b8] sm:$0xff] }
 0x144   :  { %3394 = vmatpush1.bf16.msra.mxu0 %v5077_v22  ;;  %3558 = vmatpush1.bf16.msra.mxu1 %v5079_v24  ;;  %v149_v22 = vld [vmem:[#allocation5 + $0x58] sm:$0xff] }
 0x145   :  { %3395 = vmatprep.subr.bf16.mxu0 %v5086_v26  ;;  %3559 = vmatprep.subr.bf16.mxu1 %v5088_v27  ;;  %v153_v24 = vld [vmem:[#allocation5 + $0x78] sm:$0xff]  ;;  %v4625_v26 = vcombine.low %v140_v12, %v144_v13  ;;  %v4627_v27 = vcombine.low %v141_v33, %v145_v14  ;;  %v196_v12 = vld [vmem:[#allocation5 + $0x1d0] sm:$0xff] }
 0x146   :  { %v4636_v29 = vcombine.high %v149_v22, %v153_v24  ;;  %v200_v13 = vld [vmem:[#allocation5 + $0x1f0] sm:$0xff]  ;;  %v197_v33 = vld [vmem:[#allocation5 + $0x1d8] sm:$0xff] }
 0x147   :  { %v201_v14 = vld [vmem:[#allocation5 + $0x1f8] sm:$0xff] }
 0x148   :  { %3396 = vmatpush1.bf16.msra.mxu0 %v5085_v32  ;;  %3560 = vmatpush1.bf16.msra.mxu1 %v5087_v34  ;;  %v157_v32 = vld [vmem:[#allocation5 + $0x98] sm:$0xff] }
 0x149   :  { %3397 = vmatprep.subr.bf16.mxu0 %v5094_v35  ;;  %3561 = vmatprep.subr.bf16.mxu1 %v5096_v63  ;;  %v161_v34 = vld [vmem:[#allocation5 + $0xb8] sm:$0xff]  ;;  %v4635_v35 = vcombine.low %v149_v22, %v153_v24  ;;  %v4642_v63 = vcombine.high %v156_v30, %v160_v31 }
 0x14a   :  { %v4644_v37 = vcombine.high %v157_v32, %v161_v34  ;;  %v205_v22 = vld [vmem:[#allocation5 + $0x218] sm:$0xff] }
 0x14b   :  { %v209_v24 = vld [vmem:[#allocation5 + $0x238] sm:$0xff] }
 0x14c   :  { %3398 = vmatpush1.bf16.msra.mxu0 %v5093_v41  ;;  %3562 = vmatpush1.bf16.msra.mxu1 %v5095_v42  ;;  %v169_v41 = vld [vmem:[#allocation5 + $0xf8] sm:$0xff]  ;;  %v4641_v42 = vcombine.low %v156_v30, %v160_v31  ;;  %v212_v30 = vld [vmem:[#allocation5 + $0x250] sm:$0xff] }
 0x14d   :  { %3399 = vmatprep.subr.bf16.mxu0 %v5102_v45  ;;  %3563 = vmatprep.subr.bf16.mxu1 %v5104_v46  ;;  %v4643_v45 = vcombine.low %v157_v32, %v161_v34  ;;  %v4650_v46 = vcombine.high %v164_v38, %v168_v39  ;;  %v4652_v47 = vcombine.high %v165_v40, %v169_v41  ;;  %v216_v31 = vld [vmem:[#allocation5 + $0x270] sm:$0xff]  ;;  %v213_v32 = vld [vmem:[#allocation5 + $0x258] sm:$0xff] }
 0x14e   :  { %v217_v34 = vld [vmem:[#allocation5 + $0x278] sm:$0xff] }
 0x150   :  { %3400 = vmatpush1.bf16.msra.mxu0 %v5101_v52  ;;  %3564 = vmatpush1.bf16.msra.mxu1 %v5103_v54  ;;  %v177_v52 = vld [vmem:[#allocation5 + $0x138] sm:$0xff]  ;;  %v4649_v54 = vcombine.low %v164_v38, %v168_v39  ;;  %v220_v38 = vld [vmem:[#allocation5 + $0x290] sm:$0xff] }
 0x151   :  { %3401 = vmatprep.subr.bf16.mxu0 %v5110_v16  ;;  %3565 = vmatprep.subr.bf16.mxu1 %v5112_v56  ;;  %v4651_v16 = vcombine.low %v165_v40, %v169_v41  ;;  %v4658_v56 = vcombine.high %v172_v48, %v176_v49  ;;  %v224_v39 = vld [vmem:[#allocation5 + $0x2b0] sm:$0xff]  ;;  %v221_v40 = vld [vmem:[#allocation5 + $0x298] sm:$0xff] }
 0x152   :  { %v225_v41 = vld [vmem:[#allocation5 + $0x2b8] sm:$0xff] }
 0x154   :  { %3402 = vmatpush1.bf16.msra.mxu0 %v5109_v61  ;;  %3566 = vmatpush1.bf16.msra.mxu1 %v5111_v62  ;;  %v4657_v61 = vcombine.low %v172_v48, %v176_v49  ;;  %v4659_v62 = vcombine.low %v173_v50, %v177_v52  ;;  %v228_v48 = vld [vmem:[#allocation5 + $0x2d0] sm:$0xff] }
 0x155   :  { %3403 = vmatprep.subr.bf16.mxu0 %v5118_v0  ;;  %3567 = vmatprep.subr.bf16.mxu1 %v5120_v1  ;;  %v4666_v0 = vcombine.high %v180_v57, %v184_v58  ;;  %v4668_v1 = vcombine.high %v181_v23, %v185_v60  ;;  %v232_v49 = vld [vmem:[#allocation5 + $0x2f0] sm:$0xff] }
 0x158   :  { %3404 = vmatpush1.bf16.msra.mxu0 %v5117_v6  ;;  %3568 = vmatpush1.bf16.msra.mxu1 %v5119_v7  ;;  %v4665_v6 = vcombine.low %v180_v57, %v184_v58  ;;  %v4667_v7 = vcombine.low %v181_v23, %v185_v60  ;;  %v236_v57 = vld [vmem:[#allocation5 + $0x310] sm:$0xff]  ;;  %v237_v23 = vld [vmem:[#allocation5 + $0x318] sm:$0xff] }
 0x159   :  { %3405 = vmatprep.subr.bf16.mxu0 %v5126_v8  ;;  %3569 = vmatprep.subr.bf16.mxu1 %v5128_v10  ;;  %v4674_v8 = vcombine.high %v188_v53, %v192_v3  ;;  %v4676_v10 = vcombine.high %v189_v4, %v193_v5  ;;  %v240_v58 = vld [vmem:[#allocation5 + $0x330] sm:$0xff]  ;;  %v241_v60 = vld [vmem:[#allocation5 + $0x338] sm:$0xff] }
 0x15c   :  { %3406 = vmatpush1.bf16.msra.mxu0 %v5125_v15  ;;  %3570 = vmatpush1.bf16.msra.mxu1 %v5127_v17  ;;  %v4673_v15 = vcombine.low %v188_v53, %v192_v3  ;;  %v4675_v17 = vcombine.low %v189_v4, %v193_v5  ;;  %v244_v53 = vld [vmem:[#allocation5 + $0x350] sm:$0xff]  ;;  %v245_v4 = vld [vmem:[#allocation5 + $0x358] sm:$0xff] }
 0x15d   :  { %3580 = vmatprep.subr.bf16.mxu0 %v4626_v18  ;;  %3744 = vmatprep.subr.bf16.mxu1 %v4628_v19  ;;  %v4682_v18 = vcombine.high %v196_v12, %v200_v13  ;;  %v4684_v19 = vcombine.high %v197_v33, %v201_v14  ;;  %v248_v3 = vld [vmem:[#allocation5 + $0x370] sm:$0xff]  ;;  %v249_v5 = vld [vmem:[#allocation5 + $0x378] sm:$0xff] }
 0x15f   :  { %3408 = vmatmul.mubr.bf16.vlgmr.msra.gmra.mrb[0].mxu0 %v5731_v21  ;;  %3572 = vmatmul.mubr.bf16.vlgmr.msra.gmra.mrb[0].mxu1 %v5731_v21 }
 0x160   :  { %3581 = vmatpush1.bf16.msra.mxu0 %v4625_v26  ;;  %3745 = vmatpush1.bf16.msra.mxu1 %v4627_v27  ;;  %v4681_v26 = vcombine.low %v196_v12, %v200_v13  ;;  %v4683_v27 = vcombine.low %v197_v33, %v201_v14  ;;  %v252_v12 = vld [vmem:[#allocation5 + $0x390] sm:$0xff]  ;;  %v253_v33 = vld [vmem:[#allocation5 + $0x398] sm:$0xff] }
 0x161   :  { %3582 = vmatprep.subr.bf16.mxu0 %v4634_v28  ;;  %3746 = vmatprep.subr.bf16.mxu1 %v4636_v29  ;;  %v4690_v28 = vcombine.high %v204_v59, %v208_v20  ;;  %v4692_v29 = vcombine.high %v205_v22, %v209_v24  ;;  %v256_v13 = vld [vmem:[#allocation5 + $0x3b0] sm:$0xff]  ;;  %v257_v14 = vld [vmem:[#allocation5 + $0x3b8] sm:$0xff] }
 0x162   :  { %3612 = vmatprep.mubr.bf16.mxu0 %v5673_v9  ;;  %3776 = vmatprep.mubr.bf16.mxu1 %v5673_v9  ;;  %v4660_v9 = vcombine.high %v173_v50, %v177_v52  ;;  %v229_v50 = vld [vmem:[#allocation5 + $0x2d8] sm:$0xff] }
 0x163   :  { %v233_v52 = vld [vmem:[#allocation5 + $0x2f8] sm:$0xff] }
 0x164   :  { %3583 = vmatpush1.bf16.msra.mxu0 %v4633_v55  ;;  %3747 = vmatpush1.bf16.msra.mxu1 %v4635_v35  ;;  %v4689_v55 = vcombine.low %v204_v59, %v208_v20  ;;  %v4691_v35 = vcombine.low %v205_v22, %v209_v24  ;;  %v260_v59 = vld [vmem:[#allocation5 + $0x3d0] sm:$0xff]  ;;  %v261_v22 = vld [vmem:[#allocation5 + $0x3d8] sm:$0xff] }
 0x165   :  { %3584 = vmatprep.subr.bf16.mxu0 %v4642_v63  ;;  %3748 = vmatprep.subr.bf16.mxu1 %v4644_v37  ;;  %v4698_v63 = vcombine.high %v212_v30, %v216_v31  ;;  %v4700_v37 = vcombine.high %v213_v32, %v217_v34  ;;  %v264_v20 = vld [vmem:[#allocation5 + $0x3f0] sm:$0xff]  ;;  %v265_v24 = vld [vmem:[#allocation5 + $0x3f8] sm:$0xff] }
 0x168   :  { %3585 = vmatpush1.bf16.msra.mxu0 %v4641_v42  ;;  %3749 = vmatpush1.bf16.msra.mxu1 %v4643_v45  ;;  %v4697_v42 = vcombine.low %v212_v30, %v216_v31  ;;  %v4699_v45 = vcombine.low %v213_v32, %v217_v34  ;;  %v268_v30 = vld [vmem:[#allocation5 + $0x410] sm:$0xff]  ;;  %v269_v32 = vld [vmem:[#allocation5 + $0x418] sm:$0xff] }
 0x169   :  { %3586 = vmatprep.subr.bf16.mxu0 %v4650_v46  ;;  %3750 = vmatprep.subr.bf16.mxu1 %v4652_v47  ;;  %v4706_v46 = vcombine.high %v220_v38, %v224_v39  ;;  %v4708_v47 = vcombine.high %v221_v40, %v225_v41  ;;  %v272_v31 = vld [vmem:[#allocation5 + $0x430] sm:$0xff]  ;;  %v273_v34 = vld [vmem:[#allocation5 + $0x438] sm:$0xff] }
 0x16c   :  { %3587 = vmatpush1.bf16.msra.mxu0 %v4649_v54  ;;  %3751 = vmatpush1.bf16.msra.mxu1 %v4651_v16  ;;  %v4705_v54 = vcombine.low %v220_v38, %v224_v39  ;;  %v4707_v16 = vcombine.low %v221_v40, %v225_v41  ;;  %v276_v38 = vld [vmem:[#allocation5 + $0x450] sm:$0xff]  ;;  %v277_v40 = vld [vmem:[#allocation5 + $0x458] sm:$0xff] }
 0x16d   :  { %3588 = vmatprep.subr.bf16.mxu0 %v4658_v56  ;;  %3752 = vmatprep.subr.bf16.mxu1 %v4660_v9  ;;  %v4714_v56 = vcombine.high %v228_v48, %v232_v49  ;;  %v4716_v9 = vcombine.high %v229_v50, %v233_v52  ;;  %v280_v39 = vld [vmem:[#allocation5 + $0x470] sm:$0xff]  ;;  %v281_v41 = vld [vmem:[#allocation5 + $0x478] sm:$0xff] }
 0x170   :  { %3589 = vmatpush1.bf16.msra.mxu0 %v4657_v61  ;;  %3753 = vmatpush1.bf16.msra.mxu1 %v4659_v62  ;;  %v4713_v61 = vcombine.low %v228_v48, %v232_v49  ;;  %v4715_v62 = vcombine.low %v229_v50, %v233_v52  ;;  %v284_v48 = vld [vmem:[#allocation5 + $0x490] sm:$0xff]  ;;  %v285_v50 = vld [vmem:[#allocation5 + $0x498] sm:$0xff] }
 0x171   :  { %3590 = vmatprep.subr.bf16.mxu0 %v4666_v0  ;;  %3754 = vmatprep.subr.bf16.mxu1 %v4668_v1  ;;  %v4722_v0 = vcombine.high %v236_v57, %v240_v58  ;;  %v4724_v1 = vcombine.high %v237_v23, %v241_v60  ;;  %v288_v49 = vld [vmem:[#allocation5 + $0x4b0] sm:$0xff]  ;;  %v289_v52 = vld [vmem:[#allocation5 + $0x4b8] sm:$0xff] }
 0x174   :  { %3591 = vmatpush1.bf16.msra.mxu0 %v4665_v6  ;;  %3755 = vmatpush1.bf16.msra.mxu1 %v4667_v7  ;;  %v4721_v6 = vcombine.low %v236_v57, %v240_v58  ;;  %v4723_v7 = vcombine.low %v237_v23, %v241_v60  ;;  %v292_v57 = vld [vmem:[#allocation5 + $0x4d0] sm:$0xff]  ;;  %v293_v23 = vld [vmem:[#allocation5 + $0x4d8] sm:$0xff] }
 0x175   :  { %3592 = vmatprep.subr.bf16.mxu0 %v4674_v8  ;;  %3756 = vmatprep.subr.bf16.mxu1 %v4676_v10  ;;  %v4730_v8 = vcombine.high %v244_v53, %v248_v3  ;;  %v4732_v10 = vcombine.high %v245_v4, %v249_v5  ;;  %v296_v58 = vld [vmem:[#allocation5 + $0x4f0] sm:$0xff]  ;;  %v297_v60 = vld [vmem:[#allocation5 + $0x4f8] sm:$0xff] }
 0x178   :  { %3593 = vmatpush1.bf16.msra.mxu0 %v4673_v15  ;;  %3757 = vmatpush1.bf16.msra.mxu1 %v4675_v17  ;;  %v4729_v15 = vcombine.low %v244_v53, %v248_v3  ;;  %v4731_v17 = vcombine.low %v245_v4, %v249_v5  ;;  %v304_v53 = vld [vmem:[#allocation5 + $0x530] sm:$0xff]  ;;  %v301_v3 = vld [vmem:[#allocation5 + $0x518] sm:$0xff]  ;;  %v4777_v5 = vcombine.low %v292_v57, %v296_v58 }
 0x179   :  { %3594 = vmatprep.subr.bf16.mxu0 %v4682_v18  ;;  %3758 = vmatprep.subr.bf16.mxu1 %v4684_v19  ;;  %v4738_v18 = vcombine.high %v252_v12, %v256_v13  ;;  %v4740_v19 = vcombine.high %v253_v33, %v257_v14  ;;  %v305_v4 = vld [vmem:[#allocation5 + $0x538] sm:$0xff] }
 0x17c   :  { %3595 = vmatpush1.bf16.msra.mxu0 %v4681_v26  ;;  %3759 = vmatpush1.bf16.msra.mxu1 %v4683_v27  ;;  %v4737_v26 = vcombine.low %v252_v12, %v256_v13  ;;  %v4739_v27 = vcombine.low %v253_v33, %v257_v14  ;;  %v309_v12 = vld [vmem:[#allocation5 + $0x558] sm:$0xff]  ;;  %v4787_v14 = vcombine.low %v301_v3, %v305_v4 }
 0x17d   :  { %3596 = vmatprep.subr.bf16.mxu0 %v4690_v28  ;;  %3760 = vmatprep.subr.bf16.mxu1 %v4692_v29  ;;  %v4746_v28 = vcombine.high %v260_v59, %v264_v20  ;;  %v4748_v29 = vcombine.high %v261_v22, %v265_v24  ;;  %v313_v13 = vld [vmem:[#allocation5 + $0x578] sm:$0xff] }
 0x180   :  { %3597 = vmatpush1.bf16.msra.mxu0 %v4689_v55  ;;  %3761 = vmatpush1.bf16.msra.mxu1 %v4691_v35  ;;  %v4745_v55 = vcombine.low %v260_v59, %v264_v20  ;;  %v4747_v35 = vcombine.low %v261_v22, %v265_v24  ;;  %v317_v59 = vld [vmem:[#allocation5 + $0x598] sm:$0xff]  ;;  %v4795_v24 = vcombine.low %v309_v12, %v313_v13 }
 0x181   :  { %3598 = vmatprep.subr.bf16.mxu0 %v4698_v63  ;;  %3762 = vmatprep.subr.bf16.mxu1 %v4700_v37  ;;  %v4754_v63 = vcombine.high %v268_v30, %v272_v31  ;;  %v4756_v37 = vcombine.high %v269_v32, %v273_v34  ;;  %v321_v20 = vld [vmem:[#allocation5 + $0x5b8] sm:$0xff] }
 0x184   :  { %3599 = vmatpush1.bf16.msra.mxu0 %v4697_v42  ;;  %3763 = vmatpush1.bf16.msra.mxu1 %v4699_v45  ;;  %v4753_v42 = vcombine.low %v268_v30, %v272_v31  ;;  %v4755_v45 = vcombine.low %v269_v32, %v273_v34  ;;  %v325_v30 = vld [vmem:[#allocation5 + $0x5d8] sm:$0xff]  ;;  %v4803_v34 = vcombine.low %v317_v59, %v321_v20 }
 0x185   :  { %3600 = vmatprep.subr.bf16.mxu0 %v4706_v46  ;;  %3764 = vmatprep.subr.bf16.mxu1 %v4708_v47  ;;  %v4762_v46 = vcombine.high %v276_v38, %v280_v39  ;;  %v4764_v47 = vcombine.high %v277_v40, %v281_v41  ;;  %v329_v31 = vld [vmem:[#allocation5 + $0x5f8] sm:$0xff] }
 0x188   :  { %3601 = vmatpush1.bf16.msra.mxu0 %v4705_v54  ;;  %3765 = vmatpush1.bf16.msra.mxu1 %v4707_v16  ;;  %v4761_v54 = vcombine.low %v276_v38, %v280_v39  ;;  %v4763_v16 = vcombine.low %v277_v40, %v281_v41  ;;  %v333_v38 = vld [vmem:[#allocation5 + $0x618] sm:$0xff]  ;;  %v4811_v41 = vcombine.low %v325_v30, %v329_v31 }
 0x189   :  { %3602 = vmatprep.subr.bf16.mxu0 %v4714_v56  ;;  %3766 = vmatprep.subr.bf16.mxu1 %v4716_v9  ;;  %v4770_v56 = vcombine.high %v284_v48, %v288_v49  ;;  %v4772_v9 = vcombine.high %v285_v50, %v289_v52  ;;  %v337_v39 = vld [vmem:[#allocation5 + $0x638] sm:$0xff] }
 0x18c   :  { %3603 = vmatpush1.bf16.msra.mxu0 %v4713_v61  ;;  %3767 = vmatpush1.bf16.msra.mxu1 %v4715_v62  ;;  %v4769_v61 = vcombine.low %v284_v48, %v288_v49  ;;  %v4778_v62 = vcombine.high %v292_v57, %v296_v58  ;;  %v341_v48 = vld [vmem:[#allocation5 + $0x658] sm:$0xff] }
 0x18d   :  { %3604 = vmatprep.subr.bf16.mxu0 %v4722_v0  ;;  %3768 = vmatprep.subr.bf16.mxu1 %v4724_v1  ;;  %v4780_v0 = vcombine.high %v293_v23, %v297_v60  ;;  %v300_v1 = vld [vmem:[#allocation5 + $0x510] sm:$0xff]  ;;  %v345_v49 = vld [vmem:[#allocation5 + $0x678] sm:$0xff] }
 0x18e   :  { %v4785_v33 = vcombine.low %v300_v1, %v304_v53  ;;  %v349_v57 = vld [vmem:[#allocation5 + $0x698] sm:$0xff] }
 0x18f   :  { %v353_v58 = vld [vmem:[#allocation5 + $0x6b8] sm:$0xff] }
 0x190   :  { %3605 = vmatpush1.bf16.msra.mxu0 %v4721_v6  ;;  %3769 = vmatpush1.bf16.msra.mxu1 %v4723_v7  ;;  %v4779_v6 = vcombine.low %v293_v23, %v297_v60  ;;  %v4786_v7 = vcombine.high %v300_v1, %v304_v53  ;;  %v4827_v60 = vcombine.low %v341_v48, %v345_v49  ;;  %v357_v1 = vld [vmem:[#allocation5 + $0x6d8] sm:$0xff] }
 0x191   :  { %3606 = vmatprep.subr.bf16.mxu0 %v4730_v8  ;;  %3770 = vmatprep.subr.bf16.mxu1 %v4732_v10  ;;  %v308_v8 = vld [vmem:[#allocation5 + $0x550] sm:$0xff]  ;;  %v361_v53 = vld [vmem:[#allocation5 + $0x6f8] sm:$0xff] }
 0x192   :  { %v312_v10 = vld [vmem:[#allocation5 + $0x570] sm:$0xff] }
 0x193   :  { %v4793_v22 = vcombine.low %v308_v8, %v312_v10 }
 0x194   :  { %3607 = vmatpush1.bf16.msra.mxu0 %v4729_v15  ;;  %3771 = vmatpush1.bf16.msra.mxu1 %v4731_v17  ;;  %v4794_v15 = vcombine.high %v308_v8, %v312_v10  ;;  %v4796_v17 = vcombine.high %v309_v12, %v313_v13  ;;  %v365_v8 = vld [vmem:[#allocation5 + $0x718] sm:$0xff]  ;;  %v4843_v13 = vcombine.low %v357_v1, %v361_v53 }
 0x195   :  { %3608 = vmatprep.subr.bf16.mxu0 %v4738_v18  ;;  %3772 = vmatprep.subr.bf16.mxu1 %v4740_v19  ;;  %v316_v18 = vld [vmem:[#allocation5 + $0x590] sm:$0xff]  ;;  %v369_v10 = vld [vmem:[#allocation5 + $0x738] sm:$0xff] }
 0x196   :  { %v320_v19 = vld [vmem:[#allocation5 + $0x5b0] sm:$0xff] }
 0x197   :  { %v4801_v32 = vcombine.low %v316_v18, %v320_v19 }
 0x198   :  { %3609 = vmatpush1.bf16.msra.mxu0 %v4737_v26  ;;  %3773 = vmatpush1.bf16.msra.mxu1 %v4739_v27  ;;  %v4802_v26 = vcombine.high %v316_v18, %v320_v19  ;;  %v4804_v27 = vcombine.high %v317_v59, %v321_v20  ;;  %v373_v18 = vld [vmem:[#allocation5 + $0x758] sm:$0xff]  ;;  %v4851_v20 = vcombine.low %v365_v8, %v369_v10 }
 0x199   :  { %3610 = vmatprep.subr.bf16.mxu0 %v4746_v28  ;;  %3774 = vmatprep.subr.bf16.mxu1 %v4748_v29  ;;  %v324_v28 = vld [vmem:[#allocation5 + $0x5d0] sm:$0xff]  ;;  %v377_v19 = vld [vmem:[#allocation5 + $0x778] sm:$0xff] }
 0x19a   :  { %v328_v29 = vld [vmem:[#allocation5 + $0x5f0] sm:$0xff] }
 0x19b   :  { %v4809_v40 = vcombine.low %v324_v28, %v328_v29 }
 0x19c   :  { %3611 = vmatpush1.bf16.msra.mxu0 %v4745_v55  ;;  %3775 = vmatpush1.bf16.msra.mxu1 %v4747_v35  ;;  %v4810_v55 = vcombine.high %v324_v28, %v328_v29  ;;  %v4812_v35 = vcombine.high %v325_v30, %v329_v31  ;;  %v381_v28 = vld [vmem:[#allocation5 + $0x798] sm:$0xff]  ;;  %v4859_v31 = vcombine.low %v373_v18, %v377_v19 }
 0x19d   :  { %3621 = vmatprep.subr.bf16.mxu0 %v4754_v63  ;;  %3785 = vmatprep.subr.bf16.mxu1 %v4756_v37  ;;  %v332_v63 = vld [vmem:[#allocation5 + $0x610] sm:$0xff]  ;;  %v385_v29 = vld [vmem:[#allocation5 + $0x7b8] sm:$0xff] }
 0x19e   :  { %v336_v37 = vld [vmem:[#allocation5 + $0x630] sm:$0xff] }
 0x19f   :  { %3613 = vmatmul.mubr.bf16.vlgmr.msra.gmra.mrb[4].mxu0 %v5686_v25  ;;  %3777 = vmatmul.mubr.bf16.vlgmr.msra.gmra.mrb[4].mxu1 %v5686_v25  ;;  %v4771_v25 = vcombine.low %v285_v50, %v289_v52  ;;  %v4817_v50 = vcombine.low %v332_v63, %v336_v37  ;;  %v4819_v52 = vcombine.low %v333_v38, %v337_v39 }
 0x1a0   :  { %3622 = vmatpush1.bf16.msra.mxu0 %v4753_v42  ;;  %3786 = vmatpush1.bf16.msra.mxu1 %v4755_v45  ;;  %v4818_v42 = vcombine.high %v332_v63, %v336_v37  ;;  %v4820_v45 = vcombine.high %v333_v38, %v337_v39  ;;  %v389_v63 = vld [vmem:[#allocation5 + $0x7d8] sm:$0xff]  ;;  %v4867_v39 = vcombine.low %v381_v28, %v385_v29 }
 0x1a1   :  { %3623 = vmatprep.subr.bf16.mxu0 %v4762_v46  ;;  %3787 = vmatprep.subr.bf16.mxu1 %v4764_v47  ;;  %v340_v46 = vld [vmem:[#allocation5 + $0x650] sm:$0xff]  ;;  %v393_v37 = vld [vmem:[#allocation5 + $0x7f8] sm:$0xff] }
 0x1a2   :  { %3653 = vmatprep.mubr.bf16.mxu0 %v5688_v36  ;;  %3817 = vmatprep.mubr.bf16.mxu1 %v5688_v36  ;;  %v4788_v36 = vcombine.high %v301_v3, %v305_v4  ;;  %v344_v47 = vld [vmem:[#allocation5 + $0x670] sm:$0xff]  ;;  %v4835_v4 = vcombine.low %v349_v57, %v353_v58 }
 0x1a3   :  { %v4825_v23 = vcombine.low %v340_v46, %v344_v47 }
 0x1a4   :  { %3624 = vmatpush1.bf16.msra.mxu0 %v4761_v54  ;;  %3788 = vmatpush1.bf16.msra.mxu1 %v4763_v16  ;;  %v4826_v54 = vcombine.high %v340_v46, %v344_v47  ;;  %v4828_v16 = vcombine.high %v341_v48, %v345_v49  ;;  %v397_v46 = vld [vmem:[#allocation5 + $0x818] sm:$0xff]  ;;  %v4875_v49 = vcombine.low %v389_v63, %v393_v37 }
 0x1a5   :  { %3625 = vmatprep.subr.bf16.mxu0 %v4770_v56  ;;  %3789 = vmatprep.subr.bf16.mxu1 %v4772_v9  ;;  %v348_v56 = vld [vmem:[#allocation5 + $0x690] sm:$0xff]  ;;  %v401_v47 = vld [vmem:[#allocation5 + $0x838] sm:$0xff] }
 0x1a6   :  { %v352_v9 = vld [vmem:[#allocation5 + $0x6b0] sm:$0xff] }
 0x1a7   :  { %v4833_v3 = vcombine.low %v348_v56, %v352_v9 }
 0x1a8   :  { %3626 = vmatpush1.bf16.msra.mxu0 %v4769_v61  ;;  %3790 = vmatpush1.bf16.msra.mxu1 %v4771_v25  ;;  %v4834_v61 = vcombine.high %v348_v56, %v352_v9  ;;  %v4836_v25 = vcombine.high %v349_v57, %v353_v58  ;;  %v405_v56 = vld [vmem:[#allocation5 + $0x858] sm:$0xff]  ;;  %v4883_v58 = vcombine.low %v397_v46, %v401_v47 }
 0x1a9   :  { %3627 = vmatprep.subr.bf16.mxu0 %v4778_v62  ;;  %3791 = vmatprep.subr.bf16.mxu1 %v4780_v0  ;;  %v356_v62 = vld [vmem:[#allocation5 + $0x6d0] sm:$0xff]  ;;  %v409_v9 = vld [vmem:[#allocation5 + $0x878] sm:$0xff] }
 0x1aa   :  { %v360_v0 = vld [vmem:[#allocation5 + $0x6f0] sm:$0xff] }
 0x1ab   :  { %v4841_v12 = vcombine.low %v356_v62, %v360_v0 }
 0x1ac   :  { %3628 = vmatpush1.bf16.msra.mxu0 %v4777_v5  ;;  %3792 = vmatpush1.bf16.msra.mxu1 %v4779_v6  ;;  %v4842_v5 = vcombine.high %v356_v62, %v360_v0  ;;  %v4844_v6 = vcombine.high %v357_v1, %v361_v53  ;;  %v413_v62 = vld [vmem:[#allocation5 + $0x898] sm:$0xff]  ;;  %v4891_v53 = vcombine.low %v405_v56, %v409_v9 }
 0x1ad   :  { %3629 = vmatprep.subr.bf16.mxu0 %v4786_v7  ;;  %3793 = vmatprep.subr.bf16.mxu1 %v4788_v36  ;;  %v364_v7 = vld [vmem:[#allocation5 + $0x710] sm:$0xff]  ;;  %v417_v0 = vld [vmem:[#allocation5 + $0x8b8] sm:$0xff] }
 0x1ae   :  { %v368_v36 = vld [vmem:[#allocation5 + $0x730] sm:$0xff] }
 0x1af   :  { %v4849_v59 = vcombine.low %v364_v7, %v368_v36 }
 0x1b0   :  { %3630 = vmatpush1.bf16.msra.mxu0 %v4785_v33  ;;  %3794 = vmatpush1.bf16.msra.mxu1 %v4787_v14  ;;  %v4850_v33 = vcombine.high %v364_v7, %v368_v36  ;;  %v4852_v14 = vcombine.high %v365_v8, %v369_v10  ;;  %v421_v7 = vld [vmem:[#allocation5 + $0x8d8] sm:$0xff] }
 0x1b1   :  { %3631 = vmatprep.subr.bf16.mxu0 %v4794_v15  ;;  %3795 = vmatprep.subr.bf16.mxu1 %v4796_v17  ;;  %v372_v15 = vld [vmem:[#allocation5 + $0x750] sm:$0xff]  ;;  %v425_v36 = vld [vmem:[#allocation5 + $0x8f8] sm:$0xff] }
 0x1b2   :  { %v376_v17 = vld [vmem:[#allocation5 + $0x770] sm:$0xff] }
 0x1b3   :  { %v4857_v30 = vcombine.low %v372_v15, %v376_v17 }
 0x1b4   :  { %3632 = vmatpush1.bf16.msra.mxu0 %v4793_v22  ;;  %3796 = vmatpush1.bf16.msra.mxu1 %v4795_v24  ;;  %v4858_v22 = vcombine.high %v372_v15, %v376_v17  ;;  %v4860_v24 = vcombine.high %v373_v18, %v377_v19  ;;  %v433_v15 = vld [vmem:[#allocation5 + $0x938] sm:$0xff]  ;;  %v4907_v18 = vcombine.low %v421_v7, %v425_v36 }
 0x1b5   :  { %3633 = vmatprep.subr.bf16.mxu0 %v4802_v26  ;;  %3797 = vmatprep.subr.bf16.mxu1 %v4804_v27  ;;  %v380_v26 = vld [vmem:[#allocation5 + $0x790] sm:$0xff] }
 0x1b6   :  { %v384_v27 = vld [vmem:[#allocation5 + $0x7b0] sm:$0xff] }
 0x1b7   :  { %v4865_v38 = vcombine.low %v380_v26, %v384_v27 }
 0x1b8   :  { %3634 = vmatpush1.bf16.msra.mxu0 %v4801_v32  ;;  %3798 = vmatpush1.bf16.msra.mxu1 %v4803_v34  ;;  %v4866_v32 = vcombine.high %v380_v26, %v384_v27  ;;  %v4868_v34 = vcombine.high %v381_v28, %v385_v29 }
 0x1b9   :  { %3635 = vmatprep.subr.bf16.mxu0 %v4810_v55  ;;  %3799 = vmatprep.subr.bf16.mxu1 %v4812_v35  ;;  %v388_v55 = vld [vmem:[#allocation5 + $0x7d0] sm:$0xff] }
 0x1ba   :  { %v392_v35 = vld [vmem:[#allocation5 + $0x7f0] sm:$0xff] }
 0x1bb   :  { %v4873_v48 = vcombine.low %v388_v55, %v392_v35 }
 0x1bc   :  { %3636 = vmatpush1.bf16.msra.mxu0 %v4809_v40  ;;  %3800 = vmatpush1.bf16.msra.mxu1 %v4811_v41  ;;  %v4874_v40 = vcombine.high %v388_v55, %v392_v35  ;;  %v4876_v41 = vcombine.high %v389_v63, %v393_v37 }
 0x1bd   :  { %3637 = vmatprep.subr.bf16.mxu0 %v4818_v42  ;;  %3801 = vmatprep.subr.bf16.mxu1 %v4820_v45  ;;  %v396_v42 = vld [vmem:[#allocation5 + $0x810] sm:$0xff] }
 0x1be   :  { %v400_v45 = vld [vmem:[#allocation5 + $0x830] sm:$0xff] }
 0x1bf   :  { %v4881_v57 = vcombine.low %v396_v42, %v400_v45 }
 0x1c0   :  { %3638 = vmatpush1.bf16.msra.mxu0 %v4817_v50  ;;  %3802 = vmatpush1.bf16.msra.mxu1 %v4819_v52  ;;  %v4882_v50 = vcombine.high %v396_v42, %v400_v45  ;;  %v4884_v52 = vcombine.high %v397_v46, %v401_v47 }
 0x1c1   :  { %3639 = vmatprep.subr.bf16.mxu0 %v4826_v54  ;;  %3803 = vmatprep.subr.bf16.mxu1 %v4828_v16  ;;  %v404_v54 = vld [vmem:[#allocation5 + $0x850] sm:$0xff] }
 0x1c2   :  { %v408_v16 = vld [vmem:[#allocation5 + $0x870] sm:$0xff] }
 0x1c3   :  { %v4889_v1 = vcombine.low %v404_v54, %v408_v16 }
 0x1c4   :  { %3640 = vmatpush1.bf16.msra.mxu0 %v4825_v23  ;;  %3804 = vmatpush1.bf16.msra.mxu1 %v4827_v60  ;;  %v4890_v23 = vcombine.high %v404_v54, %v408_v16  ;;  %v4892_v60 = vcombine.high %v405_v56, %v409_v9 }
 0x1c5   :  { %3641 = vmatprep.subr.bf16.mxu0 %v4834_v61  ;;  %3805 = vmatprep.subr.bf16.mxu1 %v4836_v25  ;;  %v412_v61 = vld [vmem:[#allocation5 + $0x890] sm:$0xff] }
 0x1c6   :  { %v416_v25 = vld [vmem:[#allocation5 + $0x8b0] sm:$0xff] }
 0x1c7   :  { %v4897_v8 = vcombine.low %v412_v61, %v416_v25 }
 0x1c8   :  { %3642 = vmatpush1.bf16.msra.mxu0 %v4833_v3  ;;  %3806 = vmatpush1.bf16.msra.mxu1 %v4835_v4  ;;  %v4898_v3 = vcombine.high %v412_v61, %v416_v25  ;;  %v4900_v4 = vcombine.high %v413_v62, %v417_v0 }
 0x1c9   :  { %3643 = vmatprep.subr.bf16.mxu0 %v4842_v5  ;;  %3807 = vmatprep.subr.bf16.mxu1 %v4844_v6  ;;  %v420_v5 = vld [vmem:[#allocation5 + $0x8d0] sm:$0xff] }
 0x1ca   :  { %v424_v6 = vld [vmem:[#allocation5 + $0x8f0] sm:$0xff] }
 0x1cb   :  { %v4906_v10 = vcombine.high %v420_v5, %v424_v6  ;;  %v4905_v17 = vcombine.low %v420_v5, %v424_v6 }
 0x1cc   :  { %3644 = vmatpush1.bf16.msra.mxu0 %v4841_v12  ;;  %3808 = vmatpush1.bf16.msra.mxu1 %v4843_v13  ;;  %v4908_v12 = vcombine.high %v421_v7, %v425_v36  ;;  %v428_v13 = vld [vmem:[#allocation5 + $0x910] sm:$0xff] }
 0x1cd   :  { %3645 = vmatprep.subr.bf16.mxu0 %v4850_v33  ;;  %3809 = vmatprep.subr.bf16.mxu1 %v4852_v14  ;;  %v432_v33 = vld [vmem:[#allocation5 + $0x930] sm:$0xff]  ;;  %v429_v14 = vld [vmem:[#allocation5 + $0x918] sm:$0xff] }
 0x1ce   :  { %v4914_v19 = vcombine.high %v428_v13, %v432_v33  ;;  %v4913_v26 = vcombine.low %v428_v13, %v432_v33  ;;  %v4915_v27 = vcombine.low %v429_v14, %v433_v15 }
 0x1d0   :  { %3646 = vmatpush1.bf16.msra.mxu0 %v4849_v59  ;;  %3810 = vmatpush1.bf16.msra.mxu1 %v4851_v20  ;;  %v436_v59 = vld [vmem:[#allocation5 + $0x950] sm:$0xff] }
 0x1d1   :  { %3647 = vmatprep.subr.bf16.mxu0 %v4858_v22  ;;  %3811 = vmatprep.subr.bf16.mxu1 %v4860_v24  ;;  %v440_v20 = vld [vmem:[#allocation5 + $0x970] sm:$0xff]  ;;  %v437_v22 = vld [vmem:[#allocation5 + $0x958] sm:$0xff] }
 0x1d2   :  { %v441_v24 = vld [vmem:[#allocation5 + $0x978] sm:$0xff]  ;;  %v4922_v28 = vcombine.high %v436_v59, %v440_v20  ;;  %v4921_v55 = vcombine.low %v436_v59, %v440_v20 }
 0x1d3   :  { %v4924_v29 = vcombine.high %v437_v22, %v441_v24  ;;  %v4923_v35 = vcombine.low %v437_v22, %v441_v24 }
 0x1d4   :  { %3648 = vmatpush1.bf16.msra.mxu0 %v4857_v30  ;;  %3812 = vmatpush1.bf16.msra.mxu1 %v4859_v31  ;;  %v444_v30 = vld [vmem:[#allocation5 + $0x990] sm:$0xff] }
 0x1d5   :  { %3649 = vmatprep.subr.bf16.mxu0 %v4866_v32  ;;  %3813 = vmatprep.subr.bf16.mxu1 %v4868_v34  ;;  %v448_v31 = vld [vmem:[#allocation5 + $0x9b0] sm:$0xff]  ;;  %v445_v32 = vld [vmem:[#allocation5 + $0x998] sm:$0xff] }
 0x1d6   :  { %v449_v34 = vld [vmem:[#allocation5 + $0x9b8] sm:$0xff]  ;;  %v4930_v63 = vcombine.high %v444_v30, %v448_v31  ;;  %v4929_v42 = vcombine.low %v444_v30, %v448_v31 }
 0x1d7   :  { %v4932_v37 = vcombine.high %v445_v32, %v449_v34  ;;  %v4931_v45 = vcombine.low %v445_v32, %v449_v34 }
 0x1d8   :  { %3650 = vmatpush1.bf16.msra.mxu0 %v4865_v38  ;;  %3814 = vmatpush1.bf16.msra.mxu1 %v4867_v39  ;;  %v452_v38 = vld [vmem:[#allocation5 + $0x9d0] sm:$0xff] }
 0x1d9   :  { %3651 = vmatprep.subr.bf16.mxu0 %v4874_v40  ;;  %3815 = vmatprep.subr.bf16.mxu1 %v4876_v41  ;;  %v456_v39 = vld [vmem:[#allocation5 + $0x9f0] sm:$0xff]  ;;  %v453_v40 = vld [vmem:[#allocation5 + $0x9d8] sm:$0xff] }
 0x1da   :  { %v457_v41 = vld [vmem:[#allocation5 + $0x9f8] sm:$0xff]  ;;  %v4938_v46 = vcombine.high %v452_v38, %v456_v39  ;;  %v4937_v54 = vcombine.low %v452_v38, %v456_v39 }
 0x1db   :  { %v4940_v47 = vcombine.high %v453_v40, %v457_v41  ;;  %v4939_v16 = vcombine.low %v453_v40, %v457_v41 }
 0x1dc   :  { %3652 = vmatpush1.bf16.msra.mxu0 %v4873_v48  ;;  %3816 = vmatpush1.bf16.msra.mxu1 %v4875_v49  ;;  %v460_v48 = vld [vmem:[#allocation5 + $0xa10] sm:$0xff] }
 0x1dd   :  { %3662 = vmatprep.subr.bf16.mxu0 %v4882_v50  ;;  %3826 = vmatprep.subr.bf16.mxu1 %v4884_v52  ;;  %v464_v49 = vld [vmem:[#allocation5 + $0xa30] sm:$0xff]  ;;  %v461_v50 = vld [vmem:[#allocation5 + $0xa18] sm:$0xff] }
 0x1de   :  { %v465_v52 = vld [vmem:[#allocation5 + $0xa38] sm:$0xff]  ;;  %v4946_v56 = vcombine.high %v460_v48, %v464_v49  ;;  %v4945_v61 = vcombine.low %v460_v48, %v464_v49 }
 0x1df   :  { %3654 = vmatmul.mubr.bf16.vlgmr.msra.gmra.mrb[4].mxu0 %v5704_v43  ;;  %3818 = vmatmul.mubr.bf16.vlgmr.msra.gmra.mrb[4].mxu1 %v5704_v43  ;;  %v4899_v43 = vcombine.low %v413_v62, %v417_v0  ;;  %v4948_v9 = vcombine.high %v461_v50, %v465_v52  ;;  %v4947_v25 = vcombine.low %v461_v50, %v465_v52 }
 0x1e0   :  { %3663 = vmatpush1.bf16.msra.mxu0 %v4881_v57  ;;  %3827 = vmatpush1.bf16.msra.mxu1 %v4883_v58  ;;  %v468_v57 = vld [vmem:[#allocation5 + $0xa50] sm:$0xff] }
 0x1e1   :  { %3664 = vmatprep.subr.bf16.mxu0 %v4890_v23  ;;  %3828 = vmatprep.subr.bf16.mxu1 %v4892_v60  ;;  %v472_v58 = vld [vmem:[#allocation5 + $0xa70] sm:$0xff]  ;;  %v469_v23 = vld [vmem:[#allocation5 + $0xa58] sm:$0xff] }
 0x1e2   :  { %3694 = vmatprep.mubr.bf16.mxu0 %v5706_v51  ;;  %3858 = vmatprep.mubr.bf16.mxu1 %v5706_v51  ;;  %v4916_v51 = vcombine.high %v429_v14, %v433_v15  ;;  %v473_v60 = vld [vmem:[#allocation5 + $0xa78] sm:$0xff]  ;;  %v4954_v62 = vcombine.high %v468_v57, %v472_v58  ;;  %v4953_v5 = vcombine.low %v468_v57, %v472_v58 }
 0x1e3   :  { %v4956_v0 = vcombine.high %v469_v23, %v473_v60  ;;  %v4955_v6 = vcombine.low %v469_v23, %v473_v60 }
 0x1e4   :  { %3665 = vmatpush1.bf16.msra.mxu0 %v4889_v1  ;;  %3829 = vmatpush1.bf16.msra.mxu1 %v4891_v53  ;;  %v476_v1 = vld [vmem:[#allocation5 + $0xa90] sm:$0xff] }
 0x1e5   :  { %3666 = vmatprep.subr.bf16.mxu0 %v4898_v3  ;;  %3830 = vmatprep.subr.bf16.mxu1 %v4900_v4  ;;  %v480_v53 = vld [vmem:[#allocation5 + $0xab0] sm:$0xff]  ;;  %v477_v3 = vld [vmem:[#allocation5 + $0xa98] sm:$0xff] }
 0x1e6   :  { %v481_v4 = vld [vmem:[#allocation5 + $0xab8] sm:$0xff]  ;;  %v4962_v7 = vcombine.high %v476_v1, %v480_v53  ;;  %v4961_v13 = vcombine.low %v476_v1, %v480_v53 }
 0x1e7   :  { %v4964_v36 = vcombine.high %v477_v3, %v481_v4  ;;  %v4963_v33 = vcombine.low %v477_v3, %v481_v4 }
 0x1e8   :  { %3667 = vmatpush1.bf16.msra.mxu0 %v4897_v8  ;;  %3831 = vmatpush1.bf16.msra.mxu1 %v4899_v43  ;;  %v484_v8 = vld [vmem:[#allocation5 + $0xad0] sm:$0xff] }
 0x1e9   :  { %3668 = vmatprep.subr.bf16.mxu0 %v4906_v10  ;;  %3832 = vmatprep.subr.bf16.mxu1 %v4908_v12  ;;  %v488_v43 = vld [vmem:[#allocation5 + $0xaf0] sm:$0xff]  ;;  %v485_v10 = vld [vmem:[#allocation5 + $0xad8] sm:$0xff] }
 0x1ea   :  { %v489_v12 = vld [vmem:[#allocation5 + $0xaf8] sm:$0xff]  ;;  %v4970_v14 = vcombine.high %v484_v8, %v488_v43  ;;  %v4969_v59 = vcombine.low %v484_v8, %v488_v43 }
 0x1eb   :  { %v4972_v15 = vcombine.high %v485_v10, %v489_v12  ;;  %v4971_v20 = vcombine.low %v485_v10, %v489_v12 }
 0x1ec   :  { %3669 = vmatpush1.bf16.msra.mxu0 %v4905_v17  ;;  %3833 = vmatpush1.bf16.msra.mxu1 %v4907_v18  ;;  %v492_v17 = vld [vmem:[#allocation5 + $0xb10] sm:$0xff] }
 0x1ed   :  { %3670 = vmatprep.subr.bf16.mxu0 %v4914_v19  ;;  %3834 = vmatprep.subr.bf16.mxu1 %v4916_v51  ;;  %v496_v18 = vld [vmem:[#allocation5 + $0xb30] sm:$0xff]  ;;  %v493_v19 = vld [vmem:[#allocation5 + $0xb18] sm:$0xff] }
 0x1ee   :  { %v497_v51 = vld [vmem:[#allocation5 + $0xb38] sm:$0xff]  ;;  %v4978_v22 = vcombine.high %v492_v17, %v496_v18  ;;  %v4977_v30 = vcombine.low %v492_v17, %v496_v18 }
 0x1ef   :  { %v4980_v24 = vcombine.high %v493_v19, %v497_v51  ;;  %v4979_v31 = vcombine.low %v493_v19, %v497_v51  ;;  %v556_v51 = vld [vmem:[#allocation5 + $0xd10] sm:$0xff] }
 0x1f0   :  { %3671 = vmatpush1.bf16.msra.mxu0 %v4913_v26  ;;  %3835 = vmatpush1.bf16.msra.mxu1 %v4915_v27  ;;  %v500_v26 = vld [vmem:[#allocation5 + $0xb50] sm:$0xff] }
 0x1f1   :  { %3672 = vmatprep.subr.bf16.mxu0 %v4922_v28  ;;  %3836 = vmatprep.subr.bf16.mxu1 %v4924_v29  ;;  %v504_v27 = vld [vmem:[#allocation5 + $0xb70] sm:$0xff]  ;;  %v501_v28 = vld [vmem:[#allocation5 + $0xb58] sm:$0xff] }
 0x1f2   :  { %v505_v29 = vld [vmem:[#allocation5 + $0xb78] sm:$0xff]  ;;  %v4986_v32 = vcombine.high %v500_v26, %v504_v27  ;;  %v4985_v38 = vcombine.low %v500_v26, %v504_v27 }
 0x1f3   :  { %v4988_v34 = vcombine.high %v501_v28, %v505_v29  ;;  %v4987_v39 = vcombine.low %v501_v28, %v505_v29  ;;  %v564_v28 = vld [vmem:[#allocation5 + $0xd50] sm:$0xff] }
 0x1f4   :  { %3673 = vmatpush1.bf16.msra.mxu0 %v4921_v55  ;;  %3837 = vmatpush1.bf16.msra.mxu1 %v4923_v35  ;;  %v508_v55 = vld [vmem:[#allocation5 + $0xb90] sm:$0xff] }
 0x1f5   :  { %3674 = vmatprep.subr.bf16.mxu0 %v4930_v63  ;;  %3838 = vmatprep.subr.bf16.mxu1 %v4932_v37  ;;  %v512_v35 = vld [vmem:[#allocation5 + $0xbb0] sm:$0xff]  ;;  %v509_v63 = vld [vmem:[#allocation5 + $0xb98] sm:$0xff] }
 0x1f6   :  { %v513_v37 = vld [vmem:[#allocation5 + $0xbb8] sm:$0xff]  ;;  %v4994_v40 = vcombine.high %v508_v55, %v512_v35  ;;  %v4993_v48 = vcombine.low %v508_v55, %v512_v35  ;;  %v568_v29 = vld [vmem:[#allocation5 + $0xd70] sm:$0xff] }
 0x1f7   :  { %v4996_v41 = vcombine.high %v509_v63, %v513_v37  ;;  %v4995_v49 = vcombine.low %v509_v63, %v513_v37  ;;  %v5050_v55 = vcombine.high %v564_v28, %v568_v29  ;;  %v572_v63 = vld [vmem:[#allocation5 + $0xd90] sm:$0xff] }
 0x1f8   :  { %3675 = vmatpush1.bf16.msra.mxu0 %v4929_v42  ;;  %3839 = vmatpush1.bf16.msra.mxu1 %v4931_v45  ;;  %v516_v42 = vld [vmem:[#allocation5 + $0xbd0] sm:$0xff] }
 0x1f9   :  { %3676 = vmatprep.subr.bf16.mxu0 %v4938_v46  ;;  %3840 = vmatprep.subr.bf16.mxu1 %v4940_v47  ;;  %v520_v45 = vld [vmem:[#allocation5 + $0xbf0] sm:$0xff]  ;;  %v517_v46 = vld [vmem:[#allocation5 + $0xbd8] sm:$0xff] }
 0x1fa   :  { %v521_v47 = vld [vmem:[#allocation5 + $0xbf8] sm:$0xff]  ;;  %v5002_v50 = vcombine.high %v516_v42, %v520_v45  ;;  %v5001_v57 = vcombine.low %v516_v42, %v520_v45  ;;  %v576_v37 = vld [vmem:[#allocation5 + $0xdb0] sm:$0xff] }
 0x1fb   :  { %v5004_v52 = vcombine.high %v517_v46, %v521_v47  ;;  %v5003_v58 = vcombine.low %v517_v46, %v521_v47  ;;  %v5058_v42 = vcombine.high %v572_v63, %v576_v37  ;;  %v580_v47 = vld [vmem:[#allocation5 + $0xdd0] sm:$0xff] }
 0x1fc   :  { %3677 = vmatpush1.bf16.msra.mxu0 %v4937_v54  ;;  %3841 = vmatpush1.bf16.msra.mxu1 %v4939_v16  ;;  %v524_v54 = vld [vmem:[#allocation5 + $0xc10] sm:$0xff] }
 0x1fd   :  { %3678 = vmatprep.subr.bf16.mxu0 %v4946_v56  ;;  %3842 = vmatprep.subr.bf16.mxu1 %v4948_v9  ;;  %v528_v16 = vld [vmem:[#allocation5 + $0xc30] sm:$0xff]  ;;  %v525_v56 = vld [vmem:[#allocation5 + $0xc18] sm:$0xff] }
 0x1fe   :  { %v529_v9 = vld [vmem:[#allocation5 + $0xc38] sm:$0xff]  ;;  %v5010_v23 = vcombine.high %v524_v54, %v528_v16  ;;  %v5009_v1 = vcombine.low %v524_v54, %v528_v16 }
 0x1ff   :  { %v5012_v60 = vcombine.high %v525_v56, %v529_v9  ;;  %v5011_v53 = vcombine.low %v525_v56, %v529_v9  ;;  %v585_v54 = vld [vmem:[#allocation5 + $0xdf8] sm:$0xff]  ;;  %v5057_v9 = vcombine.low %v572_v63, %v576_v37 }
 0x200   :  { %3679 = vmatpush1.bf16.msra.mxu0 %v4945_v61  ;;  %3843 = vmatpush1.bf16.msra.mxu1 %v4947_v25  ;;  %v532_v61 = vld [vmem:[#allocation5 + $0xc50] sm:$0xff] }
 0x201   :  { %3680 = vmatprep.subr.bf16.mxu0 %v4954_v62  ;;  %3844 = vmatprep.subr.bf16.mxu1 %v4956_v0  ;;  %v536_v25 = vld [vmem:[#allocation5 + $0xc70] sm:$0xff]  ;;  %v533_v62 = vld [vmem:[#allocation5 + $0xc58] sm:$0xff] }
 0x202   :  { %v537_v0 = vld [vmem:[#allocation5 + $0xc78] sm:$0xff]  ;;  %v5018_v3 = vcombine.high %v532_v61, %v536_v25  ;;  %v5017_v8 = vcombine.low %v532_v61, %v536_v25 }
 0x203   :  { %v5020_v4 = vcombine.high %v533_v62, %v537_v0  ;;  %v5019_v43 = vcombine.low %v533_v62, %v537_v0  ;;  %v588_v62 = vld [vmem:[#allocation5 + $0xe10] sm:$0xff] }
 0x204   :  { %3681 = vmatpush1.bf16.msra.mxu0 %v4953_v5  ;;  %3845 = vmatpush1.bf16.msra.mxu1 %v4955_v6  ;;  %v540_v5 = vld [vmem:[#allocation5 + $0xc90] sm:$0xff] }
 0x205   :  { %3682 = vmatprep.subr.bf16.mxu0 %v4962_v7  ;;  %3846 = vmatprep.subr.bf16.mxu1 %v4964_v36  ;;  %v544_v6 = vld [vmem:[#allocation5 + $0xcb0] sm:$0xff]  ;;  %v541_v7 = vld [vmem:[#allocation5 + $0xc98] sm:$0xff] }
 0x206   :  { %v545_v36 = vld [vmem:[#allocation5 + $0xcb8] sm:$0xff]  ;;  %v5026_v10 = vcombine.high %v540_v5, %v544_v6  ;;  %v5025_v17 = vcombine.low %v540_v5, %v544_v6  ;;  %v592_v0 = vld [vmem:[#allocation5 + $0xe30] sm:$0xff] }
 0x207   :  { %v5028_v12 = vcombine.high %v541_v7, %v545_v36  ;;  %v5074_v5 = vcombine.high %v588_v62, %v592_v0 }
 0x208   :  { %3683 = vmatpush1.bf16.msra.mxu0 %v4961_v13  ;;  %3847 = vmatpush1.bf16.msra.mxu1 %v4963_v33  ;;  %v548_v13 = vld [vmem:[#allocation5 + $0xcd0] sm:$0xff] }
 0x209   :  { %3684 = vmatprep.subr.bf16.mxu0 %v4970_v14  ;;  %3848 = vmatprep.subr.bf16.mxu1 %v4972_v15  ;;  %v552_v33 = vld [vmem:[#allocation5 + $0xcf0] sm:$0xff]  ;;  %v549_v14 = vld [vmem:[#allocation5 + $0xcd8] sm:$0xff] }
 0x20a   :  { %v553_v15 = vld [vmem:[#allocation5 + $0xcf8] sm:$0xff]  ;;  %v5034_v18 = vcombine.high %v548_v13, %v552_v33 }
 0x20b   :  { %v5036_v19 = vcombine.high %v549_v14, %v553_v15  ;;  %v5035_v26 = vcombine.low %v549_v14, %v553_v15  ;;  %v604_v14 = vld [vmem:[#allocation5 + $0xe90] sm:$0xff] }
 0x20c   :  { %3685 = vmatpush1.bf16.msra.mxu0 %v4969_v59  ;;  %3849 = vmatpush1.bf16.msra.mxu1 %v4971_v20  ;;  %v560_v59 = vld [vmem:[#allocation5 + $0xd30] sm:$0xff]  ;;  %v557_v20 = vld [vmem:[#allocation5 + $0xd18] sm:$0xff] }
 0x20d   :  { %3686 = vmatprep.subr.bf16.mxu0 %v4978_v22  ;;  %3850 = vmatprep.subr.bf16.mxu1 %v4980_v24  ;;  %v561_v22 = vld [vmem:[#allocation5 + $0xd38] sm:$0xff]  ;;  %v5033_v24 = vcombine.low %v548_v13, %v552_v33  ;;  %v5042_v27 = vcombine.high %v556_v51, %v560_v59  ;;  %v608_v15 = vld [vmem:[#allocation5 + $0xeb0] sm:$0xff] }
 0x210   :  { %3687 = vmatpush1.bf16.msra.mxu0 %v4977_v30  ;;  %3851 = vmatpush1.bf16.msra.mxu1 %v4979_v31  ;;  %v565_v30 = vld [vmem:[#allocation5 + $0xd58] sm:$0xff] }
 0x211   :  { %3688 = vmatprep.subr.bf16.mxu0 %v4986_v32  ;;  %3852 = vmatprep.subr.bf16.mxu1 %v4988_v34  ;;  %v569_v31 = vld [vmem:[#allocation5 + $0xd78] sm:$0xff]  ;;  %v5041_v32 = vcombine.low %v556_v51, %v560_v59  ;;  %v5043_v34 = vcombine.low %v557_v20, %v561_v22  ;;  %v5090_v51 = vcombine.high %v604_v14, %v608_v15 }
 0x212   :  { %v5052_v35 = vcombine.high %v565_v30, %v569_v31 }
 0x214   :  { %3689 = vmatpush1.bf16.msra.mxu0 %v4985_v38  ;;  %3853 = vmatpush1.bf16.msra.mxu1 %v4987_v39  ;;  %v573_v38 = vld [vmem:[#allocation5 + $0xd98] sm:$0xff] }
 0x215   :  { %3690 = vmatprep.subr.bf16.mxu0 %v4994_v40  ;;  %3854 = vmatprep.subr.bf16.mxu1 %v4996_v41  ;;  %v577_v39 = vld [vmem:[#allocation5 + $0xdb8] sm:$0xff]  ;;  %v5049_v40 = vcombine.low %v564_v28, %v568_v29  ;;  %v5051_v41 = vcombine.low %v565_v30, %v569_v31  ;;  %v620_v30 = vld [vmem:[#allocation5 + $0xf10] sm:$0xff] }
 0x216   :  { %v5060_v46 = vcombine.high %v573_v38, %v577_v39  ;;  %v624_v31 = vld [vmem:[#allocation5 + $0xf30] sm:$0xff] }
 0x217   :  { %v5106_v63 = vcombine.high %v620_v30, %v624_v31 }
 0x218   :  { %3691 = vmatpush1.bf16.msra.mxu0 %v4993_v48  ;;  %3855 = vmatpush1.bf16.msra.mxu1 %v4995_v49  ;;  %v584_v48 = vld [vmem:[#allocation5 + $0xdf0] sm:$0xff] }
 0x219   :  { %3692 = vmatprep.subr.bf16.mxu0 %v5002_v50  ;;  %3856 = vmatprep.subr.bf16.mxu1 %v5004_v52  ;;  %v581_v52 = vld [vmem:[#allocation5 + $0xdd8] sm:$0xff] }
 0x21a   :  { %v5068_v25 = vcombine.high %v581_v52, %v585_v54 }
 0x21c   :  { %3693 = vmatpush1.bf16.msra.mxu0 %v5001_v57  ;;  %3857 = vmatpush1.bf16.msra.mxu1 %v5003_v58 }
 0x21d   :  { %3703 = vmatprep.subr.bf16.mxu0 %v5010_v23  ;;  %3867 = vmatprep.subr.bf16.mxu1 %v5012_v60  ;;  %v5059_v23 = vcombine.low %v573_v38, %v577_v39  ;;  %v5066_v60 = vcombine.high %v580_v47, %v584_v48  ;;  %v628_v38 = vld [vmem:[#allocation5 + $0xf50] sm:$0xff] }
 0x21e   :  { %v632_v39 = vld [vmem:[#allocation5 + $0xf70] sm:$0xff] }
 0x21f   :  { %3695 = vmatmul.mubr.bf16.vlgmr.msra.gmra.mrb[4].mxu0 %v5721_v2  ;;  %3859 = vmatmul.mubr.bf16.vlgmr.msra.gmra.mrb[4].mxu1 %v5721_v2  ;;  %v5027_v2 = vcombine.low %v541_v7, %v545_v36  ;;  %v596_v7 = vld [vmem:[#allocation5 + $0xe50] sm:$0xff] }
 0x220   :  { %3704 = vmatpush1.bf16.msra.mxu0 %v5009_v1  ;;  %3868 = vmatpush1.bf16.msra.mxu1 %v5011_v53  ;;  %v589_v1 = vld [vmem:[#allocation5 + $0xe18] sm:$0xff]  ;;  %v600_v36 = vld [vmem:[#allocation5 + $0xe70] sm:$0xff] }
 0x221   :  { %3705 = vmatprep.subr.bf16.mxu0 %v5018_v3  ;;  %3869 = vmatprep.subr.bf16.mxu1 %v5020_v4  ;;  %v593_v53 = vld [vmem:[#allocation5 + $0xe38] sm:$0xff]  ;;  %v5065_v3 = vcombine.low %v580_v47, %v584_v48  ;;  %v5067_v4 = vcombine.low %v581_v52, %v585_v54  ;;  %v5082_v13 = vcombine.high %v596_v7, %v600_v36  ;;  %v636_v52 = vld [vmem:[#allocation5 + $0xf90] sm:$0xff] }
 0x222   :  { %3735 = vmatprep.mubr.bf16.mxu0 %v5723_v11  ;;  %3899 = vmatprep.mubr.bf16.mxu1 %v5723_v11  ;;  %v5044_v11 = vcombine.high %v557_v20, %v561_v22  ;;  %v5076_v6 = vcombine.high %v589_v1, %v593_v53  ;;  %v612_v20 = vld [vmem:[#allocation5 + $0xed0] sm:$0xff]  ;;  %v5114_v47 = vcombine.high %v628_v38, %v632_v39 }
 0x223   :  { %v616_v22 = vld [vmem:[#allocation5 + $0xef0] sm:$0xff] }
 0x224   :  { %3706 = vmatpush1.bf16.msra.mxu0 %v5017_v8  ;;  %3870 = vmatpush1.bf16.msra.mxu1 %v5019_v43  ;;  %v597_v8 = vld [vmem:[#allocation5 + $0xe58] sm:$0xff]  ;;  %v5098_v28 = vcombine.high %v612_v20, %v616_v22  ;;  %v640_v54 = vld [vmem:[#allocation5 + $0xfb0] sm:$0xff] }
 0x225   :  { %3707 = vmatprep.subr.bf16.mxu0 %v5026_v10  ;;  %3871 = vmatprep.subr.bf16.mxu1 %v5028_v12  ;;  %v601_v43 = vld [vmem:[#allocation5 + $0xe78] sm:$0xff]  ;;  %v5073_v10 = vcombine.low %v588_v62, %v592_v0  ;;  %v5075_v12 = vcombine.low %v589_v1, %v593_v53  ;;  %v644_v0 = vld [vmem:[#allocation5 + $0xfd0] sm:$0xff] }
 0x226   :  { %v5084_v33 = vcombine.high %v597_v8, %v601_v43  ;;  %v648_v1 = vld [vmem:[#allocation5 + $0xff0] sm:$0xff] }
 0x228   :  { %3708 = vmatpush1.bf16.msra.mxu0 %v5025_v17  ;;  %3872 = vmatpush1.bf16.msra.mxu1 %v5027_v2  ;;  %v605_v17 = vld [vmem:[#allocation5 + $0xe98] sm:$0xff] }
 0x229   :  { %3709 = vmatprep.subr.bf16.mxu0 %v5034_v18  ;;  %3873 = vmatprep.subr.bf16.mxu1 %v5036_v19  ;;  %v609_v2 = vld [vmem:[#allocation5 + $0xeb8] sm:$0xff]  ;;  %v5081_v18 = vcombine.low %v596_v7, %v600_v36  ;;  %v5083_v19 = vcombine.low %v597_v8, %v601_v43  ;;  %v5130_v36 = vcombine.high %v644_v0, %v648_v1 }
 0x22a   :  { %v5092_v59 = vcombine.high %v605_v17, %v609_v2 }
 0x22c   :  { %3710 = vmatpush1.bf16.msra.mxu0 %v5033_v24  ;;  %3874 = vmatpush1.bf16.msra.mxu1 %v5035_v26  ;;  %v613_v24 = vld [vmem:[#allocation5 + $0xed8] sm:$0xff] }
 0x22d   :  { %3711 = vmatprep.subr.bf16.mxu0 %v5042_v27  ;;  %3875 = vmatprep.subr.bf16.mxu1 %v5044_v11  ;;  %v617_v26 = vld [vmem:[#allocation5 + $0xef8] sm:$0xff]  ;;  %v5089_v27 = vcombine.low %v604_v14, %v608_v15  ;;  %v5091_v11 = vcombine.low %v605_v17, %v609_v2  ;;  %v5356_v14 = vld [vmem:[#allocation8 + $0xc0] sm:$0xff]  }
 0x22e   :  { %v5100_v29 = vcombine.high %v613_v24, %v617_v26  ;;  %v5357_v2 = vld [vmem:[#allocation8] sm:$0xff]  }
 0x230   :  { %3712 = vmatpush1.bf16.msra.mxu0 %v5041_v32  ;;  %3876 = vmatpush1.bf16.msra.mxu1 %v5043_v34  ;;  %v621_v32 = vld [vmem:[#allocation5 + $0xf18] sm:$0xff] }
 0x231   :  { %3713 = vmatprep.subr.bf16.mxu0 %v5050_v55  ;;  %3877 = vmatprep.subr.bf16.mxu1 %v5052_v35  ;;  %v625_v34 = vld [vmem:[#allocation5 + $0xf38] sm:$0xff]  ;;  %v5097_v55 = vcombine.low %v612_v20, %v616_v22  ;;  %v5099_v35 = vcombine.low %v613_v24, %v617_v26  ;;  %v5362_v20 = vld [vmem:[#allocation8 + $0x88] sm:$0xff]  }
 0x232   :  { %v5749_v45 = vpop.f32.mrb[0].mxu0  ;;  %v5751_v49 = vpop.f32.mrb[0].mxu1  ;;  %v5108_v37 = vcombine.high %v621_v32, %v625_v34  ;;  %v5363_v22 = vld [vmem:[#allocation8 + $0x50] sm:$0xff]  }
 0x233   :  { %v5753_v50 = vpop.f32.mrb[1].mxu0  ;;  %v5755_v16 = vpop.f32.mrb[1].mxu1  ;;  %v5364_v24 = vld [vmem:[#allocation8 + $0xd0] sm:$0xff]  }
 0x234   :  { %v3413_v56 = vpop.f32.mrb[2].mxu0  ;;  %3714 = vmatpush1.bf16.msra.mxu0 %v5049_v40  ;;  %v3577_v57 = vpop.f32.mrb[2].mxu1  ;;  %3878 = vmatpush1.bf16.msra.mxu1 %v5051_v41  ;;  %v629_v40 = vld [vmem:[#allocation5 + $0xf58] sm:$0xff] }
 0x235   :  { %v3414_v58 = vpop.f32.mrb[3].mxu0  ;;  %3715 = vmatprep.subr.bf16.mxu0 %v5058_v42  ;;  %v3578_v61 = vpop.f32.mrb[3].mxu1  ;;  %3879 = vmatprep.subr.bf16.mxu1 %v5060_v46  ;;  %v633_v41 = vld [vmem:[#allocation5 + $0xf78] sm:$0xff]  ;;  %v5105_v42 = vcombine.low %v620_v30, %v624_v31  ;;  %v5107_v46 = vcombine.low %v621_v32, %v625_v34  ;;  %v658_v56 = vsub.s32 1, %v5660_v44  ;;  %v5371_v30 = vld [vmem:[#allocation8 + $0x60] sm:$0xff]   ;;  %v654_v34 = vsub.s32 0, %v5660_v44 }
 0x236   :  { %v5116_v48 = vcombine.high %v629_v40, %v633_v41  ;;  %v641_v57 = vld [vmem:[#allocation5 + $0xfb8] sm:$0xff]  ;;  %v5758_v58 = vld [vmem:[#allocation7] sm:$0xff]  ;;  %v5115_v61 = vcombine.low %v629_v40, %v633_v41  ;;  %v5372_v31 = vld [vmem:[#allocation8 + $0xe0] sm:$0xff]  }
 0x237   :  { %v659_v53 = vrot.slane %v5758_v58, %v658_v56  ;;  %v5365_v26 = vld [vmem:[#allocation8 + $0x10] sm:$0xff]   ;;  %v5373_v32 = vld [vmem:[#allocation8 + $0x20] sm:$0xff]   ;;  %v5378_v40 = vld [vmem:[#allocation8 + $0xa8] sm:$0xff]  }
 0x238   :  { %3716 = vmatpush1.bf16.msra.mxu0 %v5057_v9  ;;  %3880 = vmatpush1.bf16.msra.mxu1 %v5059_v23  ;;  %v637_v9 = vld [vmem:[#allocation5 + $0xf98] sm:$0xff]  ;;  %v666_v23 = vsub.s32 3, %v5660_v44 }
 0x239   :  { %3717 = vmatprep.subr.bf16.mxu0 %v5066_v60  ;;  %3881 = vmatprep.subr.bf16.mxu1 %v5068_v25  ;;  %v5113_v60 = vcombine.low %v628_v38, %v632_v39  ;;  %v5122_v25 = vcombine.high %v636_v52, %v640_v54  ;;  %v5124_v62 = vcombine.high %v637_v9, %v641_v57  ;;  %v5377_v38 = vld [vmem:[#allocation8 + $0x28] sm:$0xff]   ;;  %v5379_v41 = vld [vmem:[#allocation8 + $0x70] sm:$0xff]  }
 0x23a   :  { %v5123_v7 = vcombine.low %v637_v9, %v641_v57  ;;  %v5287_v43 = vadd.f32 %v5753_v50, %v659_v53  ;;  %v655_v39 = vrot.slane %v5758_v58, %v654_v34  ;;  %v5384_v9 = vld [vmem:[#allocation8 + $0xf8] sm:$0xff]   ;;  %v5391_v53 = vld [vmem:[#allocation8 + $0x148] sm:$0xff]  }
 0x23b   :  { %v5385_v57 = vld [vmem:[#allocation8 + $0x38] sm:$0xff]  }
 0x23c   :  { %3718 = vmatpush1.bf16.msra.mxu0 %v5065_v3  ;;  %3882 = vmatpush1.bf16.msra.mxu1 %v5067_v4  ;;  %v645_v3 = vld [vmem:[#allocation5 + $0xfd8] sm:$0xff]  ;;  %v3909_v15 = vmax.f32 %v5287_v43, 0.0  ;;  %v5399_v43 = vld [vmem:[#allocation8 + $0x158] sm:$0xff]  }
 0x23d   :  { %3719 = vmatprep.subr.bf16.mxu0 %v5074_v5  ;;  %3883 = vmatprep.subr.bf16.mxu1 %v5076_v6  ;;  %v649_v4 = vld [vmem:[#allocation5 + $0xff8] sm:$0xff]  ;;  %v667_v5 = vrot.slane %v5758_v58, %v666_v23  ;;  %v5121_v6 = vcombine.low %v636_v52, %v640_v54  ;;  %v5383_v54 = vld [vmem:[#allocation8 + $0x78] sm:$0xff]  }
 0x23e   :  { %v5132_v8 = vcombine.high %v645_v3, %v649_v4  ;;  %v3917_v50 = vpack.c.bf16 %v3909_v15, %v3909_v15  ;;  %v5382_v52 = vld [vmem:[#allocation8 + $0xb0] sm:$0xff]   ;;  %v5405_v15 = vld [vmem:[#allocation8 + $0x120] sm:$0xff]  }
 0x240   :  { %3720 = vmatpush1.bf16.msra.mxu0 %v5073_v10  ;;  %3884 = vmatpush1.bf16.msra.mxu1 %v5075_v12  ;;  %v5289_v10 = vadd.f32 %v5755_v16, %v667_v5  ;;  %v5129_v12 = vcombine.low %v644_v0, %v648_v1  ;;  %v5360_v16 = vld [vmem:[#allocation8 + $0xc8] sm:$0xff]   ;;  %v5390_v1 = vld [vmem:[#allocation8 + $0x180] sm:$0xff]  }
 0x241   :  { %3721 = vmatprep.subr.bf16.mxu0 %v5082_v13  ;;  %3885 = vmatprep.subr.bf16.mxu1 %v5084_v33  ;;  %v5131_v13 = vcombine.low %v645_v3, %v649_v4  ;;  %v5355_v33 = vld [vmem:[#allocation8 + $0x40] sm:$0xff]   ;;  %v5392_v3 = vld [vmem:[#allocation8 + $0x1c8] sm:$0xff]  }
 0x242   :  { %v3911_v17 = vmax.f32 %v5289_v10, 0.0  ;;  %v5393_v4 = vld [vmem:[#allocation8 + $0x108] sm:$0xff]   ;;  %v5400_v10 = vld [vmem:[#allocation8 + $0x1d8] sm:$0xff]  }
 0x243   :  { %v5394_v5 = vld [vmem:[#allocation8 + $0x188] sm:$0xff]  }
 0x244   :  { %3722 = vmatpush1.bf16.msra.mxu0 %v5081_v18  ;;  %3886 = vmatpush1.bf16.msra.mxu1 %v5083_v19  ;;  %v5358_v18 = vld [vmem:[#allocation8 + $0x80] sm:$0xff]   ;;  %v5359_v19 = vld [vmem:[#allocation8 + $0x48] sm:$0xff]  }
 0x245   :  { %3723 = vmatprep.subr.bf16.mxu0 %v5090_v51  ;;  %3887 = vmatprep.subr.bf16.mxu1 %v5092_v59  ;;  %v3919_v51 = vpack.c.bf16 %v3911_v17, %v3911_v17  ;;  %v5361_v59 = vld [vmem:[#allocation8 + $0x8] sm:$0xff]   ;;  %v5406_v17 = vld [vmem:[#allocation8 + $0x1a0] sm:$0xff]  }
 0x248   :  { %3724 = vmatpush1.bf16.msra.mxu0 %v5089_v27  ;;  %3888 = vmatpush1.bf16.msra.mxu1 %v5091_v11  ;;  %v5366_v27 = vld [vmem:[#allocation8 + $0x90] sm:$0xff]   ;;  %v5367_v11 = vld [vmem:[#allocation8 + $0x58] sm:$0xff]  }
 0x249   :  { %3725 = vmatprep.subr.bf16.mxu0 %v5098_v28  ;;  %3889 = vmatprep.subr.bf16.mxu1 %v5100_v29  ;;  %v5368_v28 = vld [vmem:[#allocation8 + $0xd8] sm:$0xff]  }
 0x24a   :  { %v5370_v29 = vld [vmem:[#allocation8 + $0x98] sm:$0xff]  }
 0x24c   :  { %3726 = vmatpush1.bf16.msra.mxu0 %v5097_v55  ;;  %3890 = vmatpush1.bf16.msra.mxu1 %v5099_v35  ;;  %v5374_v55 = vld [vmem:[#allocation8 + $0xa0] sm:$0xff]   ;;  %v5375_v35 = vld [vmem:[#allocation8 + $0x68] sm:$0xff]  }
 0x24d   :  { %3727 = vmatprep.subr.bf16.mxu0 %v5106_v63  ;;  %3891 = vmatprep.subr.bf16.mxu1 %v5108_v37  ;;  %v662_v63 = vsub.s32 2, %v5660_v44  ;;  %v5376_v37 = vld [vmem:[#allocation8 + $0xe8] sm:$0xff]  }
 0x250   :  { %3728 = vmatpush1.bf16.msra.mxu0 %v5105_v42  ;;  %3892 = vmatpush1.bf16.msra.mxu1 %v5107_v46  ;;  %v663_v42 = vrot.slane %v5758_v58, %v662_v63  ;;  %v5380_v46 = vld [vmem:[#allocation8 + $0xf0] sm:$0xff]  }
 0x251   :  { %3729 = vmatprep.subr.bf16.mxu0 %v5114_v47  ;;  %3893 = vmatprep.subr.bf16.mxu1 %v5116_v48  ;;  %v5381_v47 = vld [vmem:[#allocation8 + $0x30] sm:$0xff]   ;;  %v5286_v48 = vadd.f32 %v5749_v45, %v655_v39  ;;  %v5389_v45 = vld [vmem:[#allocation8 + $0x100] sm:$0xff]  }
 0x252   :  { %v5288_v56 = vadd.f32 %v5751_v49, %v663_v42 }
 0x253   :  { %v3908_v23 = vmax.f32 %v5286_v48, 0.0 }
 0x254   :  { %3730 = vmatpush1.bf16.msra.mxu0 %v5113_v60  ;;  %3894 = vmatpush1.bf16.msra.mxu1 %v5115_v61  ;;  %v5386_v60 = vld [vmem:[#allocation8 + $0xb8] sm:$0xff]   ;;  %v5387_v61 = vld [vmem:[#allocation8 + $0x140] sm:$0xff]  }
 0x255   :  { %3731 = vmatprep.subr.bf16.mxu0 %v5122_v25  ;;  %3895 = vmatprep.subr.bf16.mxu1 %v5124_v62  ;;  %v3910_v25 = vmax.f32 %v5288_v56, 0.0  ;;  %v5388_v62 = vld [vmem:[#allocation8 + $0x1c0] sm:$0xff]   ;;  %v3916_v0 = vpack.c.bf16 %v3908_v23, %v3908_v23 }
 0x257   :  { %v3918_v49 = vpack.c.bf16 %v3910_v25, %v3910_v25  ;;  %v5133_v25 = vld [vmem:[#allocation10] ss:$0 sm:$0xff] }
 0x258   :  { %3732 = vmatpush1.bf16.msra.mxu0 %v5121_v6  ;;  %3896 = vmatpush1.bf16.msra.mxu1 %v5123_v7  ;;  %v5395_v6 = vld [vmem:[#allocation8 + $0x150] sm:$0xff]  }
 0x259   :  { %3733 = vmatprep.subr.bf16.mxu0 %v5130_v36  ;;  %3897 = vmatprep.subr.bf16.mxu1 %v5132_v8  ;;  %v5396_v7 = vld [vmem:[#allocation8 + $0x1d0] sm:$0xff]  }
 0x25a   :  { %v5397_v36 = vld [vmem:[#allocation8 + $0x110] sm:$0xff]  }
 0x25b   :  { %v5398_v8 = vld [vmem:[#allocation8 + $0x190] sm:$0xff]  }
 0x25c   :  { %3734 = vmatpush1.bf16.msra.mxu0 %v5129_v12  ;;  %3898 = vmatpush1.bf16.msra.mxu1 %v5131_v13  ;;  %v5401_v12 = vld [vmem:[#allocation8 + $0x118] sm:$0xff]  }
 0x25d   :  { %5198 = vmatprep.subr.bf16.mxu0 %v5355_v33  ;;  %5220 = vmatprep.subr.bf16.mxu1 %v5356_v14  ;;  %v5402_v13 = vld [vmem:[#allocation8 + $0x198] sm:$0xff]   ;;  %v5403_v33 = vld [vmem:[#allocation8 + $0x160] sm:$0xff]  }
 0x25e   :  { %v5404_v14 = vld [vmem:[#allocation8 + $0x1e0] sm:$0xff]  }
 0x25f   :  { %3736 = vmatmul.mubr.bf16.vlgmr.msra.gmra.mrb[4].mxu0 %v5731_v21  ;;  %3900 = vmatmul.mubr.bf16.vlgmr.msra.gmra.mrb[4].mxu1 %v5731_v21  ;;  %v5369_v21 = vld [vmem:[#allocation8 + $0x18] sm:$0xff]  }
 0x260   :  { %5199 = vmatpush3.bf16.msra.mxu0 %v5357_v2  ;;  %4475 = vmatprep.mubr.bf16.mxu0 %v3917_v50  ;;  %v5407_v2 = vld [vmem:[#allocation8 + $0x168] sm:$0xff]  }
 0x261   :  { %5221 = vmatpush3.bf16.msra.mxu1 %v5358_v18  ;;  %4515 = vmatprep.mubr.bf16.mxu1 %v3919_v51  ;;  %v5408_v18 = vld [vmem:[#allocation8 + $0x1e8] sm:$0xff]   ;;  %v5412_v51 = vld [vmem:[#allocation8 + $0x1f0] sm:$0xff]  }
 0x262   :  { %5200 = vmatprep.subr.bf16.mxu0 %v5359_v19  ;;  %5222 = vmatprep.subr.bf16.mxu1 %v5360_v16  ;;  %v5409_v19 = vld [vmem:[#allocation8 + $0x128] sm:$0xff]   ;;  %v5411_v16 = vld [vmem:[#allocation8 + $0x170] sm:$0xff]  }
 0x263   :  { %v5410_v50 = vld [vmem:[#allocation8 + $0x1a8] sm:$0xff]  }
 0x264   :  { %5201 = vmatpush3.bf16.msra.mxu0 %v5361_v59  ;;  %v5413_v59 = vld [vmem:[#allocation8 + $0x130] sm:$0xff]  }
 0x265   :  { %5223 = vmatpush3.bf16.msra.mxu1 %v5362_v20  ;;  %5202 = vmatprep.subr.bf16.mxu0 %v5363_v22  ;;  %v5414_v20 = vld [vmem:[#allocation8 + $0x1b0] sm:$0xff]   ;;  %v5415_v22 = vld [vmem:[#allocation8 + $0x178] sm:$0xff]  }
 0x266   :  { %5224 = vmatprep.subr.bf16.mxu1 %v5364_v24  ;;  %v5416_v24 = vld [vmem:[#allocation8 + $0x1f8] sm:$0xff]  }
 0x268   :  { %5203 = vmatpush3.bf16.msra.mxu0 %v5365_v26  ;;  %v5417_v26 = vld [vmem:[#allocation8 + $0x138] sm:$0xff]  }
 0x269   :  { %5225 = vmatpush3.bf16.msra.mxu1 %v5366_v27  ;;  %5204 = vmatprep.subr.bf16.mxu0 %v5367_v11  ;;  %v5418_v27 = vld [vmem:[#allocation8 + $0x1b8] sm:$0xff]   ;;  %v670_v11 = vsub.s32 4, %v5660_v44 }
 0x26a   :  { %5226 = vmatprep.subr.bf16.mxu1 %v5368_v28  ;;  %v678_v28 = vsub.s32 6, %v5660_v44 }
 0x26c   :  { %5205 = vmatpush3.bf16.msra.mxu0 %v5369_v21  ;;  %v674_v21 = vsub.s32 5, %v5660_v44 }
 0x26d   :  { %5227 = vmatpush3.bf16.msra.mxu1 %v5370_v29  ;;  %5206 = vmatprep.subr.bf16.mxu0 %v5371_v30  ;;  %v682_v29 = vsub.s32 7, %v5660_v44  ;;  %v671_v30 = vrot.slane %v5758_v58, %v670_v11 }
 0x26e   :  { %5228 = vmatprep.subr.bf16.mxu1 %v5372_v31  ;;  %v679_v31 = vrot.slane %v5758_v58, %v678_v28 }
 0x26f   :  { %v683_v34 = vrot.slane %v5758_v58, %v682_v29 }
 0x270   :  { %5207 = vmatpush3.bf16.msra.mxu0 %v5373_v32  ;;  %v675_v32 = vrot.slane %v5758_v58, %v674_v21 }
 0x271   :  { %5229 = vmatpush3.bf16.msra.mxu1 %v5374_v55  ;;  %5208 = vmatprep.subr.bf16.mxu0 %v5375_v35 }
 0x272   :  { %5230 = vmatprep.subr.bf16.mxu1 %v5376_v37 }
 0x274   :  { %5209 = vmatpush3.bf16.msra.mxu0 %v5377_v38 }
 0x275   :  { %5231 = vmatpush3.bf16.msra.mxu1 %v5378_v40  ;;  %5210 = vmatprep.subr.bf16.mxu0 %v5379_v41 }
 0x276   :  { %5232 = vmatprep.subr.bf16.mxu1 %v5380_v46 }
 0x278   :  { %5211 = vmatpush3.bf16.msra.mxu0 %v5381_v47 }
 0x279   :  { %5233 = vmatpush3.bf16.msra.mxu1 %v5382_v52  ;;  %5212 = vmatprep.subr.bf16.mxu0 %v5383_v54 }
 0x27a   :  { %5234 = vmatprep.subr.bf16.mxu1 %v5384_v9 }
 0x27c   :  { %5213 = vmatpush3.bf16.msra.mxu0 %v5385_v57 }
 0x27d   :  { %5235 = vmatpush3.bf16.msra.mxu1 %v5386_v60  ;;  %5242 = vmatprep.subr.bf16.mxu0 %v5387_v61 }
 0x27e   :  { %5264 = vmatprep.subr.bf16.mxu1 %v5388_v62 }
 0x27f   :  { %4476 = vmatmul.mubr.bf16.vlgmr.msra.gmra.mrb[8].mxu0 %v3916_v0 }
 0x280   :  { %4516 = vmatmul.mubr.bf16.vlgmr.msra.gmra.mrb[8].mxu1 %v3918_v49  ;;  %5243 = vmatpush3.bf16.msra.mxu0 %v5389_v45 }
 0x281   :  { %5265 = vmatpush3.bf16.msra.mxu1 %v5390_v1  ;;  %5244 = vmatprep.subr.bf16.mxu0 %v5391_v53 }
 0x282   :  { %5266 = vmatprep.subr.bf16.mxu1 %v5392_v3 }
 0x284   :  { %5245 = vmatpush3.bf16.msra.mxu0 %v5393_v4 }
 0x285   :  { %5267 = vmatpush3.bf16.msra.mxu1 %v5394_v5  ;;  %5246 = vmatprep.subr.bf16.mxu0 %v5395_v6 }
 0x286   :  { %5268 = vmatprep.subr.bf16.mxu1 %v5396_v7 }
 0x288   :  { %5247 = vmatpush3.bf16.msra.mxu0 %v5397_v36 }
 0x289   :  { %5269 = vmatpush3.bf16.msra.mxu1 %v5398_v8  ;;  %5248 = vmatprep.subr.bf16.mxu0 %v5399_v43 }
 0x28a   :  { %5270 = vmatprep.subr.bf16.mxu1 %v5400_v10 }
 0x28c   :  { %5249 = vmatpush3.bf16.msra.mxu0 %v5401_v12 }
 0x28d   :  { %5271 = vmatpush3.bf16.msra.mxu1 %v5402_v13  ;;  %5250 = vmatprep.subr.bf16.mxu0 %v5403_v33 }
 0x28e   :  { %5272 = vmatprep.subr.bf16.mxu1 %v5404_v14 }
 0x290   :  { %5251 = vmatpush3.bf16.msra.mxu0 %v5405_v15 }
 0x291   :  { %5273 = vmatpush3.bf16.msra.mxu1 %v5406_v17  ;;  %5252 = vmatprep.subr.bf16.mxu0 %v5407_v2 }
 0x292   :  { %5274 = vmatprep.subr.bf16.mxu1 %v5408_v18 }
 0x294   :  { %5253 = vmatpush3.bf16.msra.mxu0 %v5409_v19 }
 0x295   :  { %5275 = vmatpush3.bf16.msra.mxu1 %v5410_v50  ;;  %5254 = vmatprep.subr.bf16.mxu0 %v5411_v16 }
 0x296   :  { %5276 = vmatprep.subr.bf16.mxu1 %v5412_v51 }
 0x298   :  { %5255 = vmatpush3.bf16.msra.mxu0 %v5413_v59 }
 0x299   :  { %5277 = vmatpush3.bf16.msra.mxu1 %v5414_v20  ;;  %5256 = vmatprep.subr.bf16.mxu0 %v5415_v22 }
 0x29a   :  { %5278 = vmatprep.subr.bf16.mxu1 %v5416_v24 }
 0x29c   :  { %5257 = vmatpush3.bf16.msra.mxu0 %v5417_v26 }
 0x29d   :  { %5279 = vmatpush3.bf16.msra.mxu1 %v5418_v27 }
 0x332   :  { %v3737_v55 = vpop.f32.mrb[4].mxu0  ;;  %v3901_v63 = vpop.f32.mrb[4].mxu1 }
 0x333   :  { %v5290_v35 = vadd.f32 %v3737_v55, %v671_v30  ;;  %v3739_v37 = vpop.f32.mrb[5].mxu0  ;;  %v5292_v38 = vadd.f32 %v3901_v63, %v679_v31  ;;  %v3903_v40 = vpop.f32.mrb[5].mxu1 }
 0x334   :  { %v5291_v39 = vadd.f32 %v3739_v37, %v675_v32  ;;  %v3741_v41 = vpop.f32.mrb[6].mxu0  ;;  %v5293_v46 = vadd.f32 %v3903_v40, %v683_v34  ;;  %v3905_v47 = vpop.f32.mrb[6].mxu1 }
 0x335   :  { %v3912_v42 = vmax.f32 %v5290_v35, 0.0  ;;  %v3742_v44 = vpop.f32.mrb[7].mxu0  ;;  %v3914_v48 = vmax.f32 %v5292_v38, 0.0  ;;  %v3906_v54 = vpop.f32.mrb[7].mxu1 }
 0x336   :  { %v3913_v52 = vmax.f32 %v5291_v39, 0.0  ;;  %v3915_v56 = vmax.f32 %v5293_v46, 0.0 }
 0x337   :  { %v3920_v57 = vpack.c.bf16 %v3912_v42, %v3912_v42  ;;  %v3922_v58 = vpack.c.bf16 %v3914_v48, %v3914_v48 }
 0x338   :  { %v3921_v9 = vpack.c.bf16 %v3913_v52, %v3913_v52  ;;  %v3923_v23 = vpack.c.bf16 %v3915_v56, %v3915_v56 }
 0x33a   :  { %4555 = vmatprep.mubr.bf16.mxu0 %v3921_v9  ;;  %4595 = vmatprep.mubr.bf16.mxu1 %v3923_v23 }
 0x33b   :  { %4556 = vmatmul.mubr.bf16.vlgmr.msra.gmra.mrb[12].mxu0 %v3920_v57  ;;  %4596 = vmatmul.mubr.bf16.vlgmr.msra.gmra.mrb[12].mxu1 %v3922_v58 }
 0x352   :  { %v5214_v60 = vpop.f32.mrb[8].mxu0 }
 0x353   :  { %v5236_v61 = vpop.f32.mrb[8].mxu1  ;;  %v5215_v62 = vpop.f32.mrb[9].mxu0 }
 0x354   :  { %v5216_v45 = vadd.f32 %v5215_v62, %v5214_v60  ;;  %v5237_v0 = vpop.f32.mrb[9].mxu1  ;;  %v5217_v1 = vpop.f32.mrb[10].mxu0 }
 0x355   :  { %v5238_v53 = vadd.f32 %v5237_v0, %v5236_v61  ;;  %v5239_v49 = vpop.f32.mrb[10].mxu1  ;;  %v5218_v3 = vpop.f32.mrb[11].mxu0 }
 0x356   :  { %v4478_v4 = vadd.f32 %v5216_v45, %v5133_v25  ;;  %v5240_v5 = vpop.f32.mrb[11].mxu1 }
 0x358   :  { %v4518_v6 = vadd.f32 %v5238_v53, %v4478_v4 }
 0x40e   :  { %v5258_v7 = vpop.f32.mrb[12].mxu0  ;;  %v5280_v36 = vpop.f32.mrb[12].mxu1 }
 0x40f   :  { %v5259_v8 = vpop.f32.mrb[13].mxu0  ;;  %v5281_v10 = vpop.f32.mrb[13].mxu1 }
 0x410   :  { %v5260_v43 = vadd.f32 %v5259_v8, %v5258_v7  ;;  %v5261_v12 = vpop.f32.mrb[14].mxu0  ;;  %v5282_v13 = vadd.f32 %v5281_v10, %v5280_v36  ;;  %v5283_v33 = vpop.f32.mrb[14].mxu1 }
 0x411   :  { %v5262_v14 = vpop.f32.mrb[15].mxu0  ;;  %v5284_v17 = vpop.f32.mrb[15].mxu1 }
 0x412   :  { %v4558_v15 = vadd.f32 %v5260_v43, %v4518_v6 }
 0x414   :  { %v4598_v2 = vadd.f32 %v5282_v13, %v4558_v15 }
 0x416   :  { %4603 = vst [vmem:[#allocation11] sm:$0x3] %v4598_v2 }
 0x417   :  { %5540 = shalt.err (!%p5537_p2)
}
 0x418   :  { %s5541_s6 = scalar_lea.hbm %s5798_s5, 32 }
 0x419   :  { %p5542_p3 = scmp.ne.s32.totalorder %s5798_s5, %s5541_s6  ;;  %p5545_p4 = scmp.lt.u32.totalorder %s5541_s6, %s5798_s5 }
 0x41b   :  { %p5547_p5 = pnand %p5545_p4, %p5542_p3 }
 0x41d   :  { %5550 = shalt.err (!%p5547_p5)
}
 0x41e   :  { %4613 = dma.vmem_to_hbm [thread:$0]  %s4611_s28, 32, %s5798_s5, [#allocation4]  }
 0x41f   :  { %5557 = dma.done.wait [#allocation4], 32  }
 0x420   :  { %5558 = vsyncadd [#allocation4], 4294967264 }
 0x421   :  { %4617 = vsyncpa [#allocation3], 1 }
 0x422   :  { %4618 = vsyncpa [#allocation6], 1 }
 0x423   :  { %4619 = vsyncpa [#allocation9], 1 }
 0x424   :  { %4620 = vsyncpa [#allocation4], 1 }

// kernel: tpu_custom_call.1
= control target key start
LH: loop header
LB: loop body
LE: loop exit
PB: predicated region body
PF: predicated region fallthrough
CT: control target
= control target key end

     0   :  { %10 = vsyncpa [#allocation3], 0  ;;  %s5793_s0 = inlined_call_operand.hbm [shape: f32[2,1024], index: 0, kind: input, shape index: {}]   ;;  %s5794_s1 = inlined_call_operand.hbm [shape: bf16[1024,1024], index: 1, kind: input, shape index: {}]   ;;  %s5795_s2 = inlined_call_operand.hbm [shape: f32[1,1024], index: 2, kind: input, shape index: {}]   ;;  %s5796_s3 = inlined_call_operand.hbm [shape: bf16[1024,128], index: 3, kind: input, shape index: {}]   ;;  %s5797_s4 = inlined_call_operand.hbm [shape: f32[1,128], index: 4, kind: input, shape index: {}]   ;;  %s5798_s5 = inlined_call_operand.hbm [shape: f32[2,128], index: 5, kind: output, shape index: {}]  }
   0x1   :  { %11 = vsyncpa [#allocation6], 0 }
   0x2   :  { %12 = vsyncpa [#allocation9], 0 }
   0x3   :  { %13 = vsyncpa [#allocation4], 0  ;;  %s5559_s18 = smov [#allocation5]   ;;  %s5419_s22 = scalar_lea.hbm %s5794_s1, 65536 }
   0x4   :  { %s29_s19 = sshll.u32 %s5559_s18, 4  ;;  %p5420_p0 = scmp.ne.s32.totalorder %s5794_s1, %s5419_s22  ;;  %s30_s19 = int_to_ptr.vmem [resolvable:$true] %s29_s19 }
   0x5   :  { %p5423_p1 = scmp.lt.u32.totalorder %s5419_s22, %s5794_s1 }
   0x7   :  { %p5425_p2 = pnand %p5423_p1, %p5420_p0 }
   0x9   :  { %5428 = shalt.err (!%p5425_p2)
}
   0xa   :  { %s5429_s27 = scalar_lea.vmem %s30_s19, 65536  ;;  %p5434_p4 = scmp.lt.s32.totalorder %s30_s19, %s30_s19 }
   0xb   :  { %p5430_p3 = scmp.ne.s32.totalorder %s30_s19, %s5429_s27  ;;  %p5435_p5 = scmp.lt.s32.totalorder %s5429_s27, %s5429_s27 }
   0xd   :  { %p5436_p6 = por %p5435_p5, %p5434_p4 }
   0xf   :  { %p5437_p7 = pnand %p5436_p6, %p5430_p3 }
  0x11   :  { %5440 = shalt.err (!%p5437_p7)
}
  0x12   :  { %s5560_s28 = smov 512   ;;  %s5561_s29 = smov 32  }
  0x13   :  { %35 = dma.hbm_to_vmem [thread:$0]  %s5794_s1, 65536, %s30_s19, [#allocation6], %s5560_s28, %s5560_s28, %s5561_s29  }
  0x14   :  { %s5562_s7 = smov [#allocation8]   ;;  %s5441_s11 = scalar_lea.hbm %s5796_s3, 8192 }
  0x15   :  { %s51_s8 = sshll.u32 %s5562_s7, 4  ;;  %p5442_p8 = scmp.ne.s32.totalorder %s5796_s3, %s5441_s11  ;;  %s52_s8 = int_to_ptr.vmem [resolvable:$true] %s51_s8 }
  0x16   :  { %p5445_p9 = scmp.lt.u32.totalorder %s5441_s11, %s5796_s3 }
  0x18   :  { %p5447_p10 = pnand %p5445_p9, %p5442_p8 }
  0x1a   :  { %5450 = shalt.err (!%p5447_p10)
}
  0x1b   :  { %s5451_s16 = scalar_lea.vmem %s52_s8, 8192  ;;  %p5456_p12 = scmp.lt.s32.totalorder %s52_s8, %s52_s8 }
  0x1c   :  { %p5452_p11 = scmp.ne.s32.totalorder %s52_s8, %s5451_s16  ;;  %p5457_p13 = scmp.lt.s32.totalorder %s5451_s16, %s5451_s16 }
  0x1e   :  { %p5458_p0 = por %p5457_p13, %p5456_p12 }
  0x20   :  { %p5459_p1 = pnand %p5458_p0, %p5452_p11 }
  0x22   :  { %5462 = shalt.err (!%p5459_p1)
}
  0x23   :  { %s5563_s1 = smov 64   ;;  %s5564_s17 = smov 4  }
  0x24   :  { %57 = dma.hbm_to_vmem [thread:$0]  %s5796_s3, 8192, %s52_s8, [#allocation9], %s5563_s1, %s5563_s1, %s5564_s17  }
  0x25   :  { %s5565_s20 = smov [#allocation2]   ;;  %s5566_s22 = smov [#allocation7]  }
  0x26   :  { %s20_s21 = sshll.u32 %s5565_s20, 4  ;;  %s42_s23 = sshll.u32 %s5566_s22, 4  ;;  %s21_s21 = int_to_ptr.vmem [resolvable:$true] %s20_s21  ;;  %s43_s23 = int_to_ptr.vmem [resolvable:$true] %s42_s23 }
  0x27   :  { %s5463_s26 = scalar_lea.hbm %s5793_s0, 256 }
  0x28   :  { %p5464_p2 = scmp.ne.s32.totalorder %s5793_s0, %s5463_s26  ;;  %p5467_p3 = scmp.lt.u32.totalorder %s5463_s26, %s5793_s0 }
  0x2a   :  { %p5469_p4 = pnand %p5467_p3, %p5464_p2 }
  0x2c   :  { %5472 = shalt.err (!%p5469_p4)
}
  0x2d   :  { %s5473_s3 = scalar_lea.vmem %s21_s21, 256  ;;  %p5478_p6 = scmp.lt.s32.totalorder %s21_s21, %s21_s21 }
  0x2e   :  { %p5474_p5 = scmp.ne.s32.totalorder %s21_s21, %s5473_s3  ;;  %p5479_p7 = scmp.lt.s32.totalorder %s5473_s3, %s5473_s3 }
  0x30   :  { %p5480_p8 = por %p5479_p7, %p5478_p6 }
  0x32   :  { %p5481_p9 = pnand %p5480_p8, %p5474_p5 }
  0x34   :  { %5484 = shalt.err (!%p5481_p9)
}
  0x35   :  { %23 = dma.hbm_to_vmem [thread:$0]  %s5793_s0, 256, %s21_s21, [#allocation3]  }
  0x36   :  { %s5485_s10 = scalar_lea.hbm %s5795_s2, 128 }
  0x37   :  { %p5486_p10 = scmp.ne.s32.totalorder %s5795_s2, %s5485_s10  ;;  %p5489_p11 = scmp.lt.u32.totalorder %s5485_s10, %s5795_s2 }
  0x39   :  { %p5491_p12 = pnand %p5489_p11, %p5486_p10 }
  0x3b   :  { %5494 = shalt.err (!%p5491_p12)
}
  0x3c   :  { %s5495_s15 = scalar_lea.vmem %s43_s23, 128  ;;  %p5500_p0 = scmp.lt.s32.totalorder %s43_s23, %s43_s23 }
  0x3d   :  { %p5496_p13 = scmp.ne.s32.totalorder %s43_s23, %s5495_s15  ;;  %p5501_p1 = scmp.lt.s32.totalorder %s5495_s15, %s5495_s15 }
  0x3f   :  { %p5502_p2 = por %p5501_p1, %p5500_p0 }
  0x41   :  { %p5503_p3 = pnand %p5502_p2, %p5496_p13 }
  0x43   :  { %5506 = shalt.err (!%p5503_p3)
}
  0x44   :  { %45 = dma.hbm_to_vmem [thread:$0]  %s5795_s2, 128, %s43_s23, [#allocation6]  }
  0x45   :  { %s5567_s1 = smov [#allocation10]   ;;  %s5507_s20 = scalar_lea.hbm %s5797_s4, 16 }
  0x46   :  { %s64_s17 = sshll.u32 %s5567_s1, 4  ;;  %p5508_p4 = scmp.ne.s32.totalorder %s5797_s4, %s5507_s20  ;;  %s65_s17 = int_to_ptr.vmem [resolvable:$true] %s64_s17 }
  0x47   :  { %p5511_p5 = scmp.lt.u32.totalorder %s5507_s20, %s5797_s4 }
  0x49   :  { %p5513_p6 = pnand %p5511_p5, %p5508_p4 }
  0x4b   :  { %5516 = shalt.err (!%p5513_p6)
}
  0x4c   :  { %s5517_s26 = scalar_lea.vmem %s65_s17, 16  ;;  %s5521_s2 = scalar_lea.vmem %s65_s17, 32 }
  0x4d   :  { %p5518_p7 = scmp.ne.s32.totalorder %s65_s17, %s5517_s26  ;;  %p5522_p8 = scmp.lt.s32.totalorder %s65_s17, %s65_s17 }
  0x4e   :  { %p5523_p9 = scmp.lt.s32.totalorder %s5521_s2, %s5517_s26 }
  0x50   :  { %p5524_p10 = por %p5523_p9, %p5522_p8 }
  0x52   :  { %p5525_p11 = pnand %p5524_p10, %p5518_p7 }
  0x54   :  { %5528 = shalt.err (!%p5525_p11)
}
  0x55   :  { %67 = dma.hbm_to_vmem [thread:$0]  %s5797_s4, 16, %s65_s17, [#allocation9]  }
  0x56   :  { %5551 = dma.done.wait [#allocation3], 256  }
  0x57   :  { %5552 = vsyncadd [#allocation3], 4294967040 }
  0x58   :  { %5553 = dma.done.wait [#allocation6], 65664  }
  0x59   :  { %5554 = vsyncadd [#allocation6], 4294901632 }
  0x5a   :  { %5555 = dma.done.wait [#allocation9], 8208  }
  0x5b   :  { %5556 = vsyncadd [#allocation9], 4294959088  ;;  %v138_v0 = vld [vmem:[#allocation5] sm:$0xff]  ;;  %v139_v2 = vld [vmem:[#allocation5 + $0x8] sm:$0xff]  ;;  %v5568_v32 = vmov 1983009808   ;;  %v92_v34 = vlaneseq }
  0x5c   :  { %v142_v1 = vld [vmem:[#allocation5 + $0x20] sm:$0xff]  ;;  %v143_v4 = vld [vmem:[#allocation5 + $0x28] sm:$0xff]  ;;  %v90_v33 = vunpack.c.l.s4 %v5568_v32  ;;  %v5665_v59 = vld [vmem:[#allocation2] sm:$0xff]  ;;  %s5569_s4 = smov [#allocation11]  }
  0x5d   :  { %v4622_v3 = vcombine.high %v138_v0, %v142_v1  ;;  %v4621_v5 = vcombine.low %v138_v0, %v142_v1  ;;  %v146_v6 = vld [vmem:[#allocation5 + $0x40] sm:$0xff]  ;;  %v4624_v8 = vcombine.high %v139_v2, %v143_v4  ;;  %v4623_v9 = vcombine.low %v139_v2, %v143_v4  ;;  %v147_v11 = vld [vmem:[#allocation5 + $0x48] sm:$0xff]  ;;  %s4610_s28 = sshll.u32 %s5569_s4, 4  ;;  %s4611_s28 = int_to_ptr.vmem [resolvable:$true] %s4610_s28 }
  0x5e   :  { %v150_v7 = vld [vmem:[#allocation5 + $0x60] sm:$0xff]  ;;  %v151_v12 = vld [vmem:[#allocation5 + $0x68] sm:$0xff]  ;;  %v91_v43 = vunpack.c.0.s8 %v90_v33  ;;  %v5660_v44 = vshrl.u32 %v92_v34, 7  ;;  %s5529_s29 = scalar_lea.vmem %s4611_s28, 32  ;;  %p5534_p13 = scmp.lt.s32.totalorder %s4611_s28, %s4611_s28 }
  0x5f   :  { %v4630_v10 = vcombine.high %v146_v6, %v150_v7  ;;  %v154_v13 = vld [vmem:[#allocation5 + $0x80] sm:$0xff]  ;;  %3252 = vmatprep.subr.bf16.mxu0 %v4622_v3  ;;  %v4632_v14 = vcombine.high %v147_v11, %v151_v12  ;;  %v155_v16 = vld [vmem:[#allocation5 + $0x88] sm:$0xff]  ;;  %3416 = vmatprep.subr.bf16.mxu1 %v4624_v8  ;;  %v4629_v18 = vcombine.low %v146_v6, %v150_v7  ;;  %p5530_p12 = scmp.ne.s32.totalorder %s4611_s28, %s5529_s29  ;;  %p5535_p0 = scmp.lt.s32.totalorder %s5529_s29, %s5529_s29 }
  0x60   :  { %v158_v15 = vld [vmem:[#allocation5 + $0xa0] sm:$0xff]  ;;  %v159_v17 = vld [vmem:[#allocation5 + $0xa8] sm:$0xff]  ;;  %3253 = vmatpush1.bf16.msra.mxu0 %v4621_v5  ;;  %3417 = vmatpush1.bf16.msra.mxu1 %v4623_v9  ;;  %v4631_v19 = vcombine.low %v147_v11, %v151_v12  ;;  %v5663_v53 = vsub.s32 %v91_v43, %v5660_v44 }
  0x61   :  { %3254 = vmatprep.subr.bf16.mxu0 %v4630_v10  ;;  %v4638_v20 = vcombine.high %v154_v13, %v158_v15  ;;  %3418 = vmatprep.subr.bf16.mxu1 %v4632_v14  ;;  %v4640_v21 = vcombine.high %v155_v16, %v159_v17  ;;  %v162_v22 = vld [vmem:[#allocation5 + $0xc0] sm:$0xff]  ;;  %v163_v24 = vld [vmem:[#allocation5 + $0xc8] sm:$0xff]  ;;  %v4637_v26 = vcombine.low %v154_v13, %v158_v15  ;;  %p5536_p1 = por %p5535_p0, %p5534_p13 }
  0x62   :  { %v166_v23 = vld [vmem:[#allocation5 + $0xe0] sm:$0xff]  ;;  %v167_v25 = vld [vmem:[#allocation5 + $0xe8] sm:$0xff]  ;;  %v4639_v27 = vcombine.low %v155_v16, %v159_v17  ;;  %v5669_v63 = vrot.slane %v5665_v59, %v5663_v53 }
  0x63   :  { %v4646_v28 = vcombine.high %v162_v22, %v166_v23  ;;  %v4648_v29 = vcombine.high %v163_v24, %v167_v25  ;;  %v170_v30 = vld [vmem:[#allocation5 + $0x100] sm:$0xff]  ;;  %v171_v35 = vld [vmem:[#allocation5 + $0x108] sm:$0xff]  ;;  %v4645_v37 = vcombine.low %v162_v22, %v166_v23  ;;  %v4647_v38 = vcombine.low %v163_v24, %v167_v25  ;;  %p5537_p2 = pnand %p5536_p1, %p5530_p12 }
  0x64   :  { %3255 = vmatpush1.bf16.msra.mxu0 %v4629_v18  ;;  %3419 = vmatpush1.bf16.msra.mxu1 %v4631_v19  ;;  %v174_v31 = vld [vmem:[#allocation5 + $0x120] sm:$0xff]  ;;  %v175_v36 = vld [vmem:[#allocation5 + $0x128] sm:$0xff]  ;;  %v103_v3 = vcombine.high %v5669_v63, %v5669_v63 }
  0x65   :  { %3256 = vmatprep.subr.bf16.mxu0 %v4638_v20  ;;  %3420 = vmatprep.subr.bf16.mxu1 %v4640_v21  ;;  %v4654_v39 = vcombine.high %v170_v30, %v174_v31  ;;  %v4656_v40 = vcombine.high %v171_v35, %v175_v36  ;;  %v178_v41 = vld [vmem:[#allocation5 + $0x140] sm:$0xff]  ;;  %v179_v45 = vld [vmem:[#allocation5 + $0x148] sm:$0xff]  ;;  %v4653_v47 = vcombine.low %v170_v30, %v174_v31 }
  0x66   :  { %v182_v42 = vld [vmem:[#allocation5 + $0x160] sm:$0xff]  ;;  %v183_v46 = vld [vmem:[#allocation5 + $0x168] sm:$0xff]  ;;  %v4655_v48 = vcombine.low %v171_v35, %v175_v36  ;;  %v5673_v9 = vpack.c.bf16 %v103_v3, %v103_v3 }
  0x67   :  { %v4662_v49 = vcombine.high %v178_v41, %v182_v42  ;;  %v4664_v50 = vcombine.high %v179_v45, %v183_v46  ;;  %v186_v51 = vld [vmem:[#allocation5 + $0x180] sm:$0xff]  ;;  %v187_v54 = vld [vmem:[#allocation5 + $0x188] sm:$0xff]  ;;  %v4661_v56 = vcombine.low %v178_v41, %v182_v42  ;;  %v4663_v57 = vcombine.low %v179_v45, %v183_v46 }
  0x68   :  { %3257 = vmatpush1.bf16.msra.mxu0 %v4637_v26  ;;  %3421 = vmatpush1.bf16.msra.mxu1 %v4639_v27  ;;  %v190_v52 = vld [vmem:[#allocation5 + $0x1a0] sm:$0xff]  ;;  %v191_v55 = vld [vmem:[#allocation5 + $0x1a8] sm:$0xff] }
  0x69   :  { %3258 = vmatprep.subr.bf16.mxu0 %v4646_v28  ;;  %3422 = vmatprep.subr.bf16.mxu1 %v4648_v29  ;;  %v4670_v58 = vcombine.high %v186_v51, %v190_v52  ;;  %v4672_v60 = vcombine.high %v187_v54, %v191_v55  ;;  %v194_v61 = vld [vmem:[#allocation5 + $0x1c0] sm:$0xff]  ;;  %v195_v0 = vld [vmem:[#allocation5 + $0x1c8] sm:$0xff]  ;;  %v4669_v2 = vcombine.low %v186_v51, %v190_v52 }
  0x6a   :  { %v198_v62 = vld [vmem:[#allocation5 + $0x1e0] sm:$0xff]  ;;  %v199_v1 = vld [vmem:[#allocation5 + $0x1e8] sm:$0xff]  ;;  %v4671_v4 = vcombine.low %v187_v54, %v191_v55  ;;  %3284 = vmatprep.mubr.bf16.mxu0 %v5673_v9  ;;  %3448 = vmatprep.mubr.bf16.mxu1 %v5673_v9 }
  0x6b   :  { %v4678_v5 = vcombine.high %v194_v61, %v198_v62  ;;  %v4680_v6 = vcombine.high %v195_v0, %v199_v1  ;;  %v202_v7 = vld [vmem:[#allocation5 + $0x200] sm:$0xff]  ;;  %v203_v10 = vld [vmem:[#allocation5 + $0x208] sm:$0xff]  ;;  %v4677_v12 = vcombine.low %v194_v61, %v198_v62  ;;  %v4679_v13 = vcombine.low %v195_v0, %v199_v1 }
  0x6c   :  { %3259 = vmatpush1.bf16.msra.mxu0 %v4645_v37  ;;  %3423 = vmatpush1.bf16.msra.mxu1 %v4647_v38  ;;  %v206_v8 = vld [vmem:[#allocation5 + $0x220] sm:$0xff]  ;;  %v207_v11 = vld [vmem:[#allocation5 + $0x228] sm:$0xff] }
  0x6d   :  { %3260 = vmatprep.subr.bf16.mxu0 %v4654_v39  ;;  %3424 = vmatprep.subr.bf16.mxu1 %v4656_v40  ;;  %v4686_v14 = vcombine.high %v202_v7, %v206_v8  ;;  %v4688_v15 = vcombine.high %v203_v10, %v207_v11  ;;  %v210_v16 = vld [vmem:[#allocation5 + $0x240] sm:$0xff]  ;;  %v211_v18 = vld [vmem:[#allocation5 + $0x248] sm:$0xff]  ;;  %v4685_v20 = vcombine.low %v202_v7, %v206_v8 }
  0x6e   :  { %v214_v17 = vld [vmem:[#allocation5 + $0x260] sm:$0xff]  ;;  %v215_v19 = vld [vmem:[#allocation5 + $0x268] sm:$0xff]  ;;  %v4687_v21 = vcombine.low %v203_v10, %v207_v11 }
  0x6f   :  { %v4694_v22 = vcombine.high %v210_v16, %v214_v17  ;;  %v4696_v23 = vcombine.high %v211_v18, %v215_v19  ;;  %v218_v24 = vld [vmem:[#allocation5 + $0x280] sm:$0xff]  ;;  %v219_v26 = vld [vmem:[#allocation5 + $0x288] sm:$0xff]  ;;  %v4693_v28 = vcombine.low %v210_v16, %v214_v17  ;;  %v4695_v29 = vcombine.low %v211_v18, %v215_v19 }
  0x70   :  { %3261 = vmatpush1.bf16.msra.mxu0 %v4653_v47  ;;  %3425 = vmatpush1.bf16.msra.mxu1 %v4655_v48  ;;  %v222_v25 = vld [vmem:[#allocation5 + $0x2a0] sm:$0xff]  ;;  %v223_v27 = vld [vmem:[#allocation5 + $0x2a8] sm:$0xff] }
  0x71   :  { %3262 = vmatprep.subr.bf16.mxu0 %v4662_v49  ;;  %3426 = vmatprep.subr.bf16.mxu1 %v4664_v50  ;;  %v4702_v30 = vcombine.high %v218_v24, %v222_v25  ;;  %v4704_v31 = vcombine.high %v219_v26, %v223_v27  ;;  %v226_v32 = vld [vmem:[#allocation5 + $0x2c0] sm:$0xff]  ;;  %v227_v34 = vld [vmem:[#allocation5 + $0x2c8] sm:$0xff]  ;;  %v4701_v36 = vcombine.low %v218_v24, %v222_v25 }
  0x72   :  { %v230_v33 = vld [vmem:[#allocation5 + $0x2e0] sm:$0xff]  ;;  %v231_v35 = vld [vmem:[#allocation5 + $0x2e8] sm:$0xff]  ;;  %v4703_v37 = vcombine.low %v219_v26, %v223_v27  ;;  %v5686_v25 = vpack.c.bf16 %v5669_v63, %v5669_v63 }
  0x73   :  { %v4710_v38 = vcombine.high %v226_v32, %v230_v33  ;;  %v4712_v39 = vcombine.high %v227_v34, %v231_v35  ;;  %v234_v40 = vld [vmem:[#allocation5 + $0x300] sm:$0xff]  ;;  %v235_v42 = vld [vmem:[#allocation5 + $0x308] sm:$0xff]  ;;  %v4709_v45 = vcombine.low %v226_v32, %v230_v33  ;;  %v4711_v46 = vcombine.low %v227_v34, %v231_v35 }
  0x74   :  { %3263 = vmatpush1.bf16.msra.mxu0 %v4661_v56  ;;  %3427 = vmatpush1.bf16.msra.mxu1 %v4663_v57  ;;  %v238_v41 = vld [vmem:[#allocation5 + $0x320] sm:$0xff]  ;;  %v239_v43 = vld [vmem:[#allocation5 + $0x328] sm:$0xff] }
  0x75   :  { %3264 = vmatprep.subr.bf16.mxu0 %v4670_v58  ;;  %3428 = vmatprep.subr.bf16.mxu1 %v4672_v60  ;;  %v4718_v47 = vcombine.high %v234_v40, %v238_v41  ;;  %v4720_v48 = vcombine.high %v235_v42, %v239_v43  ;;  %v242_v49 = vld [vmem:[#allocation5 + $0x340] sm:$0xff]  ;;  %v243_v51 = vld [vmem:[#allocation5 + $0x348] sm:$0xff]  ;;  %v4717_v54 = vcombine.low %v234_v40, %v238_v41 }
  0x76   :  { %v246_v50 = vld [vmem:[#allocation5 + $0x360] sm:$0xff]  ;;  %v247_v52 = vld [vmem:[#allocation5 + $0x368] sm:$0xff]  ;;  %v4719_v55 = vcombine.low %v235_v42, %v239_v43 }
  0x77   :  { %v4726_v56 = vcombine.high %v242_v49, %v246_v50  ;;  %v4728_v57 = vcombine.high %v243_v51, %v247_v52  ;;  %v250_v58 = vld [vmem:[#allocation5 + $0x380] sm:$0xff]  ;;  %v251_v61 = vld [vmem:[#allocation5 + $0x388] sm:$0xff]  ;;  %v4725_v0 = vcombine.low %v242_v49, %v246_v50  ;;  %v4727_v1 = vcombine.low %v243_v51, %v247_v52 }
  0x78   :  { %3265 = vmatpush1.bf16.msra.mxu0 %v4669_v2  ;;  %3429 = vmatpush1.bf16.msra.mxu1 %v4671_v4  ;;  %v254_v60 = vld [vmem:[#allocation5 + $0x3a0] sm:$0xff]  ;;  %v255_v62 = vld [vmem:[#allocation5 + $0x3a8] sm:$0xff] }
  0x79   :  { %3266 = vmatprep.subr.bf16.mxu0 %v4678_v5  ;;  %3430 = vmatprep.subr.bf16.mxu1 %v4680_v6  ;;  %v4734_v2 = vcombine.high %v250_v58, %v254_v60  ;;  %v4736_v3 = vcombine.high %v251_v61, %v255_v62  ;;  %v258_v4 = vld [vmem:[#allocation5 + $0x3c0] sm:$0xff]  ;;  %v88_v6 = vcombine.high %v5665_v59, %v5665_v59  ;;  %v259_v7 = vld [vmem:[#allocation5 + $0x3c8] sm:$0xff] }
  0x7a   :  { %v262_v5 = vld [vmem:[#allocation5 + $0x3e0] sm:$0xff]  ;;  %v263_v8 = vld [vmem:[#allocation5 + $0x3e8] sm:$0xff]  ;;  %v4733_v10 = vcombine.low %v250_v58, %v254_v60  ;;  %v4735_v11 = vcombine.low %v251_v61, %v255_v62 }
  0x7b   :  { %v5680_v16 = vrot.slane %v88_v6, %v5663_v53  ;;  %v267_v17 = vld [vmem:[#allocation5 + $0x408] sm:$0xff]  ;;  %v4741_v19 = vcombine.low %v258_v4, %v262_v5  ;;  %v4743_v59 = vcombine.low %v259_v7, %v263_v8  ;;  %v286_v32 = vld [vmem:[#allocation5 + $0x4a0] sm:$0xff] }
  0x7c   :  { %3267 = vmatpush1.bf16.msra.mxu0 %v4677_v12  ;;  %3431 = vmatpush1.bf16.msra.mxu1 %v4679_v13  ;;  %v4742_v12 = vcombine.high %v258_v4, %v262_v5  ;;  %v4744_v13 = vcombine.high %v259_v7, %v263_v8  ;;  %v271_v18 = vld [vmem:[#allocation5 + $0x428] sm:$0xff]  ;;  %v294_v40 = vld [vmem:[#allocation5 + $0x4e0] sm:$0xff] }
  0x7d   :  { %3268 = vmatprep.subr.bf16.mxu0 %v4686_v14  ;;  %3432 = vmatprep.subr.bf16.mxu1 %v4688_v15  ;;  %v266_v14 = vld [vmem:[#allocation5 + $0x400] sm:$0xff]  ;;  %v104_v24 = vcombine.high %v5680_v16, %v5680_v16  ;;  %v275_v26 = vld [vmem:[#allocation5 + $0x448] sm:$0xff] }
  0x7e   :  { %v270_v15 = vld [vmem:[#allocation5 + $0x420] sm:$0xff]  ;;  %v279_v27 = vld [vmem:[#allocation5 + $0x468] sm:$0xff] }
  0x7f   :  { %v283_v33 = vld [vmem:[#allocation5 + $0x488] sm:$0xff]  ;;  %v4760_v34 = vcombine.high %v275_v26, %v279_v27  ;;  %v302_v49 = vld [vmem:[#allocation5 + $0x520] sm:$0xff] }
  0x80   :  { %3269 = vmatpush1.bf16.msra.mxu0 %v4685_v20  ;;  %3433 = vmatpush1.bf16.msra.mxu1 %v4687_v21  ;;  %v4750_v20 = vcombine.high %v266_v14, %v270_v15  ;;  %v4752_v21 = vcombine.high %v267_v17, %v271_v18  ;;  %v287_v35 = vld [vmem:[#allocation5 + $0x4a8] sm:$0xff]  ;;  %v310_v58 = vld [vmem:[#allocation5 + $0x560] sm:$0xff] }
  0x81   :  { %3270 = vmatprep.subr.bf16.mxu0 %v4694_v22  ;;  %3434 = vmatprep.subr.bf16.mxu1 %v4696_v23  ;;  %v274_v22 = vld [vmem:[#allocation5 + $0x440] sm:$0xff]  ;;  %v291_v41 = vld [vmem:[#allocation5 + $0x4c8] sm:$0xff]  ;;  %v4768_v42 = vcombine.high %v283_v33, %v287_v35 }
  0x82   :  { %v278_v23 = vld [vmem:[#allocation5 + $0x460] sm:$0xff]  ;;  %v295_v43 = vld [vmem:[#allocation5 + $0x4e8] sm:$0xff] }
  0x83   :  { %v4757_v63 = vcombine.low %v274_v22, %v278_v23  ;;  %v299_v50 = vld [vmem:[#allocation5 + $0x508] sm:$0xff]  ;;  %v4776_v51 = vcombine.high %v291_v41, %v295_v43  ;;  %v318_v4 = vld [vmem:[#allocation5 + $0x5a0] sm:$0xff] }
  0x84   :  { %3271 = vmatpush1.bf16.msra.mxu0 %v4693_v28  ;;  %3435 = vmatpush1.bf16.msra.mxu1 %v4695_v29  ;;  %v4749_v28 = vcombine.low %v266_v14, %v270_v15  ;;  %v4751_v29 = vcombine.low %v267_v17, %v271_v18  ;;  %v303_v52 = vld [vmem:[#allocation5 + $0x528] sm:$0xff] }
  0x85   :  { %3272 = vmatprep.subr.bf16.mxu0 %v4702_v30  ;;  %3436 = vmatprep.subr.bf16.mxu1 %v4704_v31  ;;  %v4758_v30 = vcombine.high %v274_v22, %v278_v23  ;;  %v282_v31 = vld [vmem:[#allocation5 + $0x480] sm:$0xff]  ;;  %v307_v60 = vld [vmem:[#allocation5 + $0x548] sm:$0xff]  ;;  %v4784_v61 = vcombine.high %v299_v50, %v303_v52 }
  0x86   :  { %v311_v62 = vld [vmem:[#allocation5 + $0x568] sm:$0xff] }
  0x87   :  { %v315_v5 = vld [vmem:[#allocation5 + $0x588] sm:$0xff]  ;;  %v4792_v6 = vcombine.high %v307_v60, %v311_v62 }
  0x88   :  { %3273 = vmatpush1.bf16.msra.mxu0 %v4701_v36  ;;  %3437 = vmatpush1.bf16.msra.mxu1 %v4703_v37  ;;  %v5688_v36 = vpack.c.bf16 %v104_v24, %v104_v24  ;;  %v4759_v37 = vcombine.low %v275_v26, %v279_v27  ;;  %v319_v7 = vld [vmem:[#allocation5 + $0x5a8] sm:$0xff] }
  0x89   :  { %3274 = vmatprep.subr.bf16.mxu0 %v4710_v38  ;;  %3438 = vmatprep.subr.bf16.mxu1 %v4712_v39  ;;  %v4766_v38 = vcombine.high %v282_v31, %v286_v32  ;;  %v290_v39 = vld [vmem:[#allocation5 + $0x4c0] sm:$0xff]  ;;  %v323_v14 = vld [vmem:[#allocation5 + $0x5c8] sm:$0xff]  ;;  %v4800_v15 = vcombine.high %v315_v5, %v319_v7 }
  0x8a   :  { %v327_v17 = vld [vmem:[#allocation5 + $0x5e8] sm:$0xff] }
  0x8b   :  { %v331_v22 = vld [vmem:[#allocation5 + $0x608] sm:$0xff]  ;;  %v4808_v23 = vcombine.high %v323_v14, %v327_v17  ;;  %v4807_v27 = vcombine.low %v323_v14, %v327_v17  ;;  %v386_v17 = vld [vmem:[#allocation5 + $0x7c0] sm:$0xff] }
  0x8c   :  { %3275 = vmatpush1.bf16.msra.mxu0 %v4709_v45  ;;  %3439 = vmatpush1.bf16.msra.mxu1 %v4711_v46  ;;  %v4765_v45 = vcombine.low %v282_v31, %v286_v32  ;;  %v4767_v46 = vcombine.low %v283_v33, %v287_v35  ;;  %v335_v24 = vld [vmem:[#allocation5 + $0x628] sm:$0xff] }
  0x8d   :  { %3276 = vmatprep.subr.bf16.mxu0 %v4718_v47  ;;  %3440 = vmatprep.subr.bf16.mxu1 %v4720_v48  ;;  %v4774_v47 = vcombine.high %v290_v39, %v294_v40  ;;  %v298_v48 = vld [vmem:[#allocation5 + $0x500] sm:$0xff]  ;;  %v339_v31 = vld [vmem:[#allocation5 + $0x648] sm:$0xff]  ;;  %v4816_v32 = vcombine.high %v331_v22, %v335_v24  ;;  %v4815_v35 = vcombine.low %v331_v22, %v335_v24 }
  0x8e   :  { %v343_v33 = vld [vmem:[#allocation5 + $0x668] sm:$0xff] }
  0x8f   :  { %v383_v14 = vld [vmem:[#allocation5 + $0x7a8] sm:$0xff] }
  0x90   :  { %3277 = vmatpush1.bf16.msra.mxu0 %v4717_v54  ;;  %3441 = vmatpush1.bf16.msra.mxu1 %v4719_v55  ;;  %v4773_v54 = vcombine.low %v290_v39, %v294_v40  ;;  %v4775_v55 = vcombine.low %v291_v41, %v295_v43  ;;  %v347_v39 = vld [vmem:[#allocation5 + $0x688] sm:$0xff]  ;;  %v4824_v40 = vcombine.high %v339_v31, %v343_v33 }
  0x91   :  { %3278 = vmatprep.subr.bf16.mxu0 %v4726_v56  ;;  %3442 = vmatprep.subr.bf16.mxu1 %v4728_v57  ;;  %v4782_v56 = vcombine.high %v298_v48, %v302_v49  ;;  %v306_v57 = vld [vmem:[#allocation5 + $0x540] sm:$0xff]  ;;  %v351_v41 = vld [vmem:[#allocation5 + $0x6a8] sm:$0xff]  ;;  %v4823_v43 = vcombine.low %v339_v31, %v343_v33 }
  0x92   :  { %v4789_v8 = vcombine.low %v306_v57, %v310_v58 }
  0x94   :  { %3279 = vmatpush1.bf16.msra.mxu0 %v4725_v0  ;;  %3443 = vmatpush1.bf16.msra.mxu1 %v4727_v1  ;;  %v4781_v0 = vcombine.low %v298_v48, %v302_v49  ;;  %v4783_v1 = vcombine.low %v299_v50, %v303_v52  ;;  %v355_v48 = vld [vmem:[#allocation5 + $0x6c8] sm:$0xff]  ;;  %v4832_v49 = vcombine.high %v347_v39, %v351_v41 }
  0x95   :  { %3280 = vmatprep.subr.bf16.mxu0 %v4734_v2  ;;  %3444 = vmatprep.subr.bf16.mxu1 %v4736_v3  ;;  %v4790_v2 = vcombine.high %v306_v57, %v310_v58  ;;  %v314_v3 = vld [vmem:[#allocation5 + $0x580] sm:$0xff]  ;;  %v359_v50 = vld [vmem:[#allocation5 + $0x6e8] sm:$0xff]  ;;  %v4831_v52 = vcombine.low %v347_v39, %v351_v41 }
  0x96   :  { %v4797_v18 = vcombine.low %v314_v3, %v318_v4  ;;  %v363_v57 = vld [vmem:[#allocation5 + $0x708] sm:$0xff]  ;;  %v4840_v58 = vcombine.high %v355_v48, %v359_v50 }
  0x97   :  { %v403_v39 = vld [vmem:[#allocation5 + $0x848] sm:$0xff] }
  0x98   :  { %3281 = vmatpush1.bf16.msra.mxu0 %v4733_v10  ;;  %3445 = vmatpush1.bf16.msra.mxu1 %v4735_v11  ;;  %v4791_v10 = vcombine.low %v307_v60, %v311_v62  ;;  %v4798_v11 = vcombine.high %v314_v3, %v318_v4  ;;  %v367_v60 = vld [vmem:[#allocation5 + $0x728] sm:$0xff]  ;;  %v4839_v62 = vcombine.low %v355_v48, %v359_v50  ;;  %v414_v50 = vld [vmem:[#allocation5 + $0x8a0] sm:$0xff] }
  0x99   :  { %3282 = vmatprep.subr.bf16.mxu0 %v4742_v12  ;;  %3446 = vmatprep.subr.bf16.mxu1 %v4744_v13  ;;  %v322_v12 = vld [vmem:[#allocation5 + $0x5c0] sm:$0xff]  ;;  %v371_v3 = vld [vmem:[#allocation5 + $0x748] sm:$0xff]  ;;  %v4848_v4 = vcombine.high %v363_v57, %v367_v60 }
  0x9a   :  { %v326_v13 = vld [vmem:[#allocation5 + $0x5e0] sm:$0xff]  ;;  %v407_v41 = vld [vmem:[#allocation5 + $0x868] sm:$0xff] }
  0x9b   :  { %v4805_v26 = vcombine.low %v322_v12, %v326_v13  ;;  %v4888_v48 = vcombine.high %v403_v39, %v407_v41 }
  0x9c   :  { %3283 = vmatpush1.bf16.msra.mxu0 %v4741_v19  ;;  %3447 = vmatpush1.bf16.msra.mxu1 %v4743_v59  ;;  %v4799_v19 = vcombine.low %v315_v5, %v319_v7  ;;  %v4806_v59 = vcombine.high %v322_v12, %v326_v13  ;;  %v375_v5 = vld [vmem:[#allocation5 + $0x768] sm:$0xff]  ;;  %v4847_v7 = vcombine.low %v363_v57, %v367_v60  ;;  %v422_v60 = vld [vmem:[#allocation5 + $0x8e0] sm:$0xff] }
  0x9d   :  { %3293 = vmatprep.subr.bf16.mxu0 %v4750_v20  ;;  %3457 = vmatprep.subr.bf16.mxu1 %v4752_v21  ;;  %v330_v20 = vld [vmem:[#allocation5 + $0x600] sm:$0xff]  ;;  %v379_v12 = vld [vmem:[#allocation5 + $0x788] sm:$0xff]  ;;  %v4856_v13 = vcombine.high %v371_v3, %v375_v5 }
  0x9e   :  { %v334_v21 = vld [vmem:[#allocation5 + $0x620] sm:$0xff]  ;;  %v4864_v22 = vcombine.high %v379_v12, %v383_v14 }
  0x9f   :  { %3285 = vmatmul.mubr.bf16.vlgmr.msra.gmra.mrb[0].mxu0 %v5686_v25  ;;  %3449 = vmatmul.mubr.bf16.vlgmr.msra.gmra.mrb[0].mxu1 %v5686_v25 }
  0xa0   :  { %3294 = vmatpush1.bf16.msra.mxu0 %v4749_v28  ;;  %3458 = vmatpush1.bf16.msra.mxu1 %v4751_v29  ;;  %v4814_v28 = vcombine.high %v330_v20, %v334_v21  ;;  %v338_v29 = vld [vmem:[#allocation5 + $0x640] sm:$0xff] }
  0xa1   :  { %3295 = vmatprep.subr.bf16.mxu0 %v4758_v30  ;;  %3459 = vmatprep.subr.bf16.mxu1 %v4760_v34  ;;  %v342_v30 = vld [vmem:[#allocation5 + $0x660] sm:$0xff]  ;;  %v4813_v34 = vcombine.low %v330_v20, %v334_v21  ;;  %v387_v20 = vld [vmem:[#allocation5 + $0x7c8] sm:$0xff] }
  0xa2   :  { %3325 = vmatprep.mubr.bf16.mxu0 %v5688_v36  ;;  %3489 = vmatprep.mubr.bf16.mxu1 %v5688_v36  ;;  %v391_v21 = vld [vmem:[#allocation5 + $0x7e8] sm:$0xff] }
  0xa3   :  { %v4872_v31 = vcombine.high %v387_v20, %v391_v21 }
  0xa4   :  { %3296 = vmatpush1.bf16.msra.mxu0 %v4757_v63  ;;  %3460 = vmatpush1.bf16.msra.mxu1 %v4759_v37  ;;  %v4822_v63 = vcombine.high %v338_v29, %v342_v30  ;;  %v346_v37 = vld [vmem:[#allocation5 + $0x680] sm:$0xff] }
  0xa5   :  { %3297 = vmatprep.subr.bf16.mxu0 %v4766_v38  ;;  %3461 = vmatprep.subr.bf16.mxu1 %v4768_v42  ;;  %v350_v38 = vld [vmem:[#allocation5 + $0x6a0] sm:$0xff]  ;;  %v4821_v42 = vcombine.low %v338_v29, %v342_v30  ;;  %v395_v30 = vld [vmem:[#allocation5 + $0x808] sm:$0xff] }
  0xa6   :  { %v398_v29 = vld [vmem:[#allocation5 + $0x820] sm:$0xff] }
  0xa8   :  { %3298 = vmatpush1.bf16.msra.mxu0 %v4765_v45  ;;  %3462 = vmatpush1.bf16.msra.mxu1 %v4767_v46  ;;  %v4830_v45 = vcombine.high %v346_v37, %v350_v38  ;;  %v354_v46 = vld [vmem:[#allocation5 + $0x6c0] sm:$0xff] }
  0xa9   :  { %3299 = vmatprep.subr.bf16.mxu0 %v4774_v47  ;;  %3463 = vmatprep.subr.bf16.mxu1 %v4776_v51  ;;  %v358_v47 = vld [vmem:[#allocation5 + $0x6e0] sm:$0xff]  ;;  %v4829_v51 = vcombine.low %v346_v37, %v350_v38 }
  0xaa   :  { %v402_v37 = vld [vmem:[#allocation5 + $0x840] sm:$0xff] }
  0xab   :  { %v406_v38 = vld [vmem:[#allocation5 + $0x860] sm:$0xff] }
  0xac   :  { %3300 = vmatpush1.bf16.msra.mxu0 %v4773_v54  ;;  %3464 = vmatpush1.bf16.msra.mxu1 %v4775_v55  ;;  %v4838_v54 = vcombine.high %v354_v46, %v358_v47  ;;  %v362_v55 = vld [vmem:[#allocation5 + $0x700] sm:$0xff] }
  0xad   :  { %3301 = vmatprep.subr.bf16.mxu0 %v4782_v56  ;;  %3465 = vmatprep.subr.bf16.mxu1 %v4784_v61  ;;  %v366_v56 = vld [vmem:[#allocation5 + $0x720] sm:$0xff]  ;;  %v4837_v61 = vcombine.low %v354_v46, %v358_v47  ;;  %v4886_v47 = vcombine.high %v402_v37, %v406_v38 }
  0xb0   :  { %3302 = vmatpush1.bf16.msra.mxu0 %v4781_v0  ;;  %3466 = vmatpush1.bf16.msra.mxu1 %v4783_v1  ;;  %v4846_v0 = vcombine.high %v362_v55, %v366_v56  ;;  %v370_v1 = vld [vmem:[#allocation5 + $0x740] sm:$0xff] }
  0xb1   :  { %3303 = vmatprep.subr.bf16.mxu0 %v4790_v2  ;;  %3467 = vmatprep.subr.bf16.mxu1 %v4792_v6  ;;  %v374_v2 = vld [vmem:[#allocation5 + $0x760] sm:$0xff]  ;;  %v4845_v6 = vcombine.low %v362_v55, %v366_v56  ;;  %v4887_v55 = vcombine.low %v403_v39, %v407_v41 }
  0xb2   :  { %v462_v41 = vld [vmem:[#allocation5 + $0xa20] sm:$0xff] }
  0xb4   :  { %3304 = vmatpush1.bf16.msra.mxu0 %v4789_v8  ;;  %3468 = vmatpush1.bf16.msra.mxu1 %v4791_v10  ;;  %v4854_v8 = vcombine.high %v370_v1, %v374_v2  ;;  %v378_v10 = vld [vmem:[#allocation5 + $0x780] sm:$0xff] }
  0xb5   :  { %3305 = vmatprep.subr.bf16.mxu0 %v4798_v11  ;;  %3469 = vmatprep.subr.bf16.mxu1 %v4800_v15  ;;  %v382_v11 = vld [vmem:[#allocation5 + $0x7a0] sm:$0xff]  ;;  %v4853_v15 = vcombine.low %v370_v1, %v374_v2 }
  0xb6   :  { %v4861_v24 = vcombine.low %v378_v10, %v382_v11 }
  0xb8   :  { %3306 = vmatpush1.bf16.msra.mxu0 %v4797_v18  ;;  %3470 = vmatpush1.bf16.msra.mxu1 %v4799_v19  ;;  %v4855_v18 = vcombine.low %v371_v3, %v375_v5  ;;  %v4862_v19 = vcombine.high %v378_v10, %v382_v11  ;;  %v430_v5 = vld [vmem:[#allocation5 + $0x920] sm:$0xff] }
  0xb9   :  { %3307 = vmatprep.subr.bf16.mxu0 %v4806_v59  ;;  %3471 = vmatprep.subr.bf16.mxu1 %v4808_v23  ;;  %v390_v59 = vld [vmem:[#allocation5 + $0x7e0] sm:$0xff]  ;;  %v5694_v23 = vld [vmem:[#allocation2 + $0x8] sm:$0xff] }
  0xba   :  { %v5698_v33 = vrot.slane %v5694_v23, %v5663_v53 }
  0xbc   :  { %3308 = vmatpush1.bf16.msra.mxu0 %v4805_v26  ;;  %3472 = vmatpush1.bf16.msra.mxu1 %v4807_v27  ;;  %v4863_v26 = vcombine.low %v379_v12, %v383_v14  ;;  %v4870_v27 = vcombine.high %v386_v17, %v390_v59  ;;  %v438_v14 = vld [vmem:[#allocation5 + $0x960] sm:$0xff] }
  0xbd   :  { %3309 = vmatprep.subr.bf16.mxu0 %v4814_v28  ;;  %3473 = vmatprep.subr.bf16.mxu1 %v4816_v32  ;;  %v394_v28 = vld [vmem:[#allocation5 + $0x800] sm:$0xff]  ;;  %v399_v32 = vld [vmem:[#allocation5 + $0x828] sm:$0xff] }
  0xbe   :  { %v4879_v46 = vcombine.low %v395_v30, %v399_v32 }
  0xc0   :  { %3310 = vmatpush1.bf16.msra.mxu0 %v4813_v34  ;;  %3474 = vmatpush1.bf16.msra.mxu1 %v4815_v35  ;;  %v4869_v34 = vcombine.low %v386_v17, %v390_v59  ;;  %v4871_v35 = vcombine.low %v387_v20, %v391_v21  ;;  %v439_v17 = vld [vmem:[#allocation5 + $0x968] sm:$0xff]  ;;  %v442_v21 = vld [vmem:[#allocation5 + $0x980] sm:$0xff] }
  0xc1   :  { %3311 = vmatprep.subr.bf16.mxu0 %v4822_v63  ;;  %3475 = vmatprep.subr.bf16.mxu1 %v4824_v40  ;;  %v4878_v63 = vcombine.high %v394_v28, %v398_v29  ;;  %v4880_v40 = vcombine.high %v395_v30, %v399_v32  ;;  %v454_v32 = vld [vmem:[#allocation5 + $0x9e0] sm:$0xff] }
  0xc4   :  { %3312 = vmatpush1.bf16.msra.mxu0 %v4821_v42  ;;  %3476 = vmatpush1.bf16.msra.mxu1 %v4823_v43  ;;  %v120_v42 = vcombine.high %v5698_v33, %v5698_v33  ;;  %v5704_v43 = vpack.c.bf16 %v5680_v16, %v5680_v16  ;;  %v4885_v16 = vcombine.low %v402_v37, %v406_v38 }
  0xc5   :  { %3313 = vmatprep.subr.bf16.mxu0 %v4830_v45  ;;  %3477 = vmatprep.subr.bf16.mxu1 %v4832_v49  ;;  %v4877_v45 = vcombine.low %v394_v28, %v398_v29  ;;  %v410_v49 = vld [vmem:[#allocation5 + $0x880] sm:$0xff] }
  0xc6   :  { %v4894_v56 = vcombine.high %v410_v49, %v414_v50 }
  0xc8   :  { %3314 = vmatpush1.bf16.msra.mxu0 %v4829_v51  ;;  %3478 = vmatpush1.bf16.msra.mxu1 %v4831_v52  ;;  %v5706_v51 = vpack.c.bf16 %v120_v42, %v120_v42  ;;  %v411_v52 = vld [vmem:[#allocation5 + $0x888] sm:$0xff] }
  0xc9   :  { %3315 = vmatprep.subr.bf16.mxu0 %v4838_v54  ;;  %3479 = vmatprep.subr.bf16.mxu1 %v4840_v58  ;;  %v415_v54 = vld [vmem:[#allocation5 + $0x8a8] sm:$0xff]  ;;  %v418_v58 = vld [vmem:[#allocation5 + $0x8c0] sm:$0xff] }
  0xca   :  { %v4896_v57 = vcombine.high %v411_v52, %v415_v54  ;;  %v4895_v1 = vcombine.low %v411_v52, %v415_v54  ;;  %v4902_v2 = vcombine.high %v418_v58, %v422_v60  ;;  %v459_v42 = vld [vmem:[#allocation5 + $0xa08] sm:$0xff]  ;;  %v470_v52 = vld [vmem:[#allocation5 + $0xa60] sm:$0xff] }
  0xcb   :  { %v467_v54 = vld [vmem:[#allocation5 + $0xa48] sm:$0xff] }
  0xcc   :  { %3316 = vmatpush1.bf16.msra.mxu0 %v4837_v61  ;;  %3480 = vmatpush1.bf16.msra.mxu1 %v4839_v62  ;;  %v419_v61 = vld [vmem:[#allocation5 + $0x8c8] sm:$0xff] }
  0xcd   :  { %3317 = vmatprep.subr.bf16.mxu0 %v4846_v0  ;;  %3481 = vmatprep.subr.bf16.mxu1 %v4848_v4  ;;  %v423_v62 = vld [vmem:[#allocation5 + $0x8e8] sm:$0xff]  ;;  %v4893_v0 = vcombine.low %v410_v49, %v414_v50  ;;  %v426_v4 = vld [vmem:[#allocation5 + $0x900] sm:$0xff] }
  0xce   :  { %v4904_v3 = vcombine.high %v419_v61, %v423_v62  ;;  %v4903_v10 = vcombine.low %v419_v61, %v423_v62  ;;  %v4910_v11 = vcombine.high %v426_v4, %v430_v5  ;;  %v466_v50 = vld [vmem:[#allocation5 + $0xa40] sm:$0xff]  ;;  %v475_v62 = vld [vmem:[#allocation5 + $0xa88] sm:$0xff] }
  0xcf   :  { %v478_v61 = vld [vmem:[#allocation5 + $0xaa0] sm:$0xff] }
  0xd0   :  { %3318 = vmatpush1.bf16.msra.mxu0 %v4845_v6  ;;  %3482 = vmatpush1.bf16.msra.mxu1 %v4847_v7  ;;  %v427_v6 = vld [vmem:[#allocation5 + $0x908] sm:$0xff] }
  0xd1   :  { %3319 = vmatprep.subr.bf16.mxu0 %v4854_v8  ;;  %3483 = vmatprep.subr.bf16.mxu1 %v4856_v13  ;;  %v431_v7 = vld [vmem:[#allocation5 + $0x928] sm:$0xff]  ;;  %v4901_v8 = vcombine.low %v418_v58, %v422_v60  ;;  %v434_v13 = vld [vmem:[#allocation5 + $0x940] sm:$0xff] }
  0xd2   :  { %v4912_v12 = vcombine.high %v427_v6, %v431_v7  ;;  %v4918_v59 = vcombine.high %v434_v13, %v438_v14  ;;  %v474_v60 = vld [vmem:[#allocation5 + $0xa80] sm:$0xff] }
  0xd4   :  { %3320 = vmatpush1.bf16.msra.mxu0 %v4853_v15  ;;  %3484 = vmatpush1.bf16.msra.mxu1 %v4855_v18  ;;  %v435_v15 = vld [vmem:[#allocation5 + $0x948] sm:$0xff]  ;;  %v4909_v18 = vcombine.low %v426_v4, %v430_v5  ;;  %v482_v5 = vld [vmem:[#allocation5 + $0xac0] sm:$0xff] }
  0xd5   :  { %3321 = vmatprep.subr.bf16.mxu0 %v4862_v19  ;;  %3485 = vmatprep.subr.bf16.mxu1 %v4864_v22  ;;  %v4911_v19 = vcombine.low %v427_v6, %v431_v7  ;;  %v4920_v20 = vcombine.high %v435_v15, %v439_v17  ;;  %v446_v22 = vld [vmem:[#allocation5 + $0x9a0] sm:$0xff]  ;;  %v4919_v28 = vcombine.low %v435_v15, %v439_v17  ;;  %v483_v7 = vld [vmem:[#allocation5 + $0xac8] sm:$0xff] }
  0xd6   :  { %v4926_v29 = vcombine.high %v442_v21, %v446_v22  ;;  %v486_v6 = vld [vmem:[#allocation5 + $0xae0] sm:$0xff]  ;;  %v491_v17 = vld [vmem:[#allocation5 + $0xb08] sm:$0xff] }
  0xd7   :  { %v494_v15 = vld [vmem:[#allocation5 + $0xb20] sm:$0xff] }
  0xd8   :  { %3322 = vmatpush1.bf16.msra.mxu0 %v4861_v24  ;;  %3486 = vmatpush1.bf16.msra.mxu1 %v4863_v26  ;;  %v443_v24 = vld [vmem:[#allocation5 + $0x988] sm:$0xff] }
  0xd9   :  { %3323 = vmatprep.subr.bf16.mxu0 %v4870_v27  ;;  %3487 = vmatprep.subr.bf16.mxu1 %v4872_v31  ;;  %v447_v26 = vld [vmem:[#allocation5 + $0x9a8] sm:$0xff]  ;;  %v4917_v27 = vcombine.low %v434_v13, %v438_v14  ;;  %v450_v31 = vld [vmem:[#allocation5 + $0x9c0] sm:$0xff] }
  0xda   :  { %v4928_v30 = vcombine.high %v443_v24, %v447_v26  ;;  %v4927_v37 = vcombine.low %v443_v24, %v447_v26  ;;  %v4934_v38 = vcombine.high %v450_v31, %v454_v32  ;;  %v490_v14 = vld [vmem:[#allocation5 + $0xb00] sm:$0xff]  ;;  %v499_v26 = vld [vmem:[#allocation5 + $0xb48] sm:$0xff] }
  0xdb   :  { %v502_v24 = vld [vmem:[#allocation5 + $0xb60] sm:$0xff] }
  0xdc   :  { %3324 = vmatpush1.bf16.msra.mxu0 %v4869_v34  ;;  %3488 = vmatpush1.bf16.msra.mxu1 %v4871_v35  ;;  %v451_v34 = vld [vmem:[#allocation5 + $0x9c8] sm:$0xff] }
  0xdd   :  { %3334 = vmatprep.subr.bf16.mxu0 %v4878_v63  ;;  %3498 = vmatprep.subr.bf16.mxu1 %v4880_v40  ;;  %v455_v35 = vld [vmem:[#allocation5 + $0x9e8] sm:$0xff]  ;;  %v4925_v63 = vcombine.low %v442_v21, %v446_v22  ;;  %v458_v40 = vld [vmem:[#allocation5 + $0xa00] sm:$0xff] }
  0xde   :  { %v4936_v39 = vcombine.high %v451_v34, %v455_v35  ;;  %v498_v22 = vld [vmem:[#allocation5 + $0xb40] sm:$0xff] }
  0xdf   :  { %3326 = vmatmul.mubr.bf16.vlgmr.msra.gmra.mrb[0].mxu0 %v5704_v43  ;;  %3490 = vmatmul.mubr.bf16.vlgmr.msra.gmra.mrb[0].mxu1 %v5704_v43 }
  0xe0   :  { %3335 = vmatpush1.bf16.msra.mxu0 %v4877_v45  ;;  %3499 = vmatpush1.bf16.msra.mxu1 %v4879_v46  ;;  %v463_v45 = vld [vmem:[#allocation5 + $0xa28] sm:$0xff]  ;;  %v4933_v46 = vcombine.low %v450_v31, %v454_v32  ;;  %v506_v32 = vld [vmem:[#allocation5 + $0xb80] sm:$0xff] }
  0xe1   :  { %3336 = vmatprep.subr.bf16.mxu0 %v4886_v47  ;;  %3500 = vmatprep.subr.bf16.mxu1 %v4888_v48  ;;  %v4935_v47 = vcombine.low %v451_v34, %v455_v35  ;;  %v4942_v48 = vcombine.high %v458_v40, %v462_v41  ;;  %v4944_v49 = vcombine.high %v459_v42, %v463_v45  ;;  %v510_v34 = vld [vmem:[#allocation5 + $0xba0] sm:$0xff]  ;;  %v507_v35 = vld [vmem:[#allocation5 + $0xb88] sm:$0xff] }
  0xe2   :  { %3366 = vmatprep.mubr.bf16.mxu0 %v5706_v51  ;;  %3530 = vmatprep.mubr.bf16.mxu1 %v5706_v51 }
  0xe4   :  { %3337 = vmatpush1.bf16.msra.mxu0 %v4885_v16  ;;  %3501 = vmatpush1.bf16.msra.mxu1 %v4887_v55  ;;  %v471_v16 = vld [vmem:[#allocation5 + $0xa68] sm:$0xff]  ;;  %v4941_v55 = vcombine.low %v458_v40, %v462_v41  ;;  %v514_v41 = vld [vmem:[#allocation5 + $0xbc0] sm:$0xff] }
  0xe5   :  { %3338 = vmatprep.subr.bf16.mxu0 %v4894_v56  ;;  %3502 = vmatprep.subr.bf16.mxu1 %v4896_v57  ;;  %v4943_v56 = vcombine.low %v459_v42, %v463_v45  ;;  %v4950_v57 = vcombine.high %v466_v50, %v470_v52  ;;  %v4952_v58 = vcombine.high %v467_v54, %v471_v16  ;;  %v518_v42 = vld [vmem:[#allocation5 + $0xbe0] sm:$0xff] }
  0xe6   :  { %v105_v45 = vcombine.high %v5694_v23, %v5694_v23 }
  0xe8   :  { %3339 = vmatpush1.bf16.msra.mxu0 %v4893_v0  ;;  %3503 = vmatpush1.bf16.msra.mxu1 %v4895_v1  ;;  %v479_v0 = vld [vmem:[#allocation5 + $0xaa8] sm:$0xff]  ;;  %v4949_v1 = vcombine.low %v466_v50, %v470_v52  ;;  %v4998_v50 = vcombine.high %v514_v41, %v518_v42 }
  0xe9   :  { %3340 = vmatprep.subr.bf16.mxu0 %v4902_v2  ;;  %3504 = vmatprep.subr.bf16.mxu1 %v4904_v3  ;;  %v4951_v2 = vcombine.low %v467_v54, %v471_v16  ;;  %v4958_v3 = vcombine.high %v474_v60, %v478_v61  ;;  %v4960_v4 = vcombine.high %v475_v62, %v479_v0  ;;  %v522_v54 = vld [vmem:[#allocation5 + $0xc00] sm:$0xff] }
  0xea   :  { %v526_v16 = vld [vmem:[#allocation5 + $0xc20] sm:$0xff] }
  0xec   :  { %3341 = vmatpush1.bf16.msra.mxu0 %v4901_v8  ;;  %3505 = vmatpush1.bf16.msra.mxu1 %v4903_v10  ;;  %v487_v8 = vld [vmem:[#allocation5 + $0xae8] sm:$0xff]  ;;  %v4957_v10 = vcombine.low %v474_v60, %v478_v61  ;;  %v5006_v60 = vcombine.high %v522_v54, %v526_v16 }
  0xed   :  { %3342 = vmatprep.subr.bf16.mxu0 %v4910_v11  ;;  %3506 = vmatprep.subr.bf16.mxu1 %v4912_v12  ;;  %v4959_v11 = vcombine.low %v475_v62, %v479_v0  ;;  %v4966_v12 = vcombine.high %v482_v5, %v486_v6  ;;  %v4968_v13 = vcombine.high %v483_v7, %v487_v8  ;;  %v530_v62 = vld [vmem:[#allocation5 + $0xc40] sm:$0xff] }
  0xee   :  { %v534_v0 = vld [vmem:[#allocation5 + $0xc60] sm:$0xff] }
  0xf0   :  { %3343 = vmatpush1.bf16.msra.mxu0 %v4909_v18  ;;  %3507 = vmatpush1.bf16.msra.mxu1 %v4911_v19  ;;  %v495_v18 = vld [vmem:[#allocation5 + $0xb28] sm:$0xff]  ;;  %v4965_v19 = vcombine.low %v482_v5, %v486_v6  ;;  %v5014_v6 = vcombine.high %v530_v62, %v534_v0 }
  0xf1   :  { %3344 = vmatprep.subr.bf16.mxu0 %v4918_v59  ;;  %3508 = vmatprep.subr.bf16.mxu1 %v4920_v20  ;;  %v4967_v59 = vcombine.low %v483_v7, %v487_v8  ;;  %v4974_v20 = vcombine.high %v490_v14, %v494_v15  ;;  %v4976_v21 = vcombine.high %v491_v17, %v495_v18  ;;  %v538_v8 = vld [vmem:[#allocation5 + $0xc80] sm:$0xff] }
  0xf4   :  { %3345 = vmatpush1.bf16.msra.mxu0 %v4917_v27  ;;  %3509 = vmatpush1.bf16.msra.mxu1 %v4919_v28  ;;  %v503_v27 = vld [vmem:[#allocation5 + $0xb68] sm:$0xff]  ;;  %v4973_v28 = vcombine.low %v490_v14, %v494_v15 }
  0xf5   :  { %3346 = vmatprep.subr.bf16.mxu0 %v4926_v29  ;;  %3510 = vmatprep.subr.bf16.mxu1 %v4928_v30  ;;  %v4975_v29 = vcombine.low %v491_v17, %v495_v18  ;;  %v4982_v30 = vcombine.high %v498_v22, %v502_v24  ;;  %v4984_v31 = vcombine.high %v499_v26, %v503_v27  ;;  %v546_v18 = vld [vmem:[#allocation5 + $0xcc0] sm:$0xff] }
  0xf8   :  { %3347 = vmatpush1.bf16.msra.mxu0 %v4925_v63  ;;  %3511 = vmatpush1.bf16.msra.mxu1 %v4927_v37  ;;  %v511_v63 = vld [vmem:[#allocation5 + $0xba8] sm:$0xff]  ;;  %v4981_v37 = vcombine.low %v498_v22, %v502_v24 }
  0xf9   :  { %3348 = vmatprep.subr.bf16.mxu0 %v4934_v38  ;;  %3512 = vmatprep.subr.bf16.mxu1 %v4936_v39  ;;  %v4983_v38 = vcombine.low %v499_v26, %v503_v27  ;;  %v4990_v39 = vcombine.high %v506_v32, %v510_v34  ;;  %v4992_v40 = vcombine.high %v507_v35, %v511_v63  ;;  %v554_v27 = vld [vmem:[#allocation5 + $0xd00] sm:$0xff] }
  0xfc   :  { %3349 = vmatpush1.bf16.msra.mxu0 %v4933_v46  ;;  %3513 = vmatpush1.bf16.msra.mxu1 %v4935_v47  ;;  %v515_v46 = vld [vmem:[#allocation5 + $0xbc8] sm:$0xff] }
  0xfd   :  { %3350 = vmatprep.subr.bf16.mxu0 %v4942_v48  ;;  %3514 = vmatprep.subr.bf16.mxu1 %v4944_v49  ;;  %v519_v47 = vld [vmem:[#allocation5 + $0xbe8] sm:$0xff]  ;;  %v4989_v48 = vcombine.low %v506_v32, %v510_v34  ;;  %v4991_v49 = vcombine.low %v507_v35, %v511_v63  ;;  %v562_v63 = vld [vmem:[#allocation5 + $0xd40] sm:$0xff] }
  0xfe   :  { %v5000_v52 = vcombine.high %v515_v46, %v519_v47  ;;  %v4999_v23 = vcombine.low %v515_v46, %v519_v47  ;;  %v570_v46 = vld [vmem:[#allocation5 + $0xd80] sm:$0xff] }
  0xff   :  { %v574_v47 = vld [vmem:[#allocation5 + $0xda0] sm:$0xff] }
 0x100   :  { %3351 = vmatpush1.bf16.msra.mxu0 %v4941_v55  ;;  %3515 = vmatpush1.bf16.msra.mxu1 %v4943_v56  ;;  %v5715_v55 = vrot.slane %v105_v45, %v5663_v53  ;;  %v523_v56 = vld [vmem:[#allocation5 + $0xc08] sm:$0xff] }
 0x101   :  { %3352 = vmatprep.subr.bf16.mxu0 %v4950_v57  ;;  %3516 = vmatprep.subr.bf16.mxu1 %v4952_v58  ;;  %v527_v57 = vld [vmem:[#allocation5 + $0xc28] sm:$0xff]  ;;  %v4997_v58 = vcombine.low %v514_v41, %v518_v42 }
 0x102   :  { %v5008_v61 = vcombine.high %v523_v56, %v527_v57  ;;  %v531_v53 = vld [vmem:[#allocation5 + $0xc48] sm:$0xff]  ;;  %v5007_v5 = vcombine.low %v523_v56, %v527_v57  ;;  %v578_v56 = vld [vmem:[#allocation5 + $0xdc0] sm:$0xff] }
 0x103   :  { %v582_v57 = vld [vmem:[#allocation5 + $0xde0] sm:$0xff] }
 0x104   :  { %3353 = vmatpush1.bf16.msra.mxu0 %v4949_v1  ;;  %3517 = vmatpush1.bf16.msra.mxu1 %v4951_v2  ;;  %v121_v1 = vcombine.high %v5715_v55, %v5715_v55  ;;  %v5721_v2 = vpack.c.bf16 %v5698_v33, %v5698_v33  ;;  %v5013_v33 = vcombine.low %v530_v62, %v534_v0 }
 0x105   :  { %3354 = vmatprep.subr.bf16.mxu0 %v4958_v3  ;;  %3518 = vmatprep.subr.bf16.mxu1 %v4960_v4  ;;  %v535_v3 = vld [vmem:[#allocation5 + $0xc68] sm:$0xff]  ;;  %v5005_v4 = vcombine.low %v522_v54, %v526_v16  ;;  %v5054_v54 = vcombine.high %v570_v46, %v574_v47  ;;  %v5062_v62 = vcombine.high %v578_v56, %v582_v57 }
 0x106   :  { %v5016_v7 = vcombine.high %v531_v53, %v535_v3  ;;  %v5015_v14 = vcombine.low %v531_v53, %v535_v3  ;;  %v590_v53 = vld [vmem:[#allocation5 + $0xe20] sm:$0xff]  ;;  %v587_v3 = vld [vmem:[#allocation5 + $0xe08] sm:$0xff] }
 0x108   :  { %3355 = vmatpush1.bf16.msra.mxu0 %v4957_v10  ;;  %3519 = vmatpush1.bf16.msra.mxu1 %v4959_v11  ;;  %v542_v10 = vld [vmem:[#allocation5 + $0xca0] sm:$0xff]  ;;  %v5723_v11 = vpack.c.bf16 %v121_v1, %v121_v1 }
 0x109   :  { %3356 = vmatprep.subr.bf16.mxu0 %v4966_v12  ;;  %3520 = vmatprep.subr.bf16.mxu1 %v4968_v13  ;;  %v539_v12 = vld [vmem:[#allocation5 + $0xc88] sm:$0xff]  ;;  %v5022_v15 = vcombine.high %v538_v8, %v542_v10  ;;  %v586_v1 = vld [vmem:[#allocation5 + $0xe00] sm:$0xff] }
 0x10a   :  { %v543_v13 = vld [vmem:[#allocation5 + $0xca8] sm:$0xff] }
 0x10b   :  { %v5024_v17 = vcombine.high %v539_v12, %v543_v13  ;;  %v5023_v22 = vcombine.low %v539_v12, %v543_v13  ;;  %v598_v12 = vld [vmem:[#allocation5 + $0xe60] sm:$0xff]  ;;  %v595_v13 = vld [vmem:[#allocation5 + $0xe48] sm:$0xff] }
 0x10c   :  { %3357 = vmatpush1.bf16.msra.mxu0 %v4965_v19  ;;  %3521 = vmatpush1.bf16.msra.mxu1 %v4967_v59  ;;  %v550_v19 = vld [vmem:[#allocation5 + $0xce0] sm:$0xff]  ;;  %v547_v59 = vld [vmem:[#allocation5 + $0xcc8] sm:$0xff] }
 0x10d   :  { %3358 = vmatprep.subr.bf16.mxu0 %v4974_v20  ;;  %3522 = vmatprep.subr.bf16.mxu1 %v4976_v21  ;;  %v551_v20 = vld [vmem:[#allocation5 + $0xce8] sm:$0xff]  ;;  %v5021_v21 = vcombine.low %v538_v8, %v542_v10  ;;  %v5030_v24 = vcombine.high %v546_v18, %v550_v19  ;;  %v594_v10 = vld [vmem:[#allocation5 + $0xe40] sm:$0xff] }
 0x10e   :  { %v5032_v26 = vcombine.high %v547_v59, %v551_v20  ;;  %v5031_v32 = vcombine.low %v547_v59, %v551_v20  ;;  %v606_v59 = vld [vmem:[#allocation5 + $0xea0] sm:$0xff]  ;;  %v603_v20 = vld [vmem:[#allocation5 + $0xe88] sm:$0xff] }
 0x110   :  { %3359 = vmatpush1.bf16.msra.mxu0 %v4973_v28  ;;  %3523 = vmatpush1.bf16.msra.mxu1 %v4975_v29  ;;  %v558_v28 = vld [vmem:[#allocation5 + $0xd20] sm:$0xff]  ;;  %v555_v29 = vld [vmem:[#allocation5 + $0xd08] sm:$0xff] }
 0x111   :  { %3360 = vmatprep.subr.bf16.mxu0 %v4982_v30  ;;  %3524 = vmatprep.subr.bf16.mxu1 %v4984_v31  ;;  %v559_v30 = vld [vmem:[#allocation5 + $0xd28] sm:$0xff]  ;;  %v5029_v31 = vcombine.low %v546_v18, %v550_v19  ;;  %v5038_v34 = vcombine.high %v554_v27, %v558_v28  ;;  %v602_v19 = vld [vmem:[#allocation5 + $0xe80] sm:$0xff] }
 0x112   :  { %v5040_v35 = vcombine.high %v555_v29, %v559_v30  ;;  %v5039_v41 = vcombine.low %v555_v29, %v559_v30  ;;  %v614_v29 = vld [vmem:[#allocation5 + $0xee0] sm:$0xff]  ;;  %v611_v30 = vld [vmem:[#allocation5 + $0xec8] sm:$0xff] }
 0x114   :  { %3361 = vmatpush1.bf16.msra.mxu0 %v4981_v37  ;;  %3525 = vmatpush1.bf16.msra.mxu1 %v4983_v38  ;;  %v566_v37 = vld [vmem:[#allocation5 + $0xd60] sm:$0xff]  ;;  %v563_v38 = vld [vmem:[#allocation5 + $0xd48] sm:$0xff] }
 0x115   :  { %3362 = vmatprep.subr.bf16.mxu0 %v4990_v39  ;;  %3526 = vmatprep.subr.bf16.mxu1 %v4992_v40  ;;  %v567_v39 = vld [vmem:[#allocation5 + $0xd68] sm:$0xff]  ;;  %v5037_v40 = vcombine.low %v554_v27, %v558_v28  ;;  %v5046_v42 = vcombine.high %v562_v63, %v566_v37  ;;  %v610_v28 = vld [vmem:[#allocation5 + $0xec0] sm:$0xff] }
 0x116   :  { %v5048_v45 = vcombine.high %v563_v38, %v567_v39 }
 0x118   :  { %3363 = vmatpush1.bf16.msra.mxu0 %v4989_v48  ;;  %3527 = vmatpush1.bf16.msra.mxu1 %v4991_v49  ;;  %v571_v48 = vld [vmem:[#allocation5 + $0xd88] sm:$0xff] }
 0x119   :  { %3364 = vmatprep.subr.bf16.mxu0 %v4998_v50  ;;  %3528 = vmatprep.subr.bf16.mxu1 %v5000_v52  ;;  %v575_v49 = vld [vmem:[#allocation5 + $0xda8] sm:$0xff]  ;;  %v5045_v50 = vcombine.low %v562_v63, %v566_v37  ;;  %v5047_v52 = vcombine.low %v563_v38, %v567_v39  ;;  %v618_v37 = vld [vmem:[#allocation5 + $0xf00] sm:$0xff] }
 0x11a   :  { %v5056_v16 = vcombine.high %v571_v48, %v575_v49  ;;  %v622_v38 = vld [vmem:[#allocation5 + $0xf20] sm:$0xff]  ;;  %v619_v39 = vld [vmem:[#allocation5 + $0xf08] sm:$0xff] }
 0x11c   :  { %3365 = vmatpush1.bf16.msra.mxu0 %v4997_v58  ;;  %3529 = vmatpush1.bf16.msra.mxu1 %v4999_v23  ;;  %v579_v58 = vld [vmem:[#allocation5 + $0xdc8] sm:$0xff] }
 0x11d   :  { %3375 = vmatprep.subr.bf16.mxu0 %v5006_v60  ;;  %3539 = vmatprep.subr.bf16.mxu1 %v5008_v61  ;;  %v583_v23 = vld [vmem:[#allocation5 + $0xde8] sm:$0xff]  ;;  %v5053_v60 = vcombine.low %v570_v46, %v574_v47  ;;  %v5055_v61 = vcombine.low %v571_v48, %v575_v49  ;;  %v626_v47 = vld [vmem:[#allocation5 + $0xf40] sm:$0xff] }
 0x11e   :  { %v5064_v0 = vcombine.high %v579_v58, %v583_v23  ;;  %v630_v48 = vld [vmem:[#allocation5 + $0xf60] sm:$0xff]  ;;  %v627_v49 = vld [vmem:[#allocation5 + $0xf48] sm:$0xff] }
 0x11f   :  { %3367 = vmatmul.mubr.bf16.vlgmr.msra.gmra.mrb[0].mxu0 %v5721_v2  ;;  %3531 = vmatmul.mubr.bf16.vlgmr.msra.gmra.mrb[0].mxu1 %v5721_v2 }
 0x120   :  { %3376 = vmatpush1.bf16.msra.mxu0 %v5005_v4  ;;  %3540 = vmatpush1.bf16.msra.mxu1 %v5007_v5  ;;  %v591_v4 = vld [vmem:[#allocation5 + $0xe28] sm:$0xff]  ;;  %v5061_v5 = vcombine.low %v578_v56, %v582_v57  ;;  %v634_v57 = vld [vmem:[#allocation5 + $0xf80] sm:$0xff] }
 0x121   :  { %3377 = vmatprep.subr.bf16.mxu0 %v5014_v6  ;;  %3541 = vmatprep.subr.bf16.mxu1 %v5016_v7  ;;  %v5063_v6 = vcombine.low %v579_v58, %v583_v23  ;;  %v5070_v7 = vcombine.high %v586_v1, %v590_v53  ;;  %v5072_v8 = vcombine.high %v587_v3, %v591_v4  ;;  %v638_v58 = vld [vmem:[#allocation5 + $0xfa0] sm:$0xff]  ;;  %v635_v23 = vld [vmem:[#allocation5 + $0xf88] sm:$0xff] }
 0x122   :  { %3407 = vmatprep.mubr.bf16.mxu0 %v5723_v11  ;;  %3571 = vmatprep.mubr.bf16.mxu1 %v5723_v11 }
 0x124   :  { %3378 = vmatpush1.bf16.msra.mxu0 %v5013_v33  ;;  %3542 = vmatpush1.bf16.msra.mxu1 %v5015_v14  ;;  %v599_v33 = vld [vmem:[#allocation5 + $0xe68] sm:$0xff]  ;;  %v5069_v14 = vcombine.low %v586_v1, %v590_v53  ;;  %v642_v53 = vld [vmem:[#allocation5 + $0xfc0] sm:$0xff] }
 0x125   :  { %3379 = vmatprep.subr.bf16.mxu0 %v5022_v15  ;;  %3543 = vmatprep.subr.bf16.mxu1 %v5024_v17  ;;  %v5071_v15 = vcombine.low %v587_v3, %v591_v4  ;;  %v5078_v17 = vcombine.high %v594_v10, %v598_v12  ;;  %v5080_v18 = vcombine.high %v595_v13, %v599_v33  ;;  %v646_v3 = vld [vmem:[#allocation5 + $0xfe0] sm:$0xff]  ;;  %v643_v4 = vld [vmem:[#allocation5 + $0xfc8] sm:$0xff] }
 0x128   :  { %3380 = vmatpush1.bf16.msra.mxu0 %v5021_v21  ;;  %3544 = vmatpush1.bf16.msra.mxu1 %v5023_v22  ;;  %v607_v21 = vld [vmem:[#allocation5 + $0xea8] sm:$0xff]  ;;  %v5077_v22 = vcombine.low %v594_v10, %v598_v12  ;;  %v140_v12 = vld [vmem:[#allocation5 + $0x10] sm:$0xff] }
 0x129   :  { %3381 = vmatprep.subr.bf16.mxu0 %v5030_v24  ;;  %3545 = vmatprep.subr.bf16.mxu1 %v5032_v26  ;;  %v5079_v24 = vcombine.low %v595_v13, %v599_v33  ;;  %v5086_v26 = vcombine.high %v602_v19, %v606_v59  ;;  %v5088_v27 = vcombine.high %v603_v20, %v607_v21  ;;  %v144_v13 = vld [vmem:[#allocation5 + $0x30] sm:$0xff]  ;;  %v141_v33 = vld [vmem:[#allocation5 + $0x18] sm:$0xff] }
 0x12c   :  { %3382 = vmatpush1.bf16.msra.mxu0 %v5029_v31  ;;  %3546 = vmatpush1.bf16.msra.mxu1 %v5031_v32  ;;  %v615_v31 = vld [vmem:[#allocation5 + $0xee8] sm:$0xff]  ;;  %v5085_v32 = vcombine.low %v602_v19, %v606_v59  ;;  %v148_v59 = vld [vmem:[#allocation5 + $0x50] sm:$0xff] }
 0x12d   :  { %3383 = vmatprep.subr.bf16.mxu0 %v5038_v34  ;;  %3547 = vmatprep.subr.bf16.mxu1 %v5040_v35  ;;  %v5087_v34 = vcombine.low %v603_v20, %v607_v21  ;;  %v5094_v35 = vcombine.high %v610_v28, %v614_v29  ;;  %v5096_v63 = vcombine.high %v611_v30, %v615_v31  ;;  %v152_v20 = vld [vmem:[#allocation5 + $0x70] sm:$0xff] }
 0x12e   :  { %v5731_v21 = vpack.c.bf16 %v5715_v55, %v5715_v55  ;;  %v4633_v55 = vcombine.low %v148_v59, %v152_v20 }
 0x130   :  { %3384 = vmatpush1.bf16.msra.mxu0 %v5037_v40  ;;  %3548 = vmatpush1.bf16.msra.mxu1 %v5039_v41  ;;  %v623_v40 = vld [vmem:[#allocation5 + $0xf28] sm:$0xff]  ;;  %v5093_v41 = vcombine.low %v610_v28, %v614_v29  ;;  %v4634_v28 = vcombine.high %v148_v59, %v152_v20  ;;  %v204_v59 = vld [vmem:[#allocation5 + $0x210] sm:$0xff] }
 0x131   :  { %3385 = vmatprep.subr.bf16.mxu0 %v5046_v42  ;;  %3549 = vmatprep.subr.bf16.mxu1 %v5048_v45  ;;  %v5095_v42 = vcombine.low %v611_v30, %v615_v31  ;;  %v5102_v45 = vcombine.high %v618_v37, %v622_v38  ;;  %v5104_v46 = vcombine.high %v619_v39, %v623_v40  ;;  %v156_v30 = vld [vmem:[#allocation5 + $0x90] sm:$0xff] }
 0x132   :  { %v160_v31 = vld [vmem:[#allocation5 + $0xb0] sm:$0xff] }
 0x133   :  { %v208_v20 = vld [vmem:[#allocation5 + $0x230] sm:$0xff] }
 0x134   :  { %3386 = vmatpush1.bf16.msra.mxu0 %v5045_v50  ;;  %3550 = vmatpush1.bf16.msra.mxu1 %v5047_v52  ;;  %v631_v50 = vld [vmem:[#allocation5 + $0xf68] sm:$0xff]  ;;  %v5101_v52 = vcombine.low %v618_v37, %v622_v38  ;;  %v164_v38 = vld [vmem:[#allocation5 + $0xd0] sm:$0xff] }
 0x135   :  { %3387 = vmatprep.subr.bf16.mxu0 %v5054_v54  ;;  %3551 = vmatprep.subr.bf16.mxu1 %v5056_v16  ;;  %v5103_v54 = vcombine.low %v619_v39, %v623_v40  ;;  %v5110_v16 = vcombine.high %v626_v47, %v630_v48  ;;  %v5112_v56 = vcombine.high %v627_v49, %v631_v50  ;;  %v168_v39 = vld [vmem:[#allocation5 + $0xf0] sm:$0xff]  ;;  %v165_v40 = vld [vmem:[#allocation5 + $0xd8] sm:$0xff] }
 0x138   :  { %3388 = vmatpush1.bf16.msra.mxu0 %v5053_v60  ;;  %3552 = vmatpush1.bf16.msra.mxu1 %v5055_v61  ;;  %v639_v60 = vld [vmem:[#allocation5 + $0xfa8] sm:$0xff]  ;;  %v5109_v61 = vcombine.low %v626_v47, %v630_v48  ;;  %v172_v48 = vld [vmem:[#allocation5 + $0x110] sm:$0xff] }
 0x139   :  { %3389 = vmatprep.subr.bf16.mxu0 %v5062_v62  ;;  %3553 = vmatprep.subr.bf16.mxu1 %v5064_v0  ;;  %v5111_v62 = vcombine.low %v627_v49, %v631_v50  ;;  %v5118_v0 = vcombine.high %v634_v57, %v638_v58  ;;  %v5120_v1 = vcombine.high %v635_v23, %v639_v60  ;;  %v176_v49 = vld [vmem:[#allocation5 + $0x130] sm:$0xff]  ;;  %v173_v50 = vld [vmem:[#allocation5 + $0x118] sm:$0xff] }
 0x13c   :  { %3390 = vmatpush1.bf16.msra.mxu0 %v5061_v5  ;;  %3554 = vmatpush1.bf16.msra.mxu1 %v5063_v6  ;;  %v647_v5 = vld [vmem:[#allocation5 + $0xfe8] sm:$0xff]  ;;  %v5117_v6 = vcombine.low %v634_v57, %v638_v58  ;;  %v180_v57 = vld [vmem:[#allocation5 + $0x150] sm:$0xff] }
 0x13d   :  { %3391 = vmatprep.subr.bf16.mxu0 %v5070_v7  ;;  %3555 = vmatprep.subr.bf16.mxu1 %v5072_v8  ;;  %v5119_v7 = vcombine.low %v635_v23, %v639_v60  ;;  %v5126_v8 = vcombine.high %v642_v53, %v646_v3  ;;  %v5128_v10 = vcombine.high %v643_v4, %v647_v5  ;;  %v184_v58 = vld [vmem:[#allocation5 + $0x170] sm:$0xff]  ;;  %v181_v23 = vld [vmem:[#allocation5 + $0x158] sm:$0xff] }
 0x13e   :  { %v185_v60 = vld [vmem:[#allocation5 + $0x178] sm:$0xff] }
 0x140   :  { %3392 = vmatpush1.bf16.msra.mxu0 %v5069_v14  ;;  %3556 = vmatpush1.bf16.msra.mxu1 %v5071_v15  ;;  %v145_v14 = vld [vmem:[#allocation5 + $0x38] sm:$0xff]  ;;  %v5125_v15 = vcombine.low %v642_v53, %v646_v3  ;;  %v188_v53 = vld [vmem:[#allocation5 + $0x190] sm:$0xff] }
 0x141   :  { %3393 = vmatprep.subr.bf16.mxu0 %v5078_v17  ;;  %3557 = vmatprep.subr.bf16.mxu1 %v5080_v18  ;;  %v5127_v17 = vcombine.low %v643_v4, %v647_v5  ;;  %v4626_v18 = vcombine.high %v140_v12, %v144_v13  ;;  %v4628_v19 = vcombine.high %v141_v33, %v145_v14  ;;  %v192_v3 = vld [vmem:[#allocation5 + $0x1b0] sm:$0xff]  ;;  %v189_v4 = vld [vmem:[#allocation5 + $0x198] sm:$0xff] }
 0x142   :  { %v193_v5 = vld [vmem:[#allocation5 + $0x1b8] sm:$0xff] }
 0x144   :  { %3394 = vmatpush1.bf16.msra.mxu0 %v5077_v22  ;;  %3558 = vmatpush1.bf16.msra.mxu1 %v5079_v24  ;;  %v149_v22 = vld [vmem:[#allocation5 + $0x58] sm:$0xff] }
 0x145   :  { %3395 = vmatprep.subr.bf16.mxu0 %v5086_v26  ;;  %3559 = vmatprep.subr.bf16.mxu1 %v5088_v27  ;;  %v153_v24 = vld [vmem:[#allocation5 + $0x78] sm:$0xff]  ;;  %v4625_v26 = vcombine.low %v140_v12, %v144_v13  ;;  %v4627_v27 = vcombine.low %v141_v33, %v145_v14  ;;  %v196_v12 = vld [vmem:[#allocation5 + $0x1d0] sm:$0xff] }
 0x146   :  { %v4636_v29 = vcombine.high %v149_v22, %v153_v24  ;;  %v200_v13 = vld [vmem:[#allocation5 + $0x1f0] sm:$0xff]  ;;  %v197_v33 = vld [vmem:[#allocation5 + $0x1d8] sm:$0xff] }
 0x147   :  { %v201_v14 = vld [vmem:[#allocation5 + $0x1f8] sm:$0xff] }
 0x148   :  { %3396 = vmatpush1.bf16.msra.mxu0 %v5085_v32  ;;  %3560 = vmatpush1.bf16.msra.mxu1 %v5087_v34  ;;  %v157_v32 = vld [vmem:[#allocation5 + $0x98] sm:$0xff] }
 0x149   :  { %3397 = vmatprep.subr.bf16.mxu0 %v5094_v35  ;;  %3561 = vmatprep.subr.bf16.mxu1 %v5096_v63  ;;  %v161_v34 = vld [vmem:[#allocation5 + $0xb8] sm:$0xff]  ;;  %v4635_v35 = vcombine.low %v149_v22, %v153_v24  ;;  %v4642_v63 = vcombine.high %v156_v30, %v160_v31 }
 0x14a   :  { %v4644_v37 = vcombine.high %v157_v32, %v161_v34  ;;  %v205_v22 = vld [vmem:[#allocation5 + $0x218] sm:$0xff] }
 0x14b   :  { %v209_v24 = vld [vmem:[#allocation5 + $0x238] sm:$0xff] }
 0x14c   :  { %3398 = vmatpush1.bf16.msra.mxu0 %v5093_v41  ;;  %3562 = vmatpush1.bf16.msra.mxu1 %v5095_v42  ;;  %v169_v41 = vld [vmem:[#allocation5 + $0xf8] sm:$0xff]  ;;  %v4641_v42 = vcombine.low %v156_v30, %v160_v31  ;;  %v212_v30 = vld [vmem:[#allocation5 + $0x250] sm:$0xff] }
 0x14d   :  { %3399 = vmatprep.subr.bf16.mxu0 %v5102_v45  ;;  %3563 = vmatprep.subr.bf16.mxu1 %v5104_v46  ;;  %v4643_v45 = vcombine.low %v157_v32, %v161_v34  ;;  %v4650_v46 = vcombine.high %v164_v38, %v168_v39  ;;  %v4652_v47 = vcombine.high %v165_v40, %v169_v41  ;;  %v216_v31 = vld [vmem:[#allocation5 + $0x270] sm:$0xff]  ;;  %v213_v32 = vld [vmem:[#allocation5 + $0x258] sm:$0xff] }
 0x14e   :  { %v217_v34 = vld [vmem:[#allocation5 + $0x278] sm:$0xff] }
 0x150   :  { %3400 = vmatpush1.bf16.msra.mxu0 %v5101_v52  ;;  %3564 = vmatpush1.bf16.msra.mxu1 %v5103_v54  ;;  %v177_v52 = vld [vmem:[#allocation5 + $0x138] sm:$0xff]  ;;  %v4649_v54 = vcombine.low %v164_v38, %v168_v39  ;;  %v220_v38 = vld [vmem:[#allocation5 + $0x290] sm:$0xff] }
 0x151   :  { %3401 = vmatprep.subr.bf16.mxu0 %v5110_v16  ;;  %3565 = vmatprep.subr.bf16.mxu1 %v5112_v56  ;;  %v4651_v16 = vcombine.low %v165_v40, %v169_v41  ;;  %v4658_v56 = vcombine.high %v172_v48, %v176_v49  ;;  %v224_v39 = vld [vmem:[#allocation5 + $0x2b0] sm:$0xff]  ;;  %v221_v40 = vld [vmem:[#allocation5 + $0x298] sm:$0xff] }
 0x152   :  { %v225_v41 = vld [vmem:[#allocation5 + $0x2b8] sm:$0xff] }
 0x154   :  { %3402 = vmatpush1.bf16.msra.mxu0 %v5109_v61  ;;  %3566 = vmatpush1.bf16.msra.mxu1 %v5111_v62  ;;  %v4657_v61 = vcombine.low %v172_v48, %v176_v49  ;;  %v4659_v62 = vcombine.low %v173_v50, %v177_v52  ;;  %v228_v48 = vld [vmem:[#allocation5 + $0x2d0] sm:$0xff] }
 0x155   :  { %3403 = vmatprep.subr.bf16.mxu0 %v5118_v0  ;;  %3567 = vmatprep.subr.bf16.mxu1 %v5120_v1  ;;  %v4666_v0 = vcombine.high %v180_v57, %v184_v58  ;;  %v4668_v1 = vcombine.high %v181_v23, %v185_v60  ;;  %v232_v49 = vld [vmem:[#allocation5 + $0x2f0] sm:$0xff] }
 0x158   :  { %3404 = vmatpush1.bf16.msra.mxu0 %v5117_v6  ;;  %3568 = vmatpush1.bf16.msra.mxu1 %v5119_v7  ;;  %v4665_v6 = vcombine.low %v180_v57, %v184_v58  ;;  %v4667_v7 = vcombine.low %v181_v23, %v185_v60  ;;  %v236_v57 = vld [vmem:[#allocation5 + $0x310] sm:$0xff]  ;;  %v237_v23 = vld [vmem:[#allocation5 + $0x318] sm:$0xff] }
 0x159   :  { %3405 = vmatprep.subr.bf16.mxu0 %v5126_v8  ;;  %3569 = vmatprep.subr.bf16.mxu1 %v5128_v10  ;;  %v4674_v8 = vcombine.high %v188_v53, %v192_v3  ;;  %v4676_v10 = vcombine.high %v189_v4, %v193_v5  ;;  %v240_v58 = vld [vmem:[#allocation5 + $0x330] sm:$0xff]  ;;  %v241_v60 = vld [vmem:[#allocation5 + $0x338] sm:$0xff] }
 0x15c   :  { %3406 = vmatpush1.bf16.msra.mxu0 %v5125_v15  ;;  %3570 = vmatpush1.bf16.msra.mxu1 %v5127_v17  ;;  %v4673_v15 = vcombine.low %v188_v53, %v192_v3  ;;  %v4675_v17 = vcombine.low %v189_v4, %v193_v5  ;;  %v244_v53 = vld [vmem:[#allocation5 + $0x350] sm:$0xff]  ;;  %v245_v4 = vld [vmem:[#allocation5 + $0x358] sm:$0xff] }
 0x15d   :  { %3580 = vmatprep.subr.bf16.mxu0 %v4626_v18  ;;  %3744 = vmatprep.subr.bf16.mxu1 %v4628_v19  ;;  %v4682_v18 = vcombine.high %v196_v12, %v200_v13  ;;  %v4684_v19 = vcombine.high %v197_v33, %v201_v14  ;;  %v248_v3 = vld [vmem:[#allocation5 + $0x370] sm:$0xff]  ;;  %v249_v5 = vld [vmem:[#allocation5 + $0x378] sm:$0xff] }
 0x15f   :  { %3408 = vmatmul.mubr.bf16.vlgmr.msra.gmra.mrb[0].mxu0 %v5731_v21  ;;  %3572 = vmatmul.mubr.bf16.vlgmr.msra.gmra.mrb[0].mxu1 %v5731_v21 }
 0x160   :  { %3581 = vmatpush1.bf16.msra.mxu0 %v4625_v26  ;;  %3745 = vmatpush1.bf16.msra.mxu1 %v4627_v27  ;;  %v4681_v26 = vcombine.low %v196_v12, %v200_v13  ;;  %v4683_v27 = vcombine.low %v197_v33, %v201_v14  ;;  %v252_v12 = vld [vmem:[#allocation5 + $0x390] sm:$0xff]  ;;  %v253_v33 = vld [vmem:[#allocation5 + $0x398] sm:$0xff] }
 0x161   :  { %3582 = vmatprep.subr.bf16.mxu0 %v4634_v28  ;;  %3746 = vmatprep.subr.bf16.mxu1 %v4636_v29  ;;  %v4690_v28 = vcombine.high %v204_v59, %v208_v20  ;;  %v4692_v29 = vcombine.high %v205_v22, %v209_v24  ;;  %v256_v13 = vld [vmem:[#allocation5 + $0x3b0] sm:$0xff]  ;;  %v257_v14 = vld [vmem:[#allocation5 + $0x3b8] sm:$0xff] }
 0x162   :  { %3612 = vmatprep.mubr.bf16.mxu0 %v5673_v9  ;;  %3776 = vmatprep.mubr.bf16.mxu1 %v5673_v9  ;;  %v4660_v9 = vcombine.high %v173_v50, %v177_v52  ;;  %v229_v50 = vld [vmem:[#allocation5 + $0x2d8] sm:$0xff] }
 0x163   :  { %v233_v52 = vld [vmem:[#allocation5 + $0x2f8] sm:$0xff] }
 0x164   :  { %3583 = vmatpush1.bf16.msra.mxu0 %v4633_v55  ;;  %3747 = vmatpush1.bf16.msra.mxu1 %v4635_v35  ;;  %v4689_v55 = vcombine.low %v204_v59, %v208_v20  ;;  %v4691_v35 = vcombine.low %v205_v22, %v209_v24  ;;  %v260_v59 = vld [vmem:[#allocation5 + $0x3d0] sm:$0xff]  ;;  %v261_v22 = vld [vmem:[#allocation5 + $0x3d8] sm:$0xff] }
 0x165   :  { %3584 = vmatprep.subr.bf16.mxu0 %v4642_v63  ;;  %3748 = vmatprep.subr.bf16.mxu1 %v4644_v37  ;;  %v4698_v63 = vcombine.high %v212_v30, %v216_v31  ;;  %v4700_v37 = vcombine.high %v213_v32, %v217_v34  ;;  %v264_v20 = vld [vmem:[#allocation5 + $0x3f0] sm:$0xff]  ;;  %v265_v24 = vld [vmem:[#allocation5 + $0x3f8] sm:$0xff] }
 0x168   :  { %3585 = vmatpush1.bf16.msra.mxu0 %v4641_v42  ;;  %3749 = vmatpush1.bf16.msra.mxu1 %v4643_v45  ;;  %v4697_v42 = vcombine.low %v212_v30, %v216_v31  ;;  %v4699_v45 = vcombine.low %v213_v32, %v217_v34  ;;  %v268_v30 = vld [vmem:[#allocation5 + $0x410] sm:$0xff]  ;;  %v269_v32 = vld [vmem:[#allocation5 + $0x418] sm:$0xff] }
 0x169   :  { %3586 = vmatprep.subr.bf16.mxu0 %v4650_v46  ;;  %3750 = vmatprep.subr.bf16.mxu1 %v4652_v47  ;;  %v4706_v46 = vcombine.high %v220_v38, %v224_v39  ;;  %v4708_v47 = vcombine.high %v221_v40, %v225_v41  ;;  %v272_v31 = vld [vmem:[#allocation5 + $0x430] sm:$0xff]  ;;  %v273_v34 = vld [vmem:[#allocation5 + $0x438] sm:$0xff] }
 0x16c   :  { %3587 = vmatpush1.bf16.msra.mxu0 %v4649_v54  ;;  %3751 = vmatpush1.bf16.msra.mxu1 %v4651_v16  ;;  %v4705_v54 = vcombine.low %v220_v38, %v224_v39  ;;  %v4707_v16 = vcombine.low %v221_v40, %v225_v41  ;;  %v276_v38 = vld [vmem:[#allocation5 + $0x450] sm:$0xff]  ;;  %v277_v40 = vld [vmem:[#allocation5 + $0x458] sm:$0xff] }
 0x16d   :  { %3588 = vmatprep.subr.bf16.mxu0 %v4658_v56  ;;  %3752 = vmatprep.subr.bf16.mxu1 %v4660_v9  ;;  %v4714_v56 = vcombine.high %v228_v48, %v232_v49  ;;  %v4716_v9 = vcombine.high %v229_v50, %v233_v52  ;;  %v280_v39 = vld [vmem:[#allocation5 + $0x470] sm:$0xff]  ;;  %v281_v41 = vld [vmem:[#allocation5 + $0x478] sm:$0xff] }
 0x170   :  { %3589 = vmatpush1.bf16.msra.mxu0 %v4657_v61  ;;  %3753 = vmatpush1.bf16.msra.mxu1 %v4659_v62  ;;  %v4713_v61 = vcombine.low %v228_v48, %v232_v49  ;;  %v4715_v62 = vcombine.low %v229_v50, %v233_v52  ;;  %v284_v48 = vld [vmem:[#allocation5 + $0x490] sm:$0xff]  ;;  %v285_v50 = vld [vmem:[#allocation5 + $0x498] sm:$0xff] }
 0x171   :  { %3590 = vmatprep.subr.bf16.mxu0 %v4666_v0  ;;  %3754 = vmatprep.subr.bf16.mxu1 %v4668_v1  ;;  %v4722_v0 = vcombine.high %v236_v57, %v240_v58  ;;  %v4724_v1 = vcombine.high %v237_v23, %v241_v60  ;;  %v288_v49 = vld [vmem:[#allocation5 + $0x4b0] sm:$0xff]  ;;  %v289_v52 = vld [vmem:[#allocation5 + $0x4b8] sm:$0xff] }
 0x174   :  { %3591 = vmatpush1.bf16.msra.mxu0 %v4665_v6  ;;  %3755 = vmatpush1.bf16.msra.mxu1 %v4667_v7  ;;  %v4721_v6 = vcombine.low %v236_v57, %v240_v58  ;;  %v4723_v7 = vcombine.low %v237_v23, %v241_v60  ;;  %v292_v57 = vld [vmem:[#allocation5 + $0x4d0] sm:$0xff]  ;;  %v293_v23 = vld [vmem:[#allocation5 + $0x4d8] sm:$0xff] }
 0x175   :  { %3592 = vmatprep.subr.bf16.mxu0 %v4674_v8  ;;  %3756 = vmatprep.subr.bf16.mxu1 %v4676_v10  ;;  %v4730_v8 = vcombine.high %v244_v53, %v248_v3  ;;  %v4732_v10 = vcombine.high %v245_v4, %v249_v5  ;;  %v296_v58 = vld [vmem:[#allocation5 + $0x4f0] sm:$0xff]  ;;  %v297_v60 = vld [vmem:[#allocation5 + $0x4f8] sm:$0xff] }
 0x178   :  { %3593 = vmatpush1.bf16.msra.mxu0 %v4673_v15  ;;  %3757 = vmatpush1.bf16.msra.mxu1 %v4675_v17  ;;  %v4729_v15 = vcombine.low %v244_v53, %v248_v3  ;;  %v4731_v17 = vcombine.low %v245_v4, %v249_v5  ;;  %v304_v53 = vld [vmem:[#allocation5 + $0x530] sm:$0xff]  ;;  %v301_v3 = vld [vmem:[#allocation5 + $0x518] sm:$0xff]  ;;  %v4777_v5 = vcombine.low %v292_v57, %v296_v58 }
 0x179   :  { %3594 = vmatprep.subr.bf16.mxu0 %v4682_v18  ;;  %3758 = vmatprep.subr.bf16.mxu1 %v4684_v19  ;;  %v4738_v18 = vcombine.high %v252_v12, %v256_v13  ;;  %v4740_v19 = vcombine.high %v253_v33, %v257_v14  ;;  %v305_v4 = vld [vmem:[#allocation5 + $0x538] sm:$0xff] }
 0x17c   :  { %3595 = vmatpush1.bf16.msra.mxu0 %v4681_v26  ;;  %3759 = vmatpush1.bf16.msra.mxu1 %v4683_v27  ;;  %v4737_v26 = vcombine.low %v252_v12, %v256_v13  ;;  %v4739_v27 = vcombine.low %v253_v33, %v257_v14  ;;  %v309_v12 = vld [vmem:[#allocation5 + $0x558] sm:$0xff]  ;;  %v4787_v14 = vcombine.low %v301_v3, %v305_v4 }
 0x17d   :  { %3596 = vmatprep.subr.bf16.mxu0 %v4690_v28  ;;  %3760 = vmatprep.subr.bf16.mxu1 %v4692_v29  ;;  %v4746_v28 = vcombine.high %v260_v59, %v264_v20  ;;  %v4748_v29 = vcombine.high %v261_v22, %v265_v24  ;;  %v313_v13 = vld [vmem:[#allocation5 + $0x578] sm:$0xff] }
 0x180   :  { %3597 = vmatpush1.bf16.msra.mxu0 %v4689_v55  ;;  %3761 = vmatpush1.bf16.msra.mxu1 %v4691_v35  ;;  %v4745_v55 = vcombine.low %v260_v59, %v264_v20  ;;  %v4747_v35 = vcombine.low %v261_v22, %v265_v24  ;;  %v317_v59 = vld [vmem:[#allocation5 + $0x598] sm:$0xff]  ;;  %v4795_v24 = vcombine.low %v309_v12, %v313_v13 }
 0x181   :  { %3598 = vmatprep.subr.bf16.mxu0 %v4698_v63  ;;  %3762 = vmatprep.subr.bf16.mxu1 %v4700_v37  ;;  %v4754_v63 = vcombine.high %v268_v30, %v272_v31  ;;  %v4756_v37 = vcombine.high %v269_v32, %v273_v34  ;;  %v321_v20 = vld [vmem:[#allocation5 + $0x5b8] sm:$0xff] }
 0x184   :  { %3599 = vmatpush1.bf16.msra.mxu0 %v4697_v42  ;;  %3763 = vmatpush1.bf16.msra.mxu1 %v4699_v45  ;;  %v4753_v42 = vcombine.low %v268_v30, %v272_v31  ;;  %v4755_v45 = vcombine.low %v269_v32, %v273_v34  ;;  %v325_v30 = vld [vmem:[#allocation5 + $0x5d8] sm:$0xff]  ;;  %v4803_v34 = vcombine.low %v317_v59, %v321_v20 }
 0x185   :  { %3600 = vmatprep.subr.bf16.mxu0 %v4706_v46  ;;  %3764 = vmatprep.subr.bf16.mxu1 %v4708_v47  ;;  %v4762_v46 = vcombine.high %v276_v38, %v280_v39  ;;  %v4764_v47 = vcombine.high %v277_v40, %v281_v41  ;;  %v329_v31 = vld [vmem:[#allocation5 + $0x5f8] sm:$0xff] }
 0x188   :  { %3601 = vmatpush1.bf16.msra.mxu0 %v4705_v54  ;;  %3765 = vmatpush1.bf16.msra.mxu1 %v4707_v16  ;;  %v4761_v54 = vcombine.low %v276_v38, %v280_v39  ;;  %v4763_v16 = vcombine.low %v277_v40, %v281_v41  ;;  %v333_v38 = vld [vmem:[#allocation5 + $0x618] sm:$0xff]  ;;  %v4811_v41 = vcombine.low %v325_v30, %v329_v31 }
 0x189   :  { %3602 = vmatprep.subr.bf16.mxu0 %v4714_v56  ;;  %3766 = vmatprep.subr.bf16.mxu1 %v4716_v9  ;;  %v4770_v56 = vcombine.high %v284_v48, %v288_v49  ;;  %v4772_v9 = vcombine.high %v285_v50, %v289_v52  ;;  %v337_v39 = vld [vmem:[#allocation5 + $0x638] sm:$0xff] }
 0x18c   :  { %3603 = vmatpush1.bf16.msra.mxu0 %v4713_v61  ;;  %3767 = vmatpush1.bf16.msra.mxu1 %v4715_v62  ;;  %v4769_v61 = vcombine.low %v284_v48, %v288_v49  ;;  %v4778_v62 = vcombine.high %v292_v57, %v296_v58  ;;  %v341_v48 = vld [vmem:[#allocation5 + $0x658] sm:$0xff] }
 0x18d   :  { %3604 = vmatprep.subr.bf16.mxu0 %v4722_v0  ;;  %3768 = vmatprep.subr.bf16.mxu1 %v4724_v1  ;;  %v4780_v0 = vcombine.high %v293_v23, %v297_v60  ;;  %v300_v1 = vld [vmem:[#allocation5 + $0x510] sm:$0xff]  ;;  %v345_v49 = vld [vmem:[#allocation5 + $0x678] sm:$0xff] }
 0x18e   :  { %v4785_v33 = vcombine.low %v300_v1, %v304_v53  ;;  %v349_v57 = vld [vmem:[#allocation5 + $0x698] sm:$0xff] }
 0x18f   :  { %v353_v58 = vld [vmem:[#allocation5 + $0x6b8] sm:$0xff] }
 0x190   :  { %3605 = vmatpush1.bf16.msra.mxu0 %v4721_v6  ;;  %3769 = vmatpush1.bf16.msra.mxu1 %v4723_v7  ;;  %v4779_v6 = vcombine.low %v293_v23, %v297_v60  ;;  %v4786_v7 = vcombine.high %v300_v1, %v304_v53  ;;  %v4827_v60 = vcombine.low %v341_v48, %v345_v49  ;;  %v357_v1 = vld [vmem:[#allocation5 + $0x6d8] sm:$0xff] }
 0x191   :  { %3606 = vmatprep.subr.bf16.mxu0 %v4730_v8  ;;  %3770 = vmatprep.subr.bf16.mxu1 %v4732_v10  ;;  %v308_v8 = vld [vmem:[#allocation5 + $0x550] sm:$0xff]  ;;  %v361_v53 = vld [vmem:[#allocation5 + $0x6f8] sm:$0xff] }
 0x192   :  { %v312_v10 = vld [vmem:[#allocation5 + $0x570] sm:$0xff] }
 0x193   :  { %v4793_v22 = vcombine.low %v308_v8, %v312_v10 }
 0x194   :  { %3607 = vmatpush1.bf16.msra.mxu0 %v4729_v15  ;;  %3771 = vmatpush1.bf16.msra.mxu1 %v4731_v17  ;;  %v4794_v15 = vcombine.high %v308_v8, %v312_v10  ;;  %v4796_v17 = vcombine.high %v309_v12, %v313_v13  ;;  %v365_v8 = vld [vmem:[#allocation5 + $0x718] sm:$0xff]  ;;  %v4843_v13 = vcombine.low %v357_v1, %v361_v53 }
 0x195   :  { %3608 = vmatprep.subr.bf16.mxu0 %v4738_v18  ;;  %3772 = vmatprep.subr.bf16.mxu1 %v4740_v19  ;;  %v316_v18 = vld [vmem:[#allocation5 + $0x590] sm:$0xff]  ;;  %v369_v10 = vld [vmem:[#allocation5 + $0x738] sm:$0xff] }
 0x196   :  { %v320_v19 = vld [vmem:[#allocation5 + $0x5b0] sm:$0xff] }
 0x197   :  { %v4801_v32 = vcombine.low %v316_v18, %v320_v19 }
 0x198   :  { %3609 = vmatpush1.bf16.msra.mxu0 %v4737_v26  ;;  %3773 = vmatpush1.bf16.msra.mxu1 %v4739_v27  ;;  %v4802_v26 = vcombine.high %v316_v18, %v320_v19  ;;  %v4804_v27 = vcombine.high %v317_v59, %v321_v20  ;;  %v373_v18 = vld [vmem:[#allocation5 + $0x758] sm:$0xff]  ;;  %v4851_v20 = vcombine.low %v365_v8, %v369_v10 }
 0x199   :  { %3610 = vmatprep.subr.bf16.mxu0 %v4746_v28  ;;  %3774 = vmatprep.subr.bf16.mxu1 %v4748_v29  ;;  %v324_v28 = vld [vmem:[#allocation5 + $0x5d0] sm:$0xff]  ;;  %v377_v19 = vld [vmem:[#allocation5 + $0x778] sm:$0xff] }
 0x19a   :  { %v328_v29 = vld [vmem:[#allocation5 + $0x5f0] sm:$0xff] }
 0x19b   :  { %v4809_v40 = vcombine.low %v324_v28, %v328_v29 }
 0x19c   :  { %3611 = vmatpush1.bf16.msra.mxu0 %v4745_v55  ;;  %3775 = vmatpush1.bf16.msra.mxu1 %v4747_v35  ;;  %v4810_v55 = vcombine.high %v324_v28, %v328_v29  ;;  %v4812_v35 = vcombine.high %v325_v30, %v329_v31  ;;  %v381_v28 = vld [vmem:[#allocation5 + $0x798] sm:$0xff]  ;;  %v4859_v31 = vcombine.low %v373_v18, %v377_v19 }
 0x19d   :  { %3621 = vmatprep.subr.bf16.mxu0 %v4754_v63  ;;  %3785 = vmatprep.subr.bf16.mxu1 %v4756_v37  ;;  %v332_v63 = vld [vmem:[#allocation5 + $0x610] sm:$0xff]  ;;  %v385_v29 = vld [vmem:[#allocation5 + $0x7b8] sm:$0xff] }
 0x19e   :  { %v336_v37 = vld [vmem:[#allocation5 + $0x630] sm:$0xff] }
 0x19f   :  { %3613 = vmatmul.mubr.bf16.vlgmr.msra.gmra.mrb[4].mxu0 %v5686_v25  ;;  %3777 = vmatmul.mubr.bf16.vlgmr.msra.gmra.mrb[4].mxu1 %v5686_v25  ;;  %v4771_v25 = vcombine.low %v285_v50, %v289_v52  ;;  %v4817_v50 = vcombine.low %v332_v63, %v336_v37  ;;  %v4819_v52 = vcombine.low %v333_v38, %v337_v39 }
 0x1a0   :  { %3622 = vmatpush1.bf16.msra.mxu0 %v4753_v42  ;;  %3786 = vmatpush1.bf16.msra.mxu1 %v4755_v45  ;;  %v4818_v42 = vcombine.high %v332_v63, %v336_v37  ;;  %v4820_v45 = vcombine.high %v333_v38, %v337_v39  ;;  %v389_v63 = vld [vmem:[#allocation5 + $0x7d8] sm:$0xff]  ;;  %v4867_v39 = vcombine.low %v381_v28, %v385_v29 }
 0x1a1   :  { %3623 = vmatprep.subr.bf16.mxu0 %v4762_v46  ;;  %3787 = vmatprep.subr.bf16.mxu1 %v4764_v47  ;;  %v340_v46 = vld [vmem:[#allocation5 + $0x650] sm:$0xff]  ;;  %v393_v37 = vld [vmem:[#allocation5 + $0x7f8] sm:$0xff] }
 0x1a2   :  { %3653 = vmatprep.mubr.bf16.mxu0 %v5688_v36  ;;  %3817 = vmatprep.mubr.bf16.mxu1 %v5688_v36  ;;  %v4788_v36 = vcombine.high %v301_v3, %v305_v4  ;;  %v344_v47 = vld [vmem:[#allocation5 + $0x670] sm:$0xff]  ;;  %v4835_v4 = vcombine.low %v349_v57, %v353_v58 }
 0x1a3   :  { %v4825_v23 = vcombine.low %v340_v46, %v344_v47 }
 0x1a4   :  { %3624 = vmatpush1.bf16.msra.mxu0 %v4761_v54  ;;  %3788 = vmatpush1.bf16.msra.mxu1 %v4763_v16  ;;  %v4826_v54 = vcombine.high %v340_v46, %v344_v47  ;;  %v4828_v16 = vcombine.high %v341_v48, %v345_v49  ;;  %v397_v46 = vld [vmem:[#allocation5 + $0x818] sm:$0xff]  ;;  %v4875_v49 = vcombine.low %v389_v63, %v393_v37 }
 0x1a5   :  { %3625 = vmatprep.subr.bf16.mxu0 %v4770_v56  ;;  %3789 = vmatprep.subr.bf16.mxu1 %v4772_v9  ;;  %v348_v56 = vld [vmem:[#allocation5 + $0x690] sm:$0xff]  ;;  %v401_v47 = vld [vmem:[#allocation5 + $0x838] sm:$0xff] }
 0x1a6   :  { %v352_v9 = vld [vmem:[#allocation5 + $0x6b0] sm:$0xff] }
 0x1a7   :  { %v4833_v3 = vcombine.low %v348_v56, %v352_v9 }
 0x1a8   :  { %3626 = vmatpush1.bf16.msra.mxu0 %v4769_v61  ;;  %3790 = vmatpush1.bf16.msra.mxu1 %v4771_v25  ;;  %v4834_v61 = vcombine.high %v348_v56, %v352_v9  ;;  %v4836_v25 = vcombine.high %v349_v57, %v353_v58  ;;  %v405_v56 = vld [vmem:[#allocation5 + $0x858] sm:$0xff]  ;;  %v4883_v58 = vcombine.low %v397_v46, %v401_v47 }
 0x1a9   :  { %3627 = vmatprep.subr.bf16.mxu0 %v4778_v62  ;;  %3791 = vmatprep.subr.bf16.mxu1 %v4780_v0  ;;  %v356_v62 = vld [vmem:[#allocation5 + $0x6d0] sm:$0xff]  ;;  %v409_v9 = vld [vmem:[#allocation5 + $0x878] sm:$0xff] }
 0x1aa   :  { %v360_v0 = vld [vmem:[#allocation5 + $0x6f0] sm:$0xff] }
 0x1ab   :  { %v4841_v12 = vcombine.low %v356_v62, %v360_v0 }
 0x1ac   :  { %3628 = vmatpush1.bf16.msra.mxu0 %v4777_v5  ;;  %3792 = vmatpush1.bf16.msra.mxu1 %v4779_v6  ;;  %v4842_v5 = vcombine.high %v356_v62, %v360_v0  ;;  %v4844_v6 = vcombine.high %v357_v1, %v361_v53  ;;  %v413_v62 = vld [vmem:[#allocation5 + $0x898] sm:$0xff]  ;;  %v4891_v53 = vcombine.low %v405_v56, %v409_v9 }
 0x1ad   :  { %3629 = vmatprep.subr.bf16.mxu0 %v4786_v7  ;;  %3793 = vmatprep.subr.bf16.mxu1 %v4788_v36  ;;  %v364_v7 = vld [vmem:[#allocation5 + $0x710] sm:$0xff]  ;;  %v417_v0 = vld [vmem:[#allocation5 + $0x8b8] sm:$0xff] }
 0x1ae   :  { %v368_v36 = vld [vmem:[#allocation5 + $0x730] sm:$0xff] }
 0x1af   :  { %v4849_v59 = vcombine.low %v364_v7, %v368_v36 }
 0x1b0   :  { %3630 = vmatpush1.bf16.msra.mxu0 %v4785_v33  ;;  %3794 = vmatpush1.bf16.msra.mxu1 %v4787_v14  ;;  %v4850_v33 = vcombine.high %v364_v7, %v368_v36  ;;  %v4852_v14 = vcombine.high %v365_v8, %v369_v10  ;;  %v421_v7 = vld [vmem:[#allocation5 + $0x8d8] sm:$0xff] }
 0x1b1   :  { %3631 = vmatprep.subr.bf16.mxu0 %v4794_v15  ;;  %3795 = vmatprep.subr.bf16.mxu1 %v4796_v17  ;;  %v372_v15 = vld [vmem:[#allocation5 + $0x750] sm:$0xff]  ;;  %v425_v36 = vld [vmem:[#allocation5 + $0x8f8] sm:$0xff] }
 0x1b2   :  { %v376_v17 = vld [vmem:[#allocation5 + $0x770] sm:$0xff] }
 0x1b3   :  { %v4857_v30 = vcombine.low %v372_v15, %v376_v17 }
 0x1b4   :  { %3632 = vmatpush1.bf16.msra.mxu0 %v4793_v22  ;;  %3796 = vmatpush1.bf16.msra.mxu1 %v4795_v24  ;;  %v4858_v22 = vcombine.high %v372_v15, %v376_v17  ;;  %v4860_v24 = vcombine.high %v373_v18, %v377_v19  ;;  %v433_v15 = vld [vmem:[#allocation5 + $0x938] sm:$0xff]  ;;  %v4907_v18 = vcombine.low %v421_v7, %v425_v36 }
 0x1b5   :  { %3633 = vmatprep.subr.bf16.mxu0 %v4802_v26  ;;  %3797 = vmatprep.subr.bf16.mxu1 %v4804_v27  ;;  %v380_v26 = vld [vmem:[#allocation5 + $0x790] sm:$0xff] }
 0x1b6   :  { %v384_v27 = vld [vmem:[#allocation5 + $0x7b0] sm:$0xff] }
 0x1b7   :  { %v4865_v38 = vcombine.low %v380_v26, %v384_v27 }
 0x1b8   :  { %3634 = vmatpush1.bf16.msra.mxu0 %v4801_v32  ;;  %3798 = vmatpush1.bf16.msra.mxu1 %v4803_v34  ;;  %v4866_v32 = vcombine.high %v380_v26, %v384_v27  ;;  %v4868_v34 = vcombine.high %v381_v28, %v385_v29 }
 0x1b9   :  { %3635 = vmatprep.subr.bf16.mxu0 %v4810_v55  ;;  %3799 = vmatprep.subr.bf16.mxu1 %v4812_v35  ;;  %v388_v55 = vld [vmem:[#allocation5 + $0x7d0] sm:$0xff] }
 0x1ba   :  { %v392_v35 = vld [vmem:[#allocation5 + $0x7f0] sm:$0xff] }
 0x1bb   :  { %v4873_v48 = vcombine.low %v388_v55, %v392_v35 }
 0x1bc   :  { %3636 = vmatpush1.bf16.msra.mxu0 %v4809_v40  ;;  %3800 = vmatpush1.bf16.msra.mxu1 %v4811_v41  ;;  %v4874_v40 = vcombine.high %v388_v55, %v392_v35  ;;  %v4876_v41 = vcombine.high %v389_v63, %v393_v37 }
 0x1bd   :  { %3637 = vmatprep.subr.bf16.mxu0 %v4818_v42  ;;  %3801 = vmatprep.subr.bf16.mxu1 %v4820_v45  ;;  %v396_v42 = vld [vmem:[#allocation5 + $0x810] sm:$0xff] }
 0x1be   :  { %v400_v45 = vld [vmem:[#allocation5 + $0x830] sm:$0xff] }
 0x1bf   :  { %v4881_v57 = vcombine.low %v396_v42, %v400_v45 }
 0x1c0   :  { %3638 = vmatpush1.bf16.msra.mxu0 %v4817_v50  ;;  %3802 = vmatpush1.bf16.msra.mxu1 %v4819_v52  ;;  %v4882_v50 = vcombine.high %v396_v42, %v400_v45  ;;  %v4884_v52 = vcombine.high %v397_v46, %v401_v47 }
 0x1c1   :  { %3639 = vmatprep.subr.bf16.mxu0 %v4826_v54  ;;  %3803 = vmatprep.subr.bf16.mxu1 %v4828_v16  ;;  %v404_v54 = vld [vmem:[#allocation5 + $0x850] sm:$0xff] }
 0x1c2   :  { %v408_v16 = vld [vmem:[#allocation5 + $0x870] sm:$0xff] }
 0x1c3   :  { %v4889_v1 = vcombine.low %v404_v54, %v408_v16 }
 0x1c4   :  { %3640 = vmatpush1.bf16.msra.mxu0 %v4825_v23  ;;  %3804 = vmatpush1.bf16.msra.mxu1 %v4827_v60  ;;  %v4890_v23 = vcombine.high %v404_v54, %v408_v16  ;;  %v4892_v60 = vcombine.high %v405_v56, %v409_v9 }
 0x1c5   :  { %3641 = vmatprep.subr.bf16.mxu0 %v4834_v61  ;;  %3805 = vmatprep.subr.bf16.mxu1 %v4836_v25  ;;  %v412_v61 = vld [vmem:[#allocation5 + $0x890] sm:$0xff] }
 0x1c6   :  { %v416_v25 = vld [vmem:[#allocation5 + $0x8b0] sm:$0xff] }
 0x1c7   :  { %v4897_v8 = vcombine.low %v412_v61, %v416_v25 }
 0x1c8   :  { %3642 = vmatpush1.bf16.msra.mxu0 %v4833_v3  ;;  %3806 = vmatpush1.bf16.msra.mxu1 %v4835_v4  ;;  %v4898_v3 = vcombine.high %v412_v61, %v416_v25  ;;  %v4900_v4 = vcombine.high %v413_v62, %v417_v0 }
 0x1c9   :  { %3643 = vmatprep.subr.bf16.mxu0 %v4842_v5  ;;  %3807 = vmatprep.subr.bf16.mxu1 %v4844_v6  ;;  %v420_v5 = vld [vmem:[#allocation5 + $0x8d0] sm:$0xff] }
 0x1ca   :  { %v424_v6 = vld [vmem:[#allocation5 + $0x8f0] sm:$0xff] }
 0x1cb   :  { %v4906_v10 = vcombine.high %v420_v5, %v424_v6  ;;  %v4905_v17 = vcombine.low %v420_v5, %v424_v6 }
 0x1cc   :  { %3644 = vmatpush1.bf16.msra.mxu0 %v4841_v12  ;;  %3808 = vmatpush1.bf16.msra.mxu1 %v4843_v13  ;;  %v4908_v12 = vcombine.high %v421_v7, %v425_v36  ;;  %v428_v13 = vld [vmem:[#allocation5 + $0x910] sm:$0xff] }
 0x1cd   :  { %3645 = vmatprep.subr.bf16.mxu0 %v4850_v33  ;;  %3809 = vmatprep.subr.bf16.mxu1 %v4852_v14  ;;  %v432_v33 = vld [vmem:[#allocation5 + $0x930] sm:$0xff]  ;;  %v429_v14 = vld [vmem:[#allocation5 + $0x918] sm:$0xff] }
 0x1ce   :  { %v4914_v19 = vcombine.high %v428_v13, %v432_v33  ;;  %v4913_v26 = vcombine.low %v428_v13, %v432_v33  ;;  %v4915_v27 = vcombine.low %v429_v14, %v433_v15 }
 0x1d0   :  { %3646 = vmatpush1.bf16.msra.mxu0 %v4849_v59  ;;  %3810 = vmatpush1.bf16.msra.mxu1 %v4851_v20  ;;  %v436_v59 = vld [vmem:[#allocation5 + $0x950] sm:$0xff] }
 0x1d1   :  { %3647 = vmatprep.subr.bf16.mxu0 %v4858_v22  ;;  %3811 = vmatprep.subr.bf16.mxu1 %v4860_v24  ;;  %v440_v20 = vld [vmem:[#allocation5 + $0x970] sm:$0xff]  ;;  %v437_v22 = vld [vmem:[#allocation5 + $0x958] sm:$0xff] }
 0x1d2   :  { %v441_v24 = vld [vmem:[#allocation5 + $0x978] sm:$0xff]  ;;  %v4922_v28 = vcombine.high %v436_v59, %v440_v20  ;;  %v4921_v55 = vcombine.low %v436_v59, %v440_v20 }
 0x1d3   :  { %v4924_v29 = vcombine.high %v437_v22, %v441_v24  ;;  %v4923_v35 = vcombine.low %v437_v22, %v441_v24 }
 0x1d4   :  { %3648 = vmatpush1.bf16.msra.mxu0 %v4857_v30  ;;  %3812 = vmatpush1.bf16.msra.mxu1 %v4859_v31  ;;  %v444_v30 = vld [vmem:[#allocation5 + $0x990] sm:$0xff] }
 0x1d5   :  { %3649 = vmatprep.subr.bf16.mxu0 %v4866_v32  ;;  %3813 = vmatprep.subr.bf16.mxu1 %v4868_v34  ;;  %v448_v31 = vld [vmem:[#allocation5 + $0x9b0] sm:$0xff]  ;;  %v445_v32 = vld [vmem:[#allocation5 + $0x998] sm:$0xff] }
 0x1d6   :  { %v449_v34 = vld [vmem:[#allocation5 + $0x9b8] sm:$0xff]  ;;  %v4930_v63 = vcombine.high %v444_v30, %v448_v31  ;;  %v4929_v42 = vcombine.low %v444_v30, %v448_v31 }
 0x1d7   :  { %v4932_v37 = vcombine.high %v445_v32, %v449_v34  ;;  %v4931_v45 = vcombine.low %v445_v32, %v449_v34 }
 0x1d8   :  { %3650 = vmatpush1.bf16.msra.mxu0 %v4865_v38  ;;  %3814 = vmatpush1.bf16.msra.mxu1 %v4867_v39  ;;  %v452_v38 = vld [vmem:[#allocation5 + $0x9d0] sm:$0xff] }
 0x1d9   :  { %3651 = vmatprep.subr.bf16.mxu0 %v4874_v40  ;;  %3815 = vmatprep.subr.bf16.mxu1 %v4876_v41  ;;  %v456_v39 = vld [vmem:[#allocation5 + $0x9f0] sm:$0xff]  ;;  %v453_v40 = vld [vmem:[#allocation5 + $0x9d8] sm:$0xff] }
 0x1da   :  { %v457_v41 = vld [vmem:[#allocation5 + $0x9f8] sm:$0xff]  ;;  %v4938_v46 = vcombine.high %v452_v38, %v456_v39  ;;  %v4937_v54 = vcombine.low %v452_v38, %v456_v39 }
 0x1db   :  { %v4940_v47 = vcombine.high %v453_v40, %v457_v41  ;;  %v4939_v16 = vcombine.low %v453_v40, %v457_v41 }
 0x1dc   :  { %3652 = vmatpush1.bf16.msra.mxu0 %v4873_v48  ;;  %3816 = vmatpush1.bf16.msra.mxu1 %v4875_v49  ;;  %v460_v48 = vld [vmem:[#allocation5 + $0xa10] sm:$0xff] }
 0x1dd   :  { %3662 = vmatprep.subr.bf16.mxu0 %v4882_v50  ;;  %3826 = vmatprep.subr.bf16.mxu1 %v4884_v52  ;;  %v464_v49 = vld [vmem:[#allocation5 + $0xa30] sm:$0xff]  ;;  %v461_v50 = vld [vmem:[#allocation5 + $0xa18] sm:$0xff] }
 0x1de   :  { %v465_v52 = vld [vmem:[#allocation5 + $0xa38] sm:$0xff]  ;;  %v4946_v56 = vcombine.high %v460_v48, %v464_v49  ;;  %v4945_v61 = vcombine.low %v460_v48, %v464_v49 }
 0x1df   :  { %3654 = vmatmul.mubr.bf16.vlgmr.msra.gmra.mrb[4].mxu0 %v5704_v43  ;;  %3818 = vmatmul.mubr.bf16.vlgmr.msra.gmra.mrb[4].mxu1 %v5704_v43  ;;  %v4899_v43 = vcombine.low %v413_v62, %v417_v0  ;;  %v4948_v9 = vcombine.high %v461_v50, %v465_v52  ;;  %v4947_v25 = vcombine.low %v461_v50, %v465_v52 }
 0x1e0   :  { %3663 = vmatpush1.bf16.msra.mxu0 %v4881_v57  ;;  %3827 = vmatpush1.bf16.msra.mxu1 %v4883_v58  ;;  %v468_v57 = vld [vmem:[#allocation5 + $0xa50] sm:$0xff] }
 0x1e1   :  { %3664 = vmatprep.subr.bf16.mxu0 %v4890_v23  ;;  %3828 = vmatprep.subr.bf16.mxu1 %v4892_v60  ;;  %v472_v58 = vld [vmem:[#allocation5 + $0xa70] sm:$0xff]  ;;  %v469_v23 = vld [vmem:[#allocation5 + $0xa58] sm:$0xff] }
 0x1e2   :  { %3694 = vmatprep.mubr.bf16.mxu0 %v5706_v51  ;;  %3858 = vmatprep.mubr.bf16.mxu1 %v5706_v51  ;;  %v4916_v51 = vcombine.high %v429_v14, %v433_v15  ;;  %v473_v60 = vld [vmem:[#allocation5 + $0xa78] sm:$0xff]  ;;  %v4954_v62 = vcombine.high %v468_v57, %v472_v58  ;;  %v4953_v5 = vcombine.low %v468_v57, %v472_v58 }
 0x1e3   :  { %v4956_v0 = vcombine.high %v469_v23, %v473_v60  ;;  %v4955_v6 = vcombine.low %v469_v23, %v473_v60 }
 0x1e4   :  { %3665 = vmatpush1.bf16.msra.mxu0 %v4889_v1  ;;  %3829 = vmatpush1.bf16.msra.mxu1 %v4891_v53  ;;  %v476_v1 = vld [vmem:[#allocation5 + $0xa90] sm:$0xff] }
 0x1e5   :  { %3666 = vmatprep.subr.bf16.mxu0 %v4898_v3  ;;  %3830 = vmatprep.subr.bf16.mxu1 %v4900_v4  ;;  %v480_v53 = vld [vmem:[#allocation5 + $0xab0] sm:$0xff]  ;;  %v477_v3 = vld [vmem:[#allocation5 + $0xa98] sm:$0xff] }
 0x1e6   :  { %v481_v4 = vld [vmem:[#allocation5 + $0xab8] sm:$0xff]  ;;  %v4962_v7 = vcombine.high %v476_v1, %v480_v53  ;;  %v4961_v13 = vcombine.low %v476_v1, %v480_v53 }
 0x1e7   :  { %v4964_v36 = vcombine.high %v477_v3, %v481_v4  ;;  %v4963_v33 = vcombine.low %v477_v3, %v481_v4 }
 0x1e8   :  { %3667 = vmatpush1.bf16.msra.mxu0 %v4897_v8  ;;  %3831 = vmatpush1.bf16.msra.mxu1 %v4899_v43  ;;  %v484_v8 = vld [vmem:[#allocation5 + $0xad0] sm:$0xff] }
 0x1e9   :  { %3668 = vmatprep.subr.bf16.mxu0 %v4906_v10  ;;  %3832 = vmatprep.subr.bf16.mxu1 %v4908_v12  ;;  %v488_v43 = vld [vmem:[#allocation5 + $0xaf0] sm:$0xff]  ;;  %v485_v10 = vld [vmem:[#allocation5 + $0xad8] sm:$0xff] }
 0x1ea   :  { %v489_v12 = vld [vmem:[#allocation5 + $0xaf8] sm:$0xff]  ;;  %v4970_v14 = vcombine.high %v484_v8, %v488_v43  ;;  %v4969_v59 = vcombine.low %v484_v8, %v488_v43 }
 0x1eb   :  { %v4972_v15 = vcombine.high %v485_v10, %v489_v12  ;;  %v4971_v20 = vcombine.low %v485_v10, %v489_v12 }
 0x1ec   :  { %3669 = vmatpush1.bf16.msra.mxu0 %v4905_v17  ;;  %3833 = vmatpush1.bf16.msra.mxu1 %v4907_v18  ;;  %v492_v17 = vld [vmem:[#allocation5 + $0xb10] sm:$0xff] }
 0x1ed   :  { %3670 = vmatprep.subr.bf16.mxu0 %v4914_v19  ;;  %3834 = vmatprep.subr.bf16.mxu1 %v4916_v51  ;;  %v496_v18 = vld [vmem:[#allocation5 + $0xb30] sm:$0xff]  ;;  %v493_v19 = vld [vmem:[#allocation5 + $0xb18] sm:$0xff] }
 0x1ee   :  { %v497_v51 = vld [vmem:[#allocation5 + $0xb38] sm:$0xff]  ;;  %v4978_v22 = vcombine.high %v492_v17, %v496_v18  ;;  %v4977_v30 = vcombine.low %v492_v17, %v496_v18 }
 0x1ef   :  { %v4980_v24 = vcombine.high %v493_v19, %v497_v51  ;;  %v4979_v31 = vcombine.low %v493_v19, %v497_v51  ;;  %v556_v51 = vld [vmem:[#allocation5 + $0xd10] sm:$0xff] }
 0x1f0   :  { %3671 = vmatpush1.bf16.msra.mxu0 %v4913_v26  ;;  %3835 = vmatpush1.bf16.msra.mxu1 %v4915_v27  ;;  %v500_v26 = vld [vmem:[#allocation5 + $0xb50] sm:$0xff] }
 0x1f1   :  { %3672 = vmatprep.subr.bf16.mxu0 %v4922_v28  ;;  %3836 = vmatprep.subr.bf16.mxu1 %v4924_v29  ;;  %v504_v27 = vld [vmem:[#allocation5 + $0xb70] sm:$0xff]  ;;  %v501_v28 = vld [vmem:[#allocation5 + $0xb58] sm:$0xff] }
 0x1f2   :  { %v505_v29 = vld [vmem:[#allocation5 + $0xb78] sm:$0xff]  ;;  %v4986_v32 = vcombine.high %v500_v26, %v504_v27  ;;  %v4985_v38 = vcombine.low %v500_v26, %v504_v27 }
 0x1f3   :  { %v4988_v34 = vcombine.high %v501_v28, %v505_v29  ;;  %v4987_v39 = vcombine.low %v501_v28, %v505_v29  ;;  %v564_v28 = vld [vmem:[#allocation5 + $0xd50] sm:$0xff] }
 0x1f4   :  { %3673 = vmatpush1.bf16.msra.mxu0 %v4921_v55  ;;  %3837 = vmatpush1.bf16.msra.mxu1 %v4923_v35  ;;  %v508_v55 = vld [vmem:[#allocation5 + $0xb90] sm:$0xff] }
 0x1f5   :  { %3674 = vmatprep.subr.bf16.mxu0 %v4930_v63  ;;  %3838 = vmatprep.subr.bf16.mxu1 %v4932_v37  ;;  %v512_v35 = vld [vmem:[#allocation5 + $0xbb0] sm:$0xff]  ;;  %v509_v63 = vld [vmem:[#allocation5 + $0xb98] sm:$0xff] }
 0x1f6   :  { %v513_v37 = vld [vmem:[#allocation5 + $0xbb8] sm:$0xff]  ;;  %v4994_v40 = vcombine.high %v508_v55, %v512_v35  ;;  %v4993_v48 = vcombine.low %v508_v55, %v512_v35  ;;  %v568_v29 = vld [vmem:[#allocation5 + $0xd70] sm:$0xff] }
 0x1f7   :  { %v4996_v41 = vcombine.high %v509_v63, %v513_v37  ;;  %v4995_v49 = vcombine.low %v509_v63, %v513_v37  ;;  %v5050_v55 = vcombine.high %v564_v28, %v568_v29  ;;  %v572_v63 = vld [vmem:[#allocation5 + $0xd90] sm:$0xff] }
 0x1f8   :  { %3675 = vmatpush1.bf16.msra.mxu0 %v4929_v42  ;;  %3839 = vmatpush1.bf16.msra.mxu1 %v4931_v45  ;;  %v516_v42 = vld [vmem:[#allocation5 + $0xbd0] sm:$0xff] }
 0x1f9   :  { %3676 = vmatprep.subr.bf16.mxu0 %v4938_v46  ;;  %3840 = vmatprep.subr.bf16.mxu1 %v4940_v47  ;;  %v520_v45 = vld [vmem:[#allocation5 + $0xbf0] sm:$0xff]  ;;  %v517_v46 = vld [vmem:[#allocation5 + $0xbd8] sm:$0xff] }
 0x1fa   :  { %v521_v47 = vld [vmem:[#allocation5 + $0xbf8] sm:$0xff]  ;;  %v5002_v50 = vcombine.high %v516_v42, %v520_v45  ;;  %v5001_v57 = vcombine.low %v516_v42, %v520_v45  ;;  %v576_v37 = vld [vmem:[#allocation5 + $0xdb0] sm:$0xff] }
 0x1fb   :  { %v5004_v52 = vcombine.high %v517_v46, %v521_v47  ;;  %v5003_v58 = vcombine.low %v517_v46, %v521_v47  ;;  %v5058_v42 = vcombine.high %v572_v63, %v576_v37  ;;  %v580_v47 = vld [vmem:[#allocation5 + $0xdd0] sm:$0xff] }
 0x1fc   :  { %3677 = vmatpush1.bf16.msra.mxu0 %v4937_v54  ;;  %3841 = vmatpush1.bf16.msra.mxu1 %v4939_v16  ;;  %v524_v54 = vld [vmem:[#allocation5 + $0xc10] sm:$0xff] }
 0x1fd   :  { %3678 = vmatprep.subr.bf16.mxu0 %v4946_v56  ;;  %3842 = vmatprep.subr.bf16.mxu1 %v4948_v9  ;;  %v528_v16 = vld [vmem:[#allocation5 + $0xc30] sm:$0xff]  ;;  %v525_v56 = vld [vmem:[#allocation5 + $0xc18] sm:$0xff] }
 0x1fe   :  { %v529_v9 = vld [vmem:[#allocation5 + $0xc38] sm:$0xff]  ;;  %v5010_v23 = vcombine.high %v524_v54, %v528_v16  ;;  %v5009_v1 = vcombine.low %v524_v54, %v528_v16 }
 0x1ff   :  { %v5012_v60 = vcombine.high %v525_v56, %v529_v9  ;;  %v5011_v53 = vcombine.low %v525_v56, %v529_v9  ;;  %v585_v54 = vld [vmem:[#allocation5 + $0xdf8] sm:$0xff]  ;;  %v5057_v9 = vcombine.low %v572_v63, %v576_v37 }
 0x200   :  { %3679 = vmatpush1.bf16.msra.mxu0 %v4945_v61  ;;  %3843 = vmatpush1.bf16.msra.mxu1 %v4947_v25  ;;  %v532_v61 = vld [vmem:[#allocation5 + $0xc50] sm:$0xff] }
 0x201   :  { %3680 = vmatprep.subr.bf16.mxu0 %v4954_v62  ;;  %3844 = vmatprep.subr.bf16.mxu1 %v4956_v0  ;;  %v536_v25 = vld [vmem:[#allocation5 + $0xc70] sm:$0xff]  ;;  %v533_v62 = vld [vmem:[#allocation5 + $0xc58] sm:$0xff] }
 0x202   :  { %v537_v0 = vld [vmem:[#allocation5 + $0xc78] sm:$0xff]  ;;  %v5018_v3 = vcombine.high %v532_v61, %v536_v25  ;;  %v5017_v8 = vcombine.low %v532_v61, %v536_v25 }
 0x203   :  { %v5020_v4 = vcombine.high %v533_v62, %v537_v0  ;;  %v5019_v43 = vcombine.low %v533_v62, %v537_v0  ;;  %v588_v62 = vld [vmem:[#allocation5 + $0xe10] sm:$0xff] }
 0x204   :  { %3681 = vmatpush1.bf16.msra.mxu0 %v4953_v5  ;;  %3845 = vmatpush1.bf16.msra.mxu1 %v4955_v6  ;;  %v540_v5 = vld [vmem:[#allocation5 + $0xc90] sm:$0xff] }
 0x205   :  { %3682 = vmatprep.subr.bf16.mxu0 %v4962_v7  ;;  %3846 = vmatprep.subr.bf16.mxu1 %v4964_v36  ;;  %v544_v6 = vld [vmem:[#allocation5 + $0xcb0] sm:$0xff]  ;;  %v541_v7 = vld [vmem:[#allocation5 + $0xc98] sm:$0xff] }
 0x206   :  { %v545_v36 = vld [vmem:[#allocation5 + $0xcb8] sm:$0xff]  ;;  %v5026_v10 = vcombine.high %v540_v5, %v544_v6  ;;  %v5025_v17 = vcombine.low %v540_v5, %v544_v6  ;;  %v592_v0 = vld [vmem:[#allocation5 + $0xe30] sm:$0xff] }
 0x207   :  { %v5028_v12 = vcombine.high %v541_v7, %v545_v36  ;;  %v5074_v5 = vcombine.high %v588_v62, %v592_v0 }
 0x208   :  { %3683 = vmatpush1.bf16.msra.mxu0 %v4961_v13  ;;  %3847 = vmatpush1.bf16.msra.mxu1 %v4963_v33  ;;  %v548_v13 = vld [vmem:[#allocation5 + $0xcd0] sm:$0xff] }
 0x209   :  { %3684 = vmatprep.subr.bf16.mxu0 %v4970_v14  ;;  %3848 = vmatprep.subr.bf16.mxu1 %v4972_v15  ;;  %v552_v33 = vld [vmem:[#allocation5 + $0xcf0] sm:$0xff]  ;;  %v549_v14 = vld [vmem:[#allocation5 + $0xcd8] sm:$0xff] }
 0x20a   :  { %v553_v15 = vld [vmem:[#allocation5 + $0xcf8] sm:$0xff]  ;;  %v5034_v18 = vcombine.high %v548_v13, %v552_v33 }
 0x20b   :  { %v5036_v19 = vcombine.high %v549_v14, %v553_v15  ;;  %v5035_v26 = vcombine.low %v549_v14, %v553_v15  ;;  %v604_v14 = vld [vmem:[#allocation5 + $0xe90] sm:$0xff] }
 0x20c   :  { %3685 = vmatpush1.bf16.msra.mxu0 %v4969_v59  ;;  %3849 = vmatpush1.bf16.msra.mxu1 %v4971_v20  ;;  %v560_v59 = vld [vmem:[#allocation5 + $0xd30] sm:$0xff]  ;;  %v557_v20 = vld [vmem:[#allocation5 + $0xd18] sm:$0xff] }
 0x20d   :  { %3686 = vmatprep.subr.bf16.mxu0 %v4978_v22  ;;  %3850 = vmatprep.subr.bf16.mxu1 %v4980_v24  ;;  %v561_v22 = vld [vmem:[#allocation5 + $0xd38] sm:$0xff]  ;;  %v5033_v24 = vcombine.low %v548_v13, %v552_v33  ;;  %v5042_v27 = vcombine.high %v556_v51, %v560_v59  ;;  %v608_v15 = vld [vmem:[#allocation5 + $0xeb0] sm:$0xff] }
 0x210   :  { %3687 = vmatpush1.bf16.msra.mxu0 %v4977_v30  ;;  %3851 = vmatpush1.bf16.msra.mxu1 %v4979_v31  ;;  %v565_v30 = vld [vmem:[#allocation5 + $0xd58] sm:$0xff] }
 0x211   :  { %3688 = vmatprep.subr.bf16.mxu0 %v4986_v32  ;;  %3852 = vmatprep.subr.bf16.mxu1 %v4988_v34  ;;  %v569_v31 = vld [vmem:[#allocation5 + $0xd78] sm:$0xff]  ;;  %v5041_v32 = vcombine.low %v556_v51, %v560_v59  ;;  %v5043_v34 = vcombine.low %v557_v20, %v561_v22  ;;  %v5090_v51 = vcombine.high %v604_v14, %v608_v15 }
 0x212   :  { %v5052_v35 = vcombine.high %v565_v30, %v569_v31 }
 0x214   :  { %3689 = vmatpush1.bf16.msra.mxu0 %v4985_v38  ;;  %3853 = vmatpush1.bf16.msra.mxu1 %v4987_v39  ;;  %v573_v38 = vld [vmem:[#allocation5 + $0xd98] sm:$0xff] }
 0x215   :  { %3690 = vmatprep.subr.bf16.mxu0 %v4994_v40  ;;  %3854 = vmatprep.subr.bf16.mxu1 %v4996_v41  ;;  %v577_v39 = vld [vmem:[#allocation5 + $0xdb8] sm:$0xff]  ;;  %v5049_v40 = vcombine.low %v564_v28, %v568_v29  ;;  %v5051_v41 = vcombine.low %v565_v30, %v569_v31  ;;  %v620_v30 = vld [vmem:[#allocation5 + $0xf10] sm:$0xff] }
 0x216   :  { %v5060_v46 = vcombine.high %v573_v38, %v577_v39  ;;  %v624_v31 = vld [vmem:[#allocation5 + $0xf30] sm:$0xff] }
 0x217   :  { %v5106_v63 = vcombine.high %v620_v30, %v624_v31 }
 0x218   :  { %3691 = vmatpush1.bf16.msra.mxu0 %v4993_v48  ;;  %3855 = vmatpush1.bf16.msra.mxu1 %v4995_v49  ;;  %v584_v48 = vld [vmem:[#allocation5 + $0xdf0] sm:$0xff] }
 0x219   :  { %3692 = vmatprep.subr.bf16.mxu0 %v5002_v50  ;;  %3856 = vmatprep.subr.bf16.mxu1 %v5004_v52  ;;  %v581_v52 = vld [vmem:[#allocation5 + $0xdd8] sm:$0xff] }
 0x21a   :  { %v5068_v25 = vcombine.high %v581_v52, %v585_v54 }
 0x21c   :  { %3693 = vmatpush1.bf16.msra.mxu0 %v5001_v57  ;;  %3857 = vmatpush1.bf16.msra.mxu1 %v5003_v58 }
 0x21d   :  { %3703 = vmatprep.subr.bf16.mxu0 %v5010_v23  ;;  %3867 = vmatprep.subr.bf16.mxu1 %v5012_v60  ;;  %v5059_v23 = vcombine.low %v573_v38, %v577_v39  ;;  %v5066_v60 = vcombine.high %v580_v47, %v584_v48  ;;  %v628_v38 = vld [vmem:[#allocation5 + $0xf50] sm:$0xff] }
 0x21e   :  { %v632_v39 = vld [vmem:[#allocation5 + $0xf70] sm:$0xff] }
 0x21f   :  { %3695 = vmatmul.mubr.bf16.vlgmr.msra.gmra.mrb[4].mxu0 %v5721_v2  ;;  %3859 = vmatmul.mubr.bf16.vlgmr.msra.gmra.mrb[4].mxu1 %v5721_v2  ;;  %v5027_v2 = vcombine.low %v541_v7, %v545_v36  ;;  %v596_v7 = vld [vmem:[#allocation5 + $0xe50] sm:$0xff] }
 0x220   :  { %3704 = vmatpush1.bf16.msra.mxu0 %v5009_v1  ;;  %3868 = vmatpush1.bf16.msra.mxu1 %v5011_v53  ;;  %v589_v1 = vld [vmem:[#allocation5 + $0xe18] sm:$0xff]  ;;  %v600_v36 = vld [vmem:[#allocation5 + $0xe70] sm:$0xff] }
 0x221   :  { %3705 = vmatprep.subr.bf16.mxu0 %v5018_v3  ;;  %3869 = vmatprep.subr.bf16.mxu1 %v5020_v4  ;;  %v593_v53 = vld [vmem:[#allocation5 + $0xe38] sm:$0xff]  ;;  %v5065_v3 = vcombine.low %v580_v47, %v584_v48  ;;  %v5067_v4 = vcombine.low %v581_v52, %v585_v54  ;;  %v5082_v13 = vcombine.high %v596_v7, %v600_v36  ;;  %v636_v52 = vld [vmem:[#allocation5 + $0xf90] sm:$0xff] }
 0x222   :  { %3735 = vmatprep.mubr.bf16.mxu0 %v5723_v11  ;;  %3899 = vmatprep.mubr.bf16.mxu1 %v5723_v11  ;;  %v5044_v11 = vcombine.high %v557_v20, %v561_v22  ;;  %v5076_v6 = vcombine.high %v589_v1, %v593_v53  ;;  %v612_v20 = vld [vmem:[#allocation5 + $0xed0] sm:$0xff]  ;;  %v5114_v47 = vcombine.high %v628_v38, %v632_v39 }
 0x223   :  { %v616_v22 = vld [vmem:[#allocation5 + $0xef0] sm:$0xff] }
 0x224   :  { %3706 = vmatpush1.bf16.msra.mxu0 %v5017_v8  ;;  %3870 = vmatpush1.bf16.msra.mxu1 %v5019_v43  ;;  %v597_v8 = vld [vmem:[#allocation5 + $0xe58] sm:$0xff]  ;;  %v5098_v28 = vcombine.high %v612_v20, %v616_v22  ;;  %v640_v54 = vld [vmem:[#allocation5 + $0xfb0] sm:$0xff] }
 0x225   :  { %3707 = vmatprep.subr.bf16.mxu0 %v5026_v10  ;;  %3871 = vmatprep.subr.bf16.mxu1 %v5028_v12  ;;  %v601_v43 = vld [vmem:[#allocation5 + $0xe78] sm:$0xff]  ;;  %v5073_v10 = vcombine.low %v588_v62, %v592_v0  ;;  %v5075_v12 = vcombine.low %v589_v1, %v593_v53  ;;  %v644_v0 = vld [vmem:[#allocation5 + $0xfd0] sm:$0xff] }
 0x226   :  { %v5084_v33 = vcombine.high %v597_v8, %v601_v43  ;;  %v648_v1 = vld [vmem:[#allocation5 + $0xff0] sm:$0xff] }
 0x228   :  { %3708 = vmatpush1.bf16.msra.mxu0 %v5025_v17  ;;  %3872 = vmatpush1.bf16.msra.mxu1 %v5027_v2  ;;  %v605_v17 = vld [vmem:[#allocation5 + $0xe98] sm:$0xff] }
 0x229   :  { %3709 = vmatprep.subr.bf16.mxu0 %v5034_v18  ;;  %3873 = vmatprep.subr.bf16.mxu1 %v5036_v19  ;;  %v609_v2 = vld [vmem:[#allocation5 + $0xeb8] sm:$0xff]  ;;  %v5081_v18 = vcombine.low %v596_v7, %v600_v36  ;;  %v5083_v19 = vcombine.low %v597_v8, %v601_v43  ;;  %v5130_v36 = vcombine.high %v644_v0, %v648_v1 }
 0x22a   :  { %v5092_v59 = vcombine.high %v605_v17, %v609_v2 }
 0x22c   :  { %3710 = vmatpush1.bf16.msra.mxu0 %v5033_v24  ;;  %3874 = vmatpush1.bf16.msra.mxu1 %v5035_v26  ;;  %v613_v24 = vld [vmem:[#allocation5 + $0xed8] sm:$0xff] }
 0x22d   :  { %3711 = vmatprep.subr.bf16.mxu0 %v5042_v27  ;;  %3875 = vmatprep.subr.bf16.mxu1 %v5044_v11  ;;  %v617_v26 = vld [vmem:[#allocation5 + $0xef8] sm:$0xff]  ;;  %v5089_v27 = vcombine.low %v604_v14, %v608_v15  ;;  %v5091_v11 = vcombine.low %v605_v17, %v609_v2  ;;  %v5356_v14 = vld [vmem:[#allocation8 + $0xc0] sm:$0xff]  }
 0x22e   :  { %v5100_v29 = vcombine.high %v613_v24, %v617_v26  ;;  %v5357_v2 = vld [vmem:[#allocation8] sm:$0xff]  }
 0x230   :  { %3712 = vmatpush1.bf16.msra.mxu0 %v5041_v32  ;;  %3876 = vmatpush1.bf16.msra.mxu1 %v5043_v34  ;;  %v621_v32 = vld [vmem:[#allocation5 + $0xf18] sm:$0xff] }
 0x231   :  { %3713 = vmatprep.subr.bf16.mxu0 %v5050_v55  ;;  %3877 = vmatprep.subr.bf16.mxu1 %v5052_v35  ;;  %v625_v34 = vld [vmem:[#allocation5 + $0xf38] sm:$0xff]  ;;  %v5097_v55 = vcombine.low %v612_v20, %v616_v22  ;;  %v5099_v35 = vcombine.low %v613_v24, %v617_v26  ;;  %v5362_v20 = vld [vmem:[#allocation8 + $0x88] sm:$0xff]  }
 0x232   :  { %v5749_v45 = vpop.f32.mrb[0].mxu0  ;;  %v5751_v49 = vpop.f32.mrb[0].mxu1  ;;  %v5108_v37 = vcombine.high %v621_v32, %v625_v34  ;;  %v5363_v22 = vld [vmem:[#allocation8 + $0x50] sm:$0xff]  }
 0x233   :  { %v5753_v50 = vpop.f32.mrb[1].mxu0  ;;  %v5755_v16 = vpop.f32.mrb[1].mxu1  ;;  %v5364_v24 = vld [vmem:[#allocation8 + $0xd0] sm:$0xff]  }
 0x234   :  { %v3413_v56 = vpop.f32.mrb[2].mxu0  ;;  %3714 = vmatpush1.bf16.msra.mxu0 %v5049_v40  ;;  %v3577_v57 = vpop.f32.mrb[2].mxu1  ;;  %3878 = vmatpush1.bf16.msra.mxu1 %v5051_v41  ;;  %v629_v40 = vld [vmem:[#allocation5 + $0xf58] sm:$0xff] }
 0x235   :  { %v3414_v58 = vpop.f32.mrb[3].mxu0  ;;  %3715 = vmatprep.subr.bf16.mxu0 %v5058_v42  ;;  %v3578_v61 = vpop.f32.mrb[3].mxu1  ;;  %3879 = vmatprep.subr.bf16.mxu1 %v5060_v46  ;;  %v633_v41 = vld [vmem:[#allocation5 + $0xf78] sm:$0xff]  ;;  %v5105_v42 = vcombine.low %v620_v30, %v624_v31  ;;  %v5107_v46 = vcombine.low %v621_v32, %v625_v34  ;;  %v658_v56 = vsub.s32 1, %v5660_v44  ;;  %v5371_v30 = vld [vmem:[#allocation8 + $0x60] sm:$0xff]   ;;  %v654_v34 = vsub.s32 0, %v5660_v44 }
 0x236   :  { %v5116_v48 = vcombine.high %v629_v40, %v633_v41  ;;  %v641_v57 = vld [vmem:[#allocation5 + $0xfb8] sm:$0xff]  ;;  %v5758_v58 = vld [vmem:[#allocation7] sm:$0xff]  ;;  %v5115_v61 = vcombine.low %v629_v40, %v633_v41  ;;  %v5372_v31 = vld [vmem:[#allocation8 + $0xe0] sm:$0xff]  }
 0x237   :  { %v659_v53 = vrot.slane %v5758_v58, %v658_v56  ;;  %v5365_v26 = vld [vmem:[#allocation8 + $0x10] sm:$0xff]   ;;  %v5373_v32 = vld [vmem:[#allocation8 + $0x20] sm:$0xff]   ;;  %v5378_v40 = vld [vmem:[#allocation8 + $0xa8] sm:$0xff]  }
 0x238   :  { %3716 = vmatpush1.bf16.msra.mxu0 %v5057_v9  ;;  %3880 = vmatpush1.bf16.msra.mxu1 %v5059_v23  ;;  %v637_v9 = vld [vmem:[#allocation5 + $0xf98] sm:$0xff]  ;;  %v666_v23 = vsub.s32 3, %v5660_v44 }
 0x239   :  { %3717 = vmatprep.subr.bf16.mxu0 %v5066_v60  ;;  %3881 = vmatprep.subr.bf16.mxu1 %v5068_v25  ;;  %v5113_v60 = vcombine.low %v628_v38, %v632_v39  ;;  %v5122_v25 = vcombine.high %v636_v52, %v640_v54  ;;  %v5124_v62 = vcombine.high %v637_v9, %v641_v57  ;;  %v5377_v38 = vld [vmem:[#allocation8 + $0x28] sm:$0xff]   ;;  %v5379_v41 = vld [vmem:[#allocation8 + $0x70] sm:$0xff]  }
 0x23a   :  { %v5123_v7 = vcombine.low %v637_v9, %v641_v57  ;;  %v5287_v43 = vadd.f32 %v5753_v50, %v659_v53  ;;  %v655_v39 = vrot.slane %v5758_v58, %v654_v34  ;;  %v5384_v9 = vld [vmem:[#allocation8 + $0xf8] sm:$0xff]   ;;  %v5391_v53 = vld [vmem:[#allocation8 + $0x148] sm:$0xff]  }
 0x23b   :  { %v5385_v57 = vld [vmem:[#allocation8 + $0x38] sm:$0xff]  }
 0x23c   :  { %3718 = vmatpush1.bf16.msra.mxu0 %v5065_v3  ;;  %3882 = vmatpush1.bf16.msra.mxu1 %v5067_v4  ;;  %v645_v3 = vld [vmem:[#allocation5 + $0xfd8] sm:$0xff]  ;;  %v3909_v15 = vmax.f32 %v5287_v43, 0.0  ;;  %v5399_v43 = vld [vmem:[#allocation8 + $0x158] sm:$0xff]  }
 0x23d   :  { %3719 = vmatprep.subr.bf16.mxu0 %v5074_v5  ;;  %3883 = vmatprep.subr.bf16.mxu1 %v5076_v6  ;;  %v649_v4 = vld [vmem:[#allocation5 + $0xff8] sm:$0xff]  ;;  %v667_v5 = vrot.slane %v5758_v58, %v666_v23  ;;  %v5121_v6 = vcombine.low %v636_v52, %v640_v54  ;;  %v5383_v54 = vld [vmem:[#allocation8 + $0x78] sm:$0xff]  }
 0x23e   :  { %v5132_v8 = vcombine.high %v645_v3, %v649_v4  ;;  %v3917_v50 = vpack.c.bf16 %v3909_v15, %v3909_v15  ;;  %v5382_v52 = vld [vmem:[#allocation8 + $0xb0] sm:$0xff]   ;;  %v5405_v15 = vld [vmem:[#allocation8 + $0x120] sm:$0xff]  }
 0x240   :  { %3720 = vmatpush1.bf16.msra.mxu0 %v5073_v10  ;;  %3884 = vmatpush1.bf16.msra.mxu1 %v5075_v12  ;;  %v5289_v10 = vadd.f32 %v5755_v16, %v667_v5  ;;  %v5129_v12 = vcombine.low %v644_v0, %v648_v1  ;;  %v5360_v16 = vld [vmem:[#allocation8 + $0xc8] sm:$0xff]   ;;  %v5390_v1 = vld [vmem:[#allocation8 + $0x180] sm:$0xff]  }
 0x241   :  { %3721 = vmatprep.subr.bf16.mxu0 %v5082_v13  ;;  %3885 = vmatprep.subr.bf16.mxu1 %v5084_v33  ;;  %v5131_v13 = vcombine.low %v645_v3, %v649_v4  ;;  %v5355_v33 = vld [vmem:[#allocation8 + $0x40] sm:$0xff]   ;;  %v5392_v3 = vld [vmem:[#allocation8 + $0x1c8] sm:$0xff]  }
 0x242   :  { %v3911_v17 = vmax.f32 %v5289_v10, 0.0  ;;  %v5393_v4 = vld [vmem:[#allocation8 + $0x108] sm:$0xff]   ;;  %v5400_v10 = vld [vmem:[#allocation8 + $0x1d8] sm:$0xff]  }
 0x243   :  { %v5394_v5 = vld [vmem:[#allocation8 + $0x188] sm:$0xff]  }
 0x244   :  { %3722 = vmatpush1.bf16.msra.mxu0 %v5081_v18  ;;  %3886 = vmatpush1.bf16.msra.mxu1 %v5083_v19  ;;  %v5358_v18 = vld [vmem:[#allocation8 + $0x80] sm:$0xff]   ;;  %v5359_v19 = vld [vmem:[#allocation8 + $0x48] sm:$0xff]  }
 0x245   :  { %3723 = vmatprep.subr.bf16.mxu0 %v5090_v51  ;;  %3887 = vmatprep.subr.bf16.mxu1 %v5092_v59  ;;  %v3919_v51 = vpack.c.bf16 %v3911_v17, %v3911_v17  ;;  %v5361_v59 = vld [vmem:[#allocation8 + $0x8] sm:$0xff]   ;;  %v5406_v17 = vld [vmem:[#allocation8 + $0x1a0] sm:$0xff]  }
 0x248   :  { %3724 = vmatpush1.bf16.msra.mxu0 %v5089_v27  ;;  %3888 = vmatpush1.bf16.msra.mxu1 %v5091_v11  ;;  %v5366_v27 = vld [vmem:[#allocation8 + $0x90] sm:$0xff]   ;;  %v5367_v11 = vld [vmem:[#allocation8 + $0x58] sm:$0xff]  }
 0x249   :  { %3725 = vmatprep.subr.bf16.mxu0 %v5098_v28  ;;  %3889 = vmatprep.subr.bf16.mxu1 %v5100_v29  ;;  %v5368_v28 = vld [vmem:[#allocation8 + $0xd8] sm:$0xff]  }
 0x24a   :  { %v5370_v29 = vld [vmem:[#allocation8 + $0x98] sm:$0xff]  }
 0x24c   :  { %3726 = vmatpush1.bf16.msra.mxu0 %v5097_v55  ;;  %3890 = vmatpush1.bf16.msra.mxu1 %v5099_v35  ;;  %v5374_v55 = vld [vmem:[#allocation8 + $0xa0] sm:$0xff]   ;;  %v5375_v35 = vld [vmem:[#allocation8 + $0x68] sm:$0xff]  }
 0x24d   :  { %3727 = vmatprep.subr.bf16.mxu0 %v5106_v63  ;;  %3891 = vmatprep.subr.bf16.mxu1 %v5108_v37  ;;  %v662_v63 = vsub.s32 2, %v5660_v44  ;;  %v5376_v37 = vld [vmem:[#allocation8 + $0xe8] sm:$0xff]  }
 0x250   :  { %3728 = vmatpush1.bf16.msra.mxu0 %v5105_v42  ;;  %3892 = vmatpush1.bf16.msra.mxu1 %v5107_v46  ;;  %v663_v42 = vrot.slane %v5758_v58, %v662_v63  ;;  %v5380_v46 = vld [vmem:[#allocation8 + $0xf0] sm:$0xff]  }
 0x251   :  { %3729 = vmatprep.subr.bf16.mxu0 %v5114_v47  ;;  %3893 = vmatprep.subr.bf16.mxu1 %v5116_v48  ;;  %v5381_v47 = vld [vmem:[#allocation8 + $0x30] sm:$0xff]   ;;  %v5286_v48 = vadd.f32 %v5749_v45, %v655_v39  ;;  %v5389_v45 = vld [vmem:[#allocation8 + $0x100] sm:$0xff]  }
 0x252   :  { %v5288_v56 = vadd.f32 %v5751_v49, %v663_v42 }
 0x253   :  { %v3908_v23 = vmax.f32 %v5286_v48, 0.0 }
 0x254   :  { %3730 = vmatpush1.bf16.msra.mxu0 %v5113_v60  ;;  %3894 = vmatpush1.bf16.msra.mxu1 %v5115_v61  ;;  %v5386_v60 = vld [vmem:[#allocation8 + $0xb8] sm:$0xff]   ;;  %v5387_v61 = vld [vmem:[#allocation8 + $0x140] sm:$0xff]  }
 0x255   :  { %3731 = vmatprep.subr.bf16.mxu0 %v5122_v25  ;;  %3895 = vmatprep.subr.bf16.mxu1 %v5124_v62  ;;  %v3910_v25 = vmax.f32 %v5288_v56, 0.0  ;;  %v5388_v62 = vld [vmem:[#allocation8 + $0x1c0] sm:$0xff]   ;;  %v3916_v0 = vpack.c.bf16 %v3908_v23, %v3908_v23 }
 0x257   :  { %v3918_v49 = vpack.c.bf16 %v3910_v25, %v3910_v25  ;;  %v5133_v25 = vld [vmem:[#allocation10] ss:$0 sm:$0xff] }
 0x258   :  { %3732 = vmatpush1.bf16.msra.mxu0 %v5121_v6  ;;  %3896 = vmatpush1.bf16.msra.mxu1 %v5123_v7  ;;  %v5395_v6 = vld [vmem:[#allocation8 + $0x150] sm:$0xff]  }
 0x259   :  { %3733 = vmatprep.subr.bf16.mxu0 %v5130_v36  ;;  %3897 = vmatprep.subr.bf16.mxu1 %v5132_v8  ;;  %v5396_v7 = vld [vmem:[#allocation8 + $0x1d0] sm:$0xff]  }
 0x25a   :  { %v5397_v36 = vld [vmem:[#allocation8 + $0x110] sm:$0xff]  }
 0x25b   :  { %v5398_v8 = vld [vmem:[#allocation8 + $0x190] sm:$0xff]  }
 0x25c   :  { %3734 = vmatpush1.bf16.msra.mxu0 %v5129_v12  ;;  %3898 = vmatpush1.bf16.msra.mxu1 %v5131_v13  ;;  %v5401_v12 = vld [vmem:[#allocation8 + $0x118] sm:$0xff]  }
 0x25d   :  { %5198 = vmatprep.subr.bf16.mxu0 %v5355_v33  ;;  %5220 = vmatprep.subr.bf16.mxu1 %v5356_v14  ;;  %v5402_v13 = vld [vmem:[#allocation8 + $0x198] sm:$0xff]   ;;  %v5403_v33 = vld [vmem:[#allocation8 + $0x160] sm:$0xff]  }
 0x25e   :  { %v5404_v14 = vld [vmem:[#allocation8 + $0x1e0] sm:$0xff]  }
 0x25f   :  { %3736 = vmatmul.mubr.bf16.vlgmr.msra.gmra.mrb[4].mxu0 %v5731_v21  ;;  %3900 = vmatmul.mubr.bf16.vlgmr.msra.gmra.mrb[4].mxu1 %v5731_v21  ;;  %v5369_v21 = vld [vmem:[#allocation8 + $0x18] sm:$0xff]  }
 0x260   :  { %5199 = vmatpush3.bf16.msra.mxu0 %v5357_v2  ;;  %4475 = vmatprep.mubr.bf16.mxu0 %v3917_v50  ;;  %v5407_v2 = vld [vmem:[#allocation8 + $0x168] sm:$0xff]  }
 0x261   :  { %5221 = vmatpush3.bf16.msra.mxu1 %v5358_v18  ;;  %4515 = vmatprep.mubr.bf16.mxu1 %v3919_v51  ;;  %v5408_v18 = vld [vmem:[#allocation8 + $0x1e8] sm:$0xff]   ;;  %v5412_v51 = vld [vmem:[#allocation8 + $0x1f0] sm:$0xff]  }
 0x262   :  { %5200 = vmatprep.subr.bf16.mxu0 %v5359_v19  ;;  %5222 = vmatprep.subr.bf16.mxu1 %v5360_v16  ;;  %v5409_v19 = vld [vmem:[#allocation8 + $0x128] sm:$0xff]   ;;  %v5411_v16 = vld [vmem:[#allocation8 + $0x170] sm:$0xff]  }
 0x263   :  { %v5410_v50 = vld [vmem:[#allocation8 + $0x1a8] sm:$0xff]  }
 0x264   :  { %5201 = vmatpush3.bf16.msra.mxu0 %v5361_v59  ;;  %v5413_v59 = vld [vmem:[#allocation8 + $0x130] sm:$0xff]  }
 0x265   :  { %5223 = vmatpush3.bf16.msra.mxu1 %v5362_v20  ;;  %5202 = vmatprep.subr.bf16.mxu0 %v5363_v22  ;;  %v5414_v20 = vld [vmem:[#allocation8 + $0x1b0] sm:$0xff]   ;;  %v5415_v22 = vld [vmem:[#allocation8 + $0x178] sm:$0xff]  }
 0x266   :  { %5224 = vmatprep.subr.bf16.mxu1 %v5364_v24  ;;  %v5416_v24 = vld [vmem:[#allocation8 + $0x1f8] sm:$0xff]  }
 0x268   :  { %5203 = vmatpush3.bf16.msra.mxu0 %v5365_v26  ;;  %v5417_v26 = vld [vmem:[#allocation8 + $0x138] sm:$0xff]  }
 0x269   :  { %5225 = vmatpush3.bf16.msra.mxu1 %v5366_v27  ;;  %5204 = vmatprep.subr.bf16.mxu0 %v5367_v11  ;;  %v5418_v27 = vld [vmem:[#allocation8 + $0x1b8] sm:$0xff]   ;;  %v670_v11 = vsub.s32 4, %v5660_v44 }
 0x26a   :  { %5226 = vmatprep.subr.bf16.mxu1 %v5368_v28  ;;  %v678_v28 = vsub.s32 6, %v5660_v44 }
 0x26c   :  { %5205 = vmatpush3.bf16.msra.mxu0 %v5369_v21  ;;  %v674_v21 = vsub.s32 5, %v5660_v44 }
 0x26d   :  { %5227 = vmatpush3.bf16.msra.mxu1 %v5370_v29  ;;  %5206 = vmatprep.subr.bf16.mxu0 %v5371_v30  ;;  %v682_v29 = vsub.s32 7, %v5660_v44  ;;  %v671_v30 = vrot.slane %v5758_v58, %v670_v11 }
 0x26e   :  { %5228 = vmatprep.subr.bf16.mxu1 %v5372_v31  ;;  %v679_v31 = vrot.slane %v5758_v58, %v678_v28 }
 0x26f   :  { %v683_v34 = vrot.slane %v5758_v58, %v682_v29 }
 0x270   :  { %5207 = vmatpush3.bf16.msra.mxu0 %v5373_v32  ;;  %v675_v32 = vrot.slane %v5758_v58, %v674_v21 }
 0x271   :  { %5229 = vmatpush3.bf16.msra.mxu1 %v5374_v55  ;;  %5208 = vmatprep.subr.bf16.mxu0 %v5375_v35 }
 0x272   :  { %5230 = vmatprep.subr.bf16.mxu1 %v5376_v37 }
 0x274   :  { %5209 = vmatpush3.bf16.msra.mxu0 %v5377_v38 }
 0x275   :  { %5231 = vmatpush3.bf16.msra.mxu1 %v5378_v40  ;;  %5210 = vmatprep.subr.bf16.mxu0 %v5379_v41 }
 0x276   :  { %5232 = vmatprep.subr.bf16.mxu1 %v5380_v46 }
 0x278   :  { %5211 = vmatpush3.bf16.msra.mxu0 %v5381_v47 }
 0x279   :  { %5233 = vmatpush3.bf16.msra.mxu1 %v5382_v52  ;;  %5212 = vmatprep.subr.bf16.mxu0 %v5383_v54 }
 0x27a   :  { %5234 = vmatprep.subr.bf16.mxu1 %v5384_v9 }
 0x27c   :  { %5213 = vmatpush3.bf16.msra.mxu0 %v5385_v57 }
 0x27d   :  { %5235 = vmatpush3.bf16.msra.mxu1 %v5386_v60  ;;  %5242 = vmatprep.subr.bf16.mxu0 %v5387_v61 }
 0x27e   :  { %5264 = vmatprep.subr.bf16.mxu1 %v5388_v62 }
 0x27f   :  { %4476 = vmatmul.mubr.bf16.vlgmr.msra.gmra.mrb[8].mxu0 %v3916_v0 }
 0x280   :  { %4516 = vmatmul.mubr.bf16.vlgmr.msra.gmra.mrb[8].mxu1 %v3918_v49  ;;  %5243 = vmatpush3.bf16.msra.mxu0 %v5389_v45 }
 0x281   :  { %5265 = vmatpush3.bf16.msra.mxu1 %v5390_v1  ;;  %5244 = vmatprep.subr.bf16.mxu0 %v5391_v53 }
 0x282   :  { %5266 = vmatprep.subr.bf16.mxu1 %v5392_v3 }
 0x284   :  { %5245 = vmatpush3.bf16.msra.mxu0 %v5393_v4 }
 0x285   :  { %5267 = vmatpush3.bf16.msra.mxu1 %v5394_v5  ;;  %5246 = vmatprep.subr.bf16.mxu0 %v5395_v6 }
 0x286   :  { %5268 = vmatprep.subr.bf16.mxu1 %v5396_v7 }
 0x288   :  { %5247 = vmatpush3.bf16.msra.mxu0 %v5397_v36 }
 0x289   :  { %5269 = vmatpush3.bf16.msra.mxu1 %v5398_v8  ;;  %5248 = vmatprep.subr.bf16.mxu0 %v5399_v43 }
 0x28a   :  { %5270 = vmatprep.subr.bf16.mxu1 %v5400_v10 }
 0x28c   :  { %5249 = vmatpush3.bf16.msra.mxu0 %v5401_v12 }
 0x28d   :  { %5271 = vmatpush3.bf16.msra.mxu1 %v5402_v13  ;;  %5250 = vmatprep.subr.bf16.mxu0 %v5403_v33 }
 0x28e   :  { %5272 = vmatprep.subr.bf16.mxu1 %v5404_v14 }
 0x290   :  { %5251 = vmatpush3.bf16.msra.mxu0 %v5405_v15 }
 0x291   :  { %5273 = vmatpush3.bf16.msra.mxu1 %v5406_v17  ;;  %5252 = vmatprep.subr.bf16.mxu0 %v5407_v2 }
 0x292   :  { %5274 = vmatprep.subr.bf16.mxu1 %v5408_v18 }
 0x294   :  { %5253 = vmatpush3.bf16.msra.mxu0 %v5409_v19 }
 0x295   :  { %5275 = vmatpush3.bf16.msra.mxu1 %v5410_v50  ;;  %5254 = vmatprep.subr.bf16.mxu0 %v5411_v16 }
 0x296   :  { %5276 = vmatprep.subr.bf16.mxu1 %v5412_v51 }
 0x298   :  { %5255 = vmatpush3.bf16.msra.mxu0 %v5413_v59 }
 0x299   :  { %5277 = vmatpush3.bf16.msra.mxu1 %v5414_v20  ;;  %5256 = vmatprep.subr.bf16.mxu0 %v5415_v22 }
 0x29a   :  { %5278 = vmatprep.subr.bf16.mxu1 %v5416_v24 }
 0x29c   :  { %5257 = vmatpush3.bf16.msra.mxu0 %v5417_v26 }
 0x29d   :  { %5279 = vmatpush3.bf16.msra.mxu1 %v5418_v27 }
 0x332   :  { %v3737_v55 = vpop.f32.mrb[4].mxu0  ;;  %v3901_v63 = vpop.f32.mrb[4].mxu1 }
 0x333   :  { %v5290_v35 = vadd.f32 %v3737_v55, %v671_v30  ;;  %v3739_v37 = vpop.f32.mrb[5].mxu0  ;;  %v5292_v38 = vadd.f32 %v3901_v63, %v679_v31  ;;  %v3903_v40 = vpop.f32.mrb[5].mxu1 }
 0x334   :  { %v5291_v39 = vadd.f32 %v3739_v37, %v675_v32  ;;  %v3741_v41 = vpop.f32.mrb[6].mxu0  ;;  %v5293_v46 = vadd.f32 %v3903_v40, %v683_v34  ;;  %v3905_v47 = vpop.f32.mrb[6].mxu1 }
 0x335   :  { %v3912_v42 = vmax.f32 %v5290_v35, 0.0  ;;  %v3742_v44 = vpop.f32.mrb[7].mxu0  ;;  %v3914_v48 = vmax.f32 %v5292_v38, 0.0  ;;  %v3906_v54 = vpop.f32.mrb[7].mxu1 }
 0x336   :  { %v3913_v52 = vmax.f32 %v5291_v39, 0.0  ;;  %v3915_v56 = vmax.f32 %v5293_v46, 0.0 }
 0x337   :  { %v3920_v57 = vpack.c.bf16 %v3912_v42, %v3912_v42  ;;  %v3922_v58 = vpack.c.bf16 %v3914_v48, %v3914_v48 }
 0x338   :  { %v3921_v9 = vpack.c.bf16 %v3913_v52, %v3913_v52  ;;  %v3923_v23 = vpack.c.bf16 %v3915_v56, %v3915_v56 }
 0x33a   :  { %4555 = vmatprep.mubr.bf16.mxu0 %v3921_v9  ;;  %4595 = vmatprep.mubr.bf16.mxu1 %v3923_v23 }
 0x33b   :  { %4556 = vmatmul.mubr.bf16.vlgmr.msra.gmra.mrb[12].mxu0 %v3920_v57  ;;  %4596 = vmatmul.mubr.bf16.vlgmr.msra.gmra.mrb[12].mxu1 %v3922_v58 }
 0x352   :  { %v5214_v60 = vpop.f32.mrb[8].mxu0 }
 0x353   :  { %v5236_v61 = vpop.f32.mrb[8].mxu1  ;;  %v5215_v62 = vpop.f32.mrb[9].mxu0 }
 0x354   :  { %v5216_v45 = vadd.f32 %v5215_v62, %v5214_v60  ;;  %v5237_v0 = vpop.f32.mrb[9].mxu1  ;;  %v5217_v1 = vpop.f32.mrb[10].mxu0 }
 0x355   :  { %v5238_v53 = vadd.f32 %v5237_v0, %v5236_v61  ;;  %v5239_v49 = vpop.f32.mrb[10].mxu1  ;;  %v5218_v3 = vpop.f32.mrb[11].mxu0 }
 0x356   :  { %v4478_v4 = vadd.f32 %v5216_v45, %v5133_v25  ;;  %v5240_v5 = vpop.f32.mrb[11].mxu1 }
 0x358   :  { %v4518_v6 = vadd.f32 %v5238_v53, %v4478_v4 }
 0x40e   :  { %v5258_v7 = vpop.f32.mrb[12].mxu0  ;;  %v5280_v36 = vpop.f32.mrb[12].mxu1 }
 0x40f   :  { %v5259_v8 = vpop.f32.mrb[13].mxu0  ;;  %v5281_v10 = vpop.f32.mrb[13].mxu1 }
 0x410   :  { %v5260_v43 = vadd.f32 %v5259_v8, %v5258_v7  ;;  %v5261_v12 = vpop.f32.mrb[14].mxu0  ;;  %v5282_v13 = vadd.f32 %v5281_v10, %v5280_v36  ;;  %v5283_v33 = vpop.f32.mrb[14].mxu1 }
 0x411   :  { %v5262_v14 = vpop.f32.mrb[15].mxu0  ;;  %v5284_v17 = vpop.f32.mrb[15].mxu1 }
 0x412   :  { %v4558_v15 = vadd.f32 %v5260_v43, %v4518_v6 }
 0x414   :  { %v4598_v2 = vadd.f32 %v5282_v13, %v4558_v15 }
 0x416   :  { %4603 = vst [vmem:[#allocation11] sm:$0x3] %v4598_v2 }
 0x417   :  { %5540 = shalt.err (!%p5537_p2)
}
 0x418   :  { %s5541_s6 = scalar_lea.hbm %s5798_s5, 32 }
 0x419   :  { %p5542_p3 = scmp.ne.s32.totalorder %s5798_s5, %s5541_s6  ;;  %p5545_p4 = scmp.lt.u32.totalorder %s5541_s6, %s5798_s5 }
 0x41b   :  { %p5547_p5 = pnand %p5545_p4, %p5542_p3 }
 0x41d   :  { %5550 = shalt.err (!%p5547_p5)
}
 0x41e   :  { %4613 = dma.vmem_to_hbm [thread:$0]  %s4611_s28, 32, %s5798_s5, [#allocation4]  }
 0x41f   :  { %5557 = dma.done.wait [#allocation4], 32  }
 0x420   :  { %5558 = vsyncadd [#allocation4], 4294967264 }
 0x421   :  { %4617 = vsyncpa [#allocation3], 1 }
 0x422   :  { %4618 = vsyncpa [#allocation6], 1 }
 0x423   :  { %4619 = vsyncpa [#allocation9], 1 }
 0x424   :  { %4620 = vsyncpa [#allocation4], 1 }

</bundles_post_ra>
